<compile_context>
chip_gen: v7x
topology: tpu7x:2x2x1
jax: 0.10.0
libtpu: 0.0.40
codegen_flags: <defaults>
</compile_context>

<pallas_src>
import functools

import jax
import jax.numpy as jnp
from jax.experimental import pallas as pl
from jax.experimental.pallas import tpu as pltpu


# ---------------------------------------------------------------------------
# In-kernel helpers
# ---------------------------------------------------------------------------
def _conv1x1(t, w_bf16, b_f32, out_dtype):
    """Pointwise conv as an MXU matmul: (H*W, Ci) @ (Ci, Co), f32 accumulation."""
    h, wd, ci = t.shape
    co = w_bf16.shape[-1]
    r = jnp.dot(t.reshape(h * wd, ci).astype(jnp.bfloat16), w_bf16,
                preferred_element_type=jnp.float32)
    return (r + b_f32).reshape(h, wd, co).astype(out_dtype)


def _ln_normalize(t, eps=1e-6):
    """LayerNorm2d statistics over the channel (lane) axis; the affine part is
    folded into the following 1x1 conv in the wrapper.  rsqrt -> EUP slot."""
    mu = jnp.mean(t, axis=-1, keepdims=True)
    d = t - mu
    var = jnp.mean(d * d, axis=-1, keepdims=True)
    return d * jax.lax.rsqrt(var + eps)


def _simple_gate(t):
    k = t.shape[-1] // 2
    return t[..., :k] * t[..., k:]


def _dwconv3x3(halo_ref, t, w, b_f32):
    """Depthwise 3x3, stride 1, pad 1.

    t (H, W, K) is staged into a persistent VMEM scratch with a zeroed 1-pixel
    halo; each of the 9 taps is then a plain shifted VMEM load, so there are no
    padded-copy values, no iota/mask selects and only one tap live at a time.
    """
    h, wd, k = t.shape
    halo_ref[1:h + 1, 1:wd + 1, :] = t
    acc = None
    for i in range(3):          # dy = i - 1
        for j in range(3):      # dx = j - 1
            tap = halo_ref[i:i + h, j:j + wd, :]
            term = tap * w[i:i + 1, j:j + 1, :]
            acc = term if acc is None else acc + term
    return acc + b_f32.reshape(1, 1, k).astype(acc.dtype)


# ---------------------------------------------------------------------------
# Pallas kernel: one NAFBlock per grid step, residual stream carried in VMEM.
# grid = (batch n [parallel], layer l [arbitrary]).
# ---------------------------------------------------------------------------
def naf_stack_kernel(x_ref,
                     dwa_w_ref, dwd_w_ref, sca_w_ref, c1_w_ref, f1_w_ref, f2_w_ref,
                     dwa_b_ref, dwd_b_ref, sca_b_ref, c1_b_ref, f1_b_ref, f2_b_ref,
                     y_ref, out_sc, halo_ref, *, branch_dtype):
    l = pl.program_id(1)
    last = pl.num_programs(1) - 1
    h, wd, c = out_sc.shape
    hw = h * wd

    @pl.when(l == 0)
    def _():
        out_sc[...] = x_ref[...]            # in_conv output == top-level residual
        halo_ref[...] = jnp.zeros_like(halo_ref)   # zero halo border once per image

    out = out_sc[...]                       # (H, W, C) f32 running activation

    # ---- NAFBlock: dwconv / SimpleGate / SCA branch ----
    t = _ln_normalize(out)                                            # norm1 (affine folded)
    t = _conv1x1(t, dwa_w_ref[l], dwa_b_ref[l], branch_dtype)         # 1x1, C -> 2C
    t = _dwconv3x3(halo_ref, t, dwd_w_ref[l], dwd_b_ref[l])           # depthwise 3x3
    t = _simple_gate(t)                                               # -> C

    # SCA: global average pool offloaded to the MXU (ones-row matmul).
    t2d = t.reshape(hw, c)
    pooled = jnp.dot(jnp.full((1, hw), 1.0, t2d.dtype), t2d,
                     preferred_element_type=jnp.float32) * (1.0 / hw)  # (1, C) f32
    att = jnp.dot(pooled.astype(jnp.bfloat16), sca_w_ref[l],
                  preferred_element_type=jnp.float32) + sca_b_ref[l]   # (1, C) f32
    t = t * att.reshape(1, 1, c).astype(t.dtype)

    t = _conv1x1(t, c1_w_ref[l], c1_b_ref[l], jnp.float32)            # beta folded in
    out = out + t

    # ---- NAFBlock: FFN branch ----
    t = _ln_normalize(out)                                            # norm2 (affine folded)
    t = _conv1x1(t, f1_w_ref[l], f1_b_ref[l], branch_dtype)           # 1x1, C -> 2C
    t = _simple_gate(t)
    t = _conv1x1(t, f2_w_ref[l], f2_b_ref[l], jnp.float32)            # gamma folded in
    out = out + t

    @pl.when(l != last)
    def _():
        out_sc[...] = out                   # carry residual stream to next layer

    @pl.when(l == last)
    def _():
        y_ref[...] = (out + x_ref[...]).astype(y_ref.dtype)           # top residual


# ---------------------------------------------------------------------------
# Wrapper (NCHW in / NCHW out, like the PyTorch module)
# ---------------------------------------------------------------------------
def _pick_branch_dtype():
    """bf16 dw-branch elementwise math only where the VPU supports it (v6e/v7x);
    f32 elsewhere (v5e has no bf16 VPU, emulation would be slower)."""
    try:
        kind = jax.devices()[0].device_kind.lower()
    except Exception:
        return jnp.float32
    if ("v6" in kind) or ("v7" in kind) or ("7x" in kind):
        return jnp.bfloat16
    return jnp.float32


def blocks_forward(x_nchw, params):
    x = jnp.transpose(x_nchw, (0, 2, 3, 1)).astype(jnp.float32)       # -> NHWC
    n, h, wd, cin = x.shape
    c = params["in_w"].shape[1]
    cout = params["out_w"].shape[1]
    num_layers = params["dwa_w"].shape[0]
    branch_dtype = _pick_branch_dtype()

    # in_conv (Cin -> C) hoisted to XLA (Cin is lane-sparse on the MXU).
    xin = (x.reshape(-1, cin) @ params["in_w"]
           + params["in_b"].reshape(1, -1)).reshape(n, h, wd, c)

    # Fold the LayerNorm2d affine into the following 1x1 conv:
    #   (w*xhat + b) @ W + bias == xhat @ (diag(w) W) + (b @ W + bias)
    dwa_w = params["n1w"][:, :, None] * params["dwa_w"]
    dwa_b = params["dwa_b"] + jnp.einsum("lc,lcd->ld", params["n1b"], params["dwa_w"])
    f1_w = params["n2w"][:, :, None] * params["f1w"]
    f1_b = params["f1b"] + jnp.einsum("lc,lcd->ld", params["n2b"], params["f1w"])

    # Fold the beta/gamma residual scales into the preceding 1x1 convs so the
    # kernel's residual update is a plain add (saves two (H,W,C) VPU passes/layer).
    c1_w = params["c1_w"] * params["beta"][:, None, :]
    c1_b = params["c1_b"] * params["beta"]
    f2_w = params["f2w"] * params["gamma"][:, None, :]
    f2_b = params["f2b"] * params["gamma"]

    bf16 = lambda a: a.astype(jnp.bfloat16)          # MXU operands; acc stays f32
    v3 = lambda a: a.reshape(a.shape[0], 1, a.shape[1])  # (L, D) -> (L, 1, D)

    # All per-layer weights/biases stay fully VMEM-resident (a few MiB even at
    # C=256, L=4) and are indexed by the dynamic layer id in-kernel: no per-layer
    # weight re-DMA / double-buffer churn at every l boundary.
    w_args = [bf16(dwa_w), params["dwd_w"].astype(branch_dtype), bf16(params["sca_w"]),
              bf16(c1_w), bf16(f1_w), bf16(f2_w)]
    b_args = [v3(dwa_b), v3(params["dwd_b"]), v3(params["sca_b"]),
              v3(c1_b), v3(f1_b), v3(f2_b)]

    def full_spec(a):
        nd = a.ndim
        return pl.BlockSpec(a.shape, lambda ni, li, _nd=nd: (0,) * _nd)

    in_specs = ([pl.BlockSpec((None, h, wd, c), lambda ni, li: (ni, 0, 0, 0))]
                + [full_spec(a) for a in w_args + b_args])
    out_spec = pl.BlockSpec((None, h, wd, c), lambda ni, li: (ni, 0, 0, 0))

    # VMEM budget derived from the live set (x/y blocks double-buffered,
    # residual + halo scratch, a few (H,W,2C) temps, resident weights);
    # capped at 48 MiB so it also leaves >=16 MiB headroom on v7x's 64 MiB.
    act2_bytes = h * wd * (2 * c) * 4
    weight_bytes = sum(int(a.size) * int(a.dtype.itemsize) for a in w_args + b_args)
    vmem_limit = int(min(max(12 * act2_bytes + 2 * weight_bytes + (4 << 20),
                             32 << 20), 48 << 20))

    yk = pl.pallas_call(
        functools.partial(naf_stack_kernel, branch_dtype=branch_dtype),
        out_shape=jax.ShapeDtypeStruct((n, h, wd, c), jnp.float32),
        grid_spec=pltpu.PrefetchScalarGridSpec(
            num_scalar_prefetch=0,
            grid=(n, num_layers),
            in_specs=in_specs,
            out_specs=out_spec,
            scratch_shapes=[
                pltpu.VMEM((h, wd, c), jnp.float32),                 # residual stream
                pltpu.VMEM((h + 2, wd + 2, 2 * c), branch_dtype),    # dwconv halo stage
            ],
        ),
        compiler_params=pltpu.CompilerParams(
            dimension_semantics=("parallel", "arbitrary"),
            vmem_limit_bytes=vmem_limit,
        ),
    )(xin, *w_args, *b_args)

    # out_conv (C -> Cout) hoisted to XLA (lane-sparse output would force masked
    # partial stores in the kernel epilogue).
    y = (yk.reshape(-1, c) @ params["out_w"]
         + params["out_b"].reshape(1, -1)).reshape(n, h, wd, cout)
    return jnp.transpose(y, (0, 3, 1, 2))                             # -> NCHW


# ---------------------------------------------------------------------------
# Parameters (deterministic, synthetic; shapes follow the module __init__),
# stacked along a leading `layers` axis.
# ---------------------------------------------------------------------------
def make_params(key, in_dim, out_dim, layers, c):
    keys = iter(jax.random.split(key, 32))

    def w(shape, scale=0.05):
        return jax.random.normal(next(keys), shape, jnp.float32) * scale

    return dict(
        in_w=w((in_dim, c)), in_b=w((1, c)),
        # NOTE: PyTorch inits LayerNorm2d affine to (1,0) and beta/gamma to 0;
        # we perturb them so the folded-affine and scaled-residual paths are
        # actually exercised by the test.
        n1w=1.0 + w((layers, c), 0.1), n1b=w((layers, c)),
        dwa_w=w((layers, c, 2 * c)), dwa_b=w((layers, 2 * c)),
        dwd_w=w((layers, 3, 3, 2 * c)), dwd_b=w((layers, 2 * c)),
        sca_w=w((layers, c, c)), sca_b=w((layers, c)),
        c1_w=w((layers, c, c)), c1_b=w((layers, c)),
        beta=w((layers, c), 0.1),
        n2w=1.0 + w((layers, c), 0.1), n2b=w((layers, c)),
        f1w=w((layers, c, 2 * c)), f1b=w((layers, 2 * c)),
        f2w=w((layers, c, c)), f2b=w((layers, c)),
        gamma=w((layers, c), 0.1),
        out_w=w((c, out_dim)), out_b=w((1, out_dim)),
    )


# ---------------------------------------------------------------------------
# Pure-JAX f32 reference (original unfolded math, padded dwconv).
# ---------------------------------------------------------------------------
def _conv1x1_ref(t, w, b):
    n, h, wd, ci = t.shape
    co = w.shape[1]
    r = jnp.dot(t.reshape(n * h * wd, ci), w)
    return r.reshape(n, h, wd, co) + b.reshape(1, 1, 1, co)


def _layernorm2d_ref(t, w, b, eps=1e-6):
    mu = jnp.mean(t, axis=-1, keepdims=True)
    var = jnp.mean((t - mu) ** 2, axis=-1, keepdims=True)
    y = (t - mu) / jnp.sqrt(var + eps)
    return y * w.reshape(1, 1, 1, -1) + b.reshape(1, 1, 1, -1)


def _dwconv3x3_ref(t, w, b):
    n, h, wd, k = t.shape
    xp = jnp.zeros((n, h + 2, wd + 2, k), t.dtype)
    xp = jax.lax.dynamic_update_slice(xp, t, (0, 1, 1, 0))
    acc = jnp.zeros_like(t)
    for dy in range(3):
        for dx in range(3):
            acc = acc + xp[:, dy:dy + h, dx:dx + wd, :] * w[dy, dx].reshape(1, 1, 1, k)
    return acc + b.reshape(1, 1, 1, k)


def blocks_reference(x_nchw, p):
    x = jnp.transpose(x_nchw, (0, 2, 3, 1)).astype(jnp.float32)
    out = _conv1x1_ref(x, p["in_w"], p["in_b"])
    top = out
    for i in range(p["n1w"].shape[0]):
        identity = out
        t = _layernorm2d_ref(out, p["n1w"][i], p["n1b"][i])
        t = _conv1x1_ref(t, p["dwa_w"][i], p["dwa_b"][i])
        t = _dwconv3x3_ref(t, p["dwd_w"][i], p["dwd_b"][i])
        t = t[..., :t.shape[-1] // 2] * t[..., t.shape[-1] // 2:]
        pooled = jnp.mean(t, axis=(1, 2))
        att = pooled @ p["sca_w"][i] + p["sca_b"][i][None, :]
        t = t * att[:, None, None, :]
        t = _conv1x1_ref(t, p["c1_w"][i], p["c1_b"][i])
        out = identity + t * p["beta"][i].reshape(1, 1, 1, -1)
        identity = out
        t = _layernorm2d_ref(out, p["n2w"][i], p["n2b"][i])
        t = _conv1x1_ref(t, p["f1w"][i], p["f1b"][i])
        t = t[..., :t.shape[-1] // 2] * t[..., t.shape[-1] // 2:]
        t = _conv1x1_ref(t, p["f2w"][i], p["f2b"][i])
        out = identity + t * p["gamma"][i].reshape(1, 1, 1, -1)
    out = out + top
    out = _conv1x1_ref(out, p["out_w"], p["out_b"])
    return jnp.transpose(out, (0, 3, 1, 2))


if __name__ == "__main__":
    key = jax.random.PRNGKey(0)
    kx, kp = jax.random.split(key)

    # Small shapes consistent with the module (real Decoder blocks use
    # C in {192,224,256} and layers=4): batch=2, in/out channels=8,
    # spatial 16x16, inner channels C=64, 2 NAFBlocks.
    N, CIN, H, W = 2, 8, 16, 16
    COUT, C, LAYERS = 8, 64, 2

    x = jax.random.normal(kx, (N, CIN, H, W), jnp.float32)
    params = make_params(kp, CIN, COUT, LAYERS, C)

    fwd = jax.jit(blocks_forward)
    y = jax.block_until_ready(fwd(x, params))
    assert y.shape == (N, COUT, H, W)

    y_ref = blocks_reference(x, params)
    # Kernel uses bf16 MXU operands (+ bf16 dw-branch math on v6e/v7x) and
    # folded LayerNorm/beta/gamma; reference is all-f32.
    err = float(jnp.max(jnp.abs(y - y_ref)))
    assert jnp.allclose(y, y_ref, atol=2e-2, rtol=2e-2), f"mismatch vs ref, max abs err {err}"

    print("KERNEL_OK")
</pallas_src>

<mosaic_0001>
module attributes {stable_mosaic.version = 11 : i64} {
  func.func @naf_stack_kernel(%arg0: i32, %arg1: i32, %arg2: memref<1x16x16x64xf32, #tpu.memory_space<vmem>>, %arg3: memref<2x64x128xbf16, #tpu.memory_space<vmem>>, %arg4: memref<2x3x3x128xf32, #tpu.memory_space<vmem>>, %arg5: memref<2x64x64xbf16, #tpu.memory_space<vmem>>, %arg6: memref<2x64x64xbf16, #tpu.memory_space<vmem>>, %arg7: memref<2x64x128xbf16, #tpu.memory_space<vmem>>, %arg8: memref<2x64x64xbf16, #tpu.memory_space<vmem>>, %arg9: memref<2x1x128xf32, #tpu.memory_space<vmem>>, %arg10: memref<2x1x128xf32, #tpu.memory_space<vmem>>, %arg11: memref<2x1x64xf32, #tpu.memory_space<vmem>>, %arg12: memref<2x1x64xf32, #tpu.memory_space<vmem>>, %arg13: memref<2x1x128xf32, #tpu.memory_space<vmem>>, %arg14: memref<2x1x64xf32, #tpu.memory_space<vmem>>, %arg15: memref<1x16x16x64xf32, #tpu.memory_space<vmem>>, %arg16: memref<16x16x64xf32, #tpu.memory_space<vmem>>, %arg17: memref<18x18x128xf32, #tpu.memory_space<vmem>>) attributes {dimension_semantics = [#tpu.dimension_semantics<parallel>, #tpu.dimension_semantics<arbitrary>], iteration_bounds = array<i64: 2, 2>, scalar_prefetch = 0 : i64, scratch_operands = 2 : i64, tpu.core_type = #tpu.core_type<tc>, window_params = [{transform_indices = @transform_0, window_bounds = array<i64: 1, 16, 16, 64>}, {pipeline_mode = #tpu.pipeline_mode<synchronous>, transform_indices = @transform_1, window_bounds = array<i64: 2, 64, 128>}, {pipeline_mode = #tpu.pipeline_mode<synchronous>, transform_indices = @transform_2, window_bounds = array<i64: 2, 3, 3, 128>}, {pipeline_mode = #tpu.pipeline_mode<synchronous>, transform_indices = @transform_3, window_bounds = array<i64: 2, 64, 64>}, {pipeline_mode = #tpu.pipeline_mode<synchronous>, transform_indices = @transform_4, window_bounds = array<i64: 2, 64, 64>}, {pipeline_mode = #tpu.pipeline_mode<synchronous>, transform_indices = @transform_5, window_bounds = array<i64: 2, 64, 128>}, {pipeline_mode = #tpu.pipeline_mode<synchronous>, transform_indices = @transform_6, window_bounds = array<i64: 2, 64, 64>}, {pipeline_mode = #tpu.pipeline_mode<synchronous>, transform_indices = @transform_7, window_bounds = array<i64: 2, 1, 128>}, {pipeline_mode = #tpu.pipeline_mode<synchronous>, transform_indices = @transform_8, window_bounds = array<i64: 2, 1, 128>}, {pipeline_mode = #tpu.pipeline_mode<synchronous>, transform_indices = @transform_9, window_bounds = array<i64: 2, 1, 64>}, {pipeline_mode = #tpu.pipeline_mode<synchronous>, transform_indices = @transform_10, window_bounds = array<i64: 2, 1, 64>}, {pipeline_mode = #tpu.pipeline_mode<synchronous>, transform_indices = @transform_11, window_bounds = array<i64: 2, 1, 128>}, {pipeline_mode = #tpu.pipeline_mode<synchronous>, transform_indices = @transform_12, window_bounds = array<i64: 2, 1, 64>}, {transform_indices = @transform_13, window_bounds = array<i64: 1, 16, 16, 64>}]} {
    %c0_i32 = arith.constant 0 : i32
    %0 = arith.cmpi eq, %arg1, %c0_i32 : i32
    %1 = arith.extui %0 : i1 to i32
    %c0_i32_0 = arith.constant 0 : i32
    %2 = arith.cmpi ne, %1, %c0_i32_0 : i32
    scf.if %2 {
      %c0_76 = arith.constant 0 : index
      %c0_77 = arith.constant 0 : index
      %c0_78 = arith.constant 0 : index
      %c0_79 = arith.constant 0 : index
      %169 = vector.load %arg2[%c0_76, %c0_77, %c0_78, %c0_79] : memref<1x16x16x64xf32, #tpu.memory_space<vmem>>, vector<1x16x16x64xf32>
      %170 = vector.shape_cast %169 : vector<1x16x16x64xf32> to vector<16x16x64xf32>
      %c0_80 = arith.constant 0 : index
      %c0_81 = arith.constant 0 : index
      %c0_82 = arith.constant 0 : index
      %171 = vector.load %arg16[%c0_80, %c0_81, %c0_82] : memref<16x16x64xf32, #tpu.memory_space<vmem>>, vector<16x16x64xf32>
      tpu.vector_store %arg16[%c0_80, %c0_81, %c0_82], %170 {strides = array<i32>} : memref<16x16x64xf32, #tpu.memory_space<vmem>>, vector<16x16x64xf32>,
      %cst_83 = arith.constant 0.000000e+00 : f32
      %172 = vector.broadcast %cst_83 : f32 to vector<18x18x128xf32>
      %c0_84 = arith.constant 0 : index
      %c0_85 = arith.constant 0 : index
      %c0_86 = arith.constant 0 : index
      %173 = vector.load %arg17[%c0_84, %c0_85, %c0_86] : memref<18x18x128xf32, #tpu.memory_space<vmem>>, vector<18x18x128xf32>
      tpu.vector_store %arg17[%c0_84, %c0_85, %c0_86], %172 {strides = array<i32>} : memref<18x18x128xf32, #tpu.memory_space<vmem>>, vector<18x18x128xf32>,
    } else {
    }
    %c0 = arith.constant 0 : index
    %c0_1 = arith.constant 0 : index
    %c0_2 = arith.constant 0 : index
    %3 = vector.load %arg16[%c0, %c0_1, %c0_2] : memref<16x16x64xf32, #tpu.memory_space<vmem>>, vector<16x16x64xf32>
    %cst = arith.constant dense<0.000000e+00> : vector<16x16xf32>
    %4 = vector.multi_reduction <add>, %3, %cst [2] : vector<16x16x64xf32> to vector<16x16xf32>
    %5 = vector.shape_cast %4 : vector<16x16xf32> to vector<16x16x1xf32>
    %cst_3 = arith.constant 6.400000e+01 : f32
    %6 = vector.broadcast %cst_3 : f32 to vector<16x16x1xf32>
    %7 = arith.divf %5, %6 : vector<16x16x1xf32>
    %8 = vector.broadcast %7 : vector<16x16x1xf32> to vector<16x16x64xf32>
    %9 = arith.subf %3, %8 : vector<16x16x64xf32>
    %10 = arith.mulf %9, %9 : vector<16x16x64xf32>
    %cst_4 = arith.constant dense<0.000000e+00> : vector<16x16xf32>
    %11 = vector.multi_reduction <add>, %10, %cst_4 [2] : vector<16x16x64xf32> to vector<16x16xf32>
    %12 = vector.shape_cast %11 : vector<16x16xf32> to vector<16x16x1xf32>
    %cst_5 = arith.constant 6.400000e+01 : f32
    %13 = vector.broadcast %cst_5 : f32 to vector<16x16x1xf32>
    %14 = arith.divf %12, %13 : vector<16x16x1xf32>
    %cst_6 = arith.constant 9.99999997E-7 : f32
    %15 = vector.broadcast %cst_6 : f32 to vector<16x16x1xf32>
    %16 = arith.addf %14, %15 : vector<16x16x1xf32>
    %17 = math.rsqrt %16 : vector<16x16x1xf32>
    %18 = vector.broadcast %17 : vector<16x16x1xf32> to vector<16x16x64xf32>
    %19 = arith.mulf %9, %18 : vector<16x16x64xf32>
    %20 = arith.index_cast %arg1 : i32 to index
    %c0_7 = arith.constant 0 : index
    %c0_8 = arith.constant 0 : index
    %21 = vector.load %arg3[%20, %c0_7, %c0_8] : memref<2x64x128xbf16, #tpu.memory_space<vmem>>, vector<1x64x128xbf16>
    %22 = vector.shape_cast %21 : vector<1x64x128xbf16> to vector<64x128xbf16>
    %23 = arith.index_cast %arg1 : i32 to index
    %c0_9 = arith.constant 0 : index
    %c0_10 = arith.constant 0 : index
    %24 = vector.load %arg9[%23, %c0_9, %c0_10] : memref<2x1x128xf32, #tpu.memory_space<vmem>>, vector<1x1x128xf32>
    %25 = vector.shape_cast %24 : vector<1x1x128xf32> to vector<1x128xf32>
    %26 = vector.shape_cast %19 : vector<16x16x64xf32> to vector<256x64xf32>
    %27 = arith.truncf %26 : vector<256x64xf32> to vector<256x64xbf16>
    %cst_11 = arith.constant dense<0.000000e+00> : vector<256x128xf32>
    %28 = tpu.matmul %27, %22, %cst_11 {dimension_numbers = #tpu.dot_dimension_numbers<[1], [0], [0], [1], [0, 0, 1, 1], [], []>} : vector<256x64xbf16>, vector<64x128xbf16>, vector<256x128xf32> -> vector<256x128xf32>
    %29 = vector.broadcast %25 : vector<1x128xf32> to vector<256x128xf32>
    %30 = arith.addf %28, %29 : vector<256x128xf32>
    %31 = vector.shape_cast %30 : vector<256x128xf32> to vector<16x16x128xf32>
    %32 = arith.index_cast %arg1 : i32 to index
    %c0_12 = arith.constant 0 : index
    %c0_13 = arith.constant 0 : index
    %c0_14 = arith.constant 0 : index
    %33 = vector.load %arg4[%32, %c0_12, %c0_13, %c0_14] : memref<2x3x3x128xf32, #tpu.memory_space<vmem>>, vector<1x3x3x128xf32>
    %34 = vector.shape_cast %33 : vector<1x3x3x128xf32> to vector<3x3x128xf32>
    %35 = arith.index_cast %arg1 : i32 to index
    %c0_15 = arith.constant 0 : index
    %c0_16 = arith.constant 0 : index
    %36 = vector.load %arg10[%35, %c0_15, %c0_16] : memref<2x1x128xf32, #tpu.memory_space<vmem>>, vector<1x1x128xf32>
    %37 = vector.shape_cast %36 : vector<1x1x128xf32> to vector<1x128xf32>
    %c1 = arith.constant 1 : index
    %c1_17 = arith.constant 1 : index
    %c0_18 = arith.constant 0 : index
    %38 = vector.load %arg17[%c1, %c1_17, %c0_18] : memref<18x18x128xf32, #tpu.memory_space<vmem>>, vector<16x16x128xf32>
    tpu.vector_store %arg17[%c1, %c1_17, %c0_18], %31 {strides = array<i32>} : memref<18x18x128xf32, #tpu.memory_space<vmem>>, vector<16x16x128xf32>,
    %c0_19 = arith.constant 0 : index
    %c0_20 = arith.constant 0 : index
    %c0_21 = arith.constant 0 : index
    %39 = vector.load %arg17[%c0_19, %c0_20, %c0_21] : memref<18x18x128xf32, #tpu.memory_space<vmem>>, vector<16x16x128xf32>
    %40 = vector.extract_strided_slice %34 {offsets = [0, 0, 0], sizes = [1, 1, 128], strides = [1, 1, 1]} : vector<3x3x128xf32> to vector<1x1x128xf32>
    %41 = vector.broadcast %40 : vector<1x1x128xf32> to vector<16x16x128xf32>
    %42 = arith.mulf %39, %41 : vector<16x16x128xf32>
    %c0_22 = arith.constant 0 : index
    %c1_23 = arith.constant 1 : index
    %c0_24 = arith.constant 0 : index
    %43 = vector.load %arg17[%c0_22, %c1_23, %c0_24] : memref<18x18x128xf32, #tpu.memory_space<vmem>>, vector<16x16x128xf32>
    %44 = vector.extract_strided_slice %34 {offsets = [0, 1, 0], sizes = [1, 1, 128], strides = [1, 1, 1]} : vector<3x3x128xf32> to vector<1x1x128xf32>
    %45 = vector.broadcast %44 : vector<1x1x128xf32> to vector<16x16x128xf32>
    %46 = arith.mulf %43, %45 : vector<16x16x128xf32>
    %47 = arith.addf %42, %46 : vector<16x16x128xf32>
    %c0_25 = arith.constant 0 : index
    %c2 = arith.constant 2 : index
    %c0_26 = arith.constant 0 : index
    %48 = vector.load %arg17[%c0_25, %c2, %c0_26] : memref<18x18x128xf32, #tpu.memory_space<vmem>>, vector<16x16x128xf32>
    %49 = vector.extract_strided_slice %34 {offsets = [0, 2, 0], sizes = [1, 1, 128], strides = [1, 1, 1]} : vector<3x3x128xf32> to vector<1x1x128xf32>
    %50 = vector.broadcast %49 : vector<1x1x128xf32> to vector<16x16x128xf32>
    %51 = arith.mulf %48, %50 : vector<16x16x128xf32>
    %52 = arith.addf %47, %51 : vector<16x16x128xf32>
    %c1_27 = arith.constant 1 : index
    %c0_28 = arith.constant 0 : index
    %c0_29 = arith.constant 0 : index
    %53 = vector.load %arg17[%c1_27, %c0_28, %c0_29] : memref<18x18x128xf32, #tpu.memory_space<vmem>>, vector<16x16x128xf32>
    %54 = vector.extract_strided_slice %34 {offsets = [1, 0, 0], sizes = [1, 1, 128], strides = [1, 1, 1]} : vector<3x3x128xf32> to vector<1x1x128xf32>
    %55 = vector.broadcast %54 : vector<1x1x128xf32> to vector<16x16x128xf32>
    %56 = arith.mulf %53, %55 : vector<16x16x128xf32>
    %57 = arith.addf %52, %56 : vector<16x16x128xf32>
    %c1_30 = arith.constant 1 : index
    %c1_31 = arith.constant 1 : index
    %c0_32 = arith.constant 0 : index
    %58 = vector.load %arg17[%c1_30, %c1_31, %c0_32] : memref<18x18x128xf32, #tpu.memory_space<vmem>>, vector<16x16x128xf32>
    %59 = vector.extract_strided_slice %34 {offsets = [1, 1, 0], sizes = [1, 1, 128], strides = [1, 1, 1]} : vector<3x3x128xf32> to vector<1x1x128xf32>
    %60 = vector.broadcast %59 : vector<1x1x128xf32> to vector<16x16x128xf32>
    %61 = arith.mulf %58, %60 : vector<16x16x128xf32>
    %62 = arith.addf %57, %61 : vector<16x16x128xf32>
    %c1_33 = arith.constant 1 : index
    %c2_34 = arith.constant 2 : index
    %c0_35 = arith.constant 0 : index
    %63 = vector.load %arg17[%c1_33, %c2_34, %c0_35] : memref<18x18x128xf32, #tpu.memory_space<vmem>>, vector<16x16x128xf32>
    %64 = vector.extract_strided_slice %34 {offsets = [1, 2, 0], sizes = [1, 1, 128], strides = [1, 1, 1]} : vector<3x3x128xf32> to vector<1x1x128xf32>
    %65 = vector.broadcast %64 : vector<1x1x128xf32> to vector<16x16x128xf32>
    %66 = arith.mulf %63, %65 : vector<16x16x128xf32>
    %67 = arith.addf %62, %66 : vector<16x16x128xf32>
    %c2_36 = arith.constant 2 : index
    %c0_37 = arith.constant 0 : index
    %c0_38 = arith.constant 0 : index
    %68 = vector.load %arg17[%c2_36, %c0_37, %c0_38] : memref<18x18x128xf32, #tpu.memory_space<vmem>>, vector<16x16x128xf32>
    %69 = vector.extract_strided_slice %34 {offsets = [2, 0, 0], sizes = [1, 1, 128], strides = [1, 1, 1]} : vector<3x3x128xf32> to vector<1x1x128xf32>
    %70 = vector.broadcast %69 : vector<1x1x128xf32> to vector<16x16x128xf32>
    %71 = arith.mulf %68, %70 : vector<16x16x128xf32>
    %72 = arith.addf %67, %71 : vector<16x16x128xf32>
    %c2_39 = arith.constant 2 : index
    %c1_40 = arith.constant 1 : index
    %c0_41 = arith.constant 0 : index
    %73 = vector.load %arg17[%c2_39, %c1_40, %c0_41] : memref<18x18x128xf32, #tpu.memory_space<vmem>>, vector<16x16x128xf32>
    %74 = vector.extract_strided_slice %34 {offsets = [2, 1, 0], sizes = [1, 1, 128], strides = [1, 1, 1]} : vector<3x3x128xf32> to vector<1x1x128xf32>
    %75 = vector.broadcast %74 : vector<1x1x128xf32> to vector<16x16x128xf32>
    %76 = arith.mulf %73, %75 : vector<16x16x128xf32>
    %77 = arith.addf %72, %76 : vector<16x16x128xf32>
    %c2_42 = arith.constant 2 : index
    %c2_43 = arith.constant 2 : index
    %c0_44 = arith.constant 0 : index
    %78 = vector.load %arg17[%c2_42, %c2_43, %c0_44] : memref<18x18x128xf32, #tpu.memory_space<vmem>>, vector<16x16x128xf32>
    %79 = vector.extract_strided_slice %34 {offsets = [2, 2, 0], sizes = [1, 1, 128], strides = [1, 1, 1]} : vector<3x3x128xf32> to vector<1x1x128xf32>
    %80 = vector.broadcast %79 : vector<1x1x128xf32> to vector<16x16x128xf32>
    %81 = arith.mulf %78, %80 : vector<16x16x128xf32>
    %82 = arith.addf %77, %81 : vector<16x16x128xf32>
    %83 = vector.shape_cast %37 : vector<1x128xf32> to vector<1x1x128xf32>
    %84 = vector.broadcast %83 : vector<1x1x128xf32> to vector<16x16x128xf32>
    %85 = arith.addf %82, %84 : vector<16x16x128xf32>
    %86 = vector.extract_strided_slice %85 {offsets = [0, 0, 0], sizes = [16, 16, 64], strides = [1, 1, 1]} : vector<16x16x128xf32> to vector<16x16x64xf32>
    %87 = vector.extract_strided_slice %85 {offsets = [0, 0, 64], sizes = [16, 16, 64], strides = [1, 1, 1]} : vector<16x16x128xf32> to vector<16x16x64xf32>
    %88 = arith.mulf %86, %87 : vector<16x16x64xf32>
    %89 = vector.shape_cast %88 : vector<16x16x64xf32> to vector<256x64xf32>
    %cst_45 = arith.constant 1.000000e+00 : f32
    %90 = vector.broadcast %cst_45 : f32 to vector<1x256xf32>
    %cst_46 = arith.constant dense<0.000000e+00> : vector<1x64xf32>
    %91 = tpu.matmul %90, %89, %cst_46 {dimension_numbers = #tpu.dot_dimension_numbers<[1], [0], [0], [1], [0, 0, 1, 1], [], []>} : vector<1x256xf32>, vector<256x64xf32>, vector<1x64xf32> -> vector<1x64xf32>
    %cst_47 = arith.constant 3.906250e-03 : f32
    %92 = vector.broadcast %cst_47 : f32 to vector<1x64xf32>
    %93 = arith.mulf %91, %92 : vector<1x64xf32>
    %94 = arith.truncf %93 : vector<1x64xf32> to vector<1x64xbf16>
    %95 = arith.index_cast %arg1 : i32 to index
    %c0_48 = arith.constant 0 : index
    %c0_49 = arith.constant 0 : index
    %96 = vector.load %arg5[%95, %c0_48, %c0_49] : memref<2x64x64xbf16, #tpu.memory_space<vmem>>, vector<1x64x64xbf16>
    %97 = vector.shape_cast %96 : vector<1x64x64xbf16> to vector<64x64xbf16>
    %cst_50 = arith.constant dense<0.000000e+00> : vector<1x64xf32>
    %98 = tpu.matmul %94, %97, %cst_50 {dimension_numbers = #tpu.dot_dimension_numbers<[1], [0], [0], [1], [0, 0, 1, 1], [], []>} : vector<1x64xbf16>, vector<64x64xbf16>, vector<1x64xf32> -> vector<1x64xf32>
    %99 = arith.index_cast %arg1 : i32 to index
    %c0_51 = arith.constant 0 : index
    %c0_52 = arith.constant 0 : index
    %100 = vector.load %arg11[%99, %c0_51, %c0_52] : memref<2x1x64xf32, #tpu.memory_space<vmem>>, vector<1x1x64xf32>
    %101 = vector.shape_cast %100 : vector<1x1x64xf32> to vector<1x64xf32>
    %102 = arith.addf %98, %101 : vector<1x64xf32>
    %103 = vector.shape_cast %102 : vector<1x64xf32> to vector<1x1x64xf32>
    %104 = vector.broadcast %103 : vector<1x1x64xf32> to vector<16x16x64xf32>
    %105 = arith.mulf %88, %104 : vector<16x16x64xf32>
    %106 = arith.index_cast %arg1 : i32 to index
    %c0_53 = arith.constant 0 : index
    %c0_54 = arith.constant 0 : index
    %107 = vector.load %arg6[%106, %c0_53, %c0_54] : memref<2x64x64xbf16, #tpu.memory_space<vmem>>, vector<1x64x64xbf16>
    %108 = vector.shape_cast %107 : vector<1x64x64xbf16> to vector<64x64xbf16>
    %109 = arith.index_cast %arg1 : i32 to index
    %c0_55 = arith.constant 0 : index
    %c0_56 = arith.constant 0 : index
    %110 = vector.load %arg12[%109, %c0_55, %c0_56] : memref<2x1x64xf32, #tpu.memory_space<vmem>>, vector<1x1x64xf32>
    %111 = vector.shape_cast %110 : vector<1x1x64xf32> to vector<1x64xf32>
    %112 = vector.shape_cast %105 : vector<16x16x64xf32> to vector<256x64xf32>
    %113 = arith.truncf %112 : vector<256x64xf32> to vector<256x64xbf16>
    %cst_57 = arith.constant dense<0.000000e+00> : vector<256x64xf32>
    %114 = tpu.matmul %113, %108, %cst_57 {dimension_numbers = #tpu.dot_dimension_numbers<[1], [0], [0], [1], [0, 0, 1, 1], [], []>} : vector<256x64xbf16>, vector<64x64xbf16>, vector<256x64xf32> -> vector<256x64xf32>
    %115 = vector.broadcast %111 : vector<1x64xf32> to vector<256x64xf32>
    %116 = arith.addf %114, %115 : vector<256x64xf32>
    %117 = vector.shape_cast %116 : vector<256x64xf32> to vector<16x16x64xf32>
    %118 = arith.addf %3, %117 : vector<16x16x64xf32>
    %cst_58 = arith.constant dense<0.000000e+00> : vector<16x16xf32>
    %119 = vector.multi_reduction <add>, %118, %cst_58 [2] : vector<16x16x64xf32> to vector<16x16xf32>
    %120 = vector.shape_cast %119 : vector<16x16xf32> to vector<16x16x1xf32>
    %cst_59 = arith.constant 6.400000e+01 : f32
    %121 = vector.broadcast %cst_59 : f32 to vector<16x16x1xf32>
    %122 = arith.divf %120, %121 : vector<16x16x1xf32>
    %123 = vector.broadcast %122 : vector<16x16x1xf32> to vector<16x16x64xf32>
    %124 = arith.subf %118, %123 : vector<16x16x64xf32>
    %125 = arith.mulf %124, %124 : vector<16x16x64xf32>
    %cst_60 = arith.constant dense<0.000000e+00> : vector<16x16xf32>
    %126 = vector.multi_reduction <add>, %125, %cst_60 [2] : vector<16x16x64xf32> to vector<16x16xf32>
    %127 = vector.shape_cast %126 : vector<16x16xf32> to vector<16x16x1xf32>
    %cst_61 = arith.constant 6.400000e+01 : f32
    %128 = vector.broadcast %cst_61 : f32 to vector<16x16x1xf32>
    %129 = arith.divf %127, %128 : vector<16x16x1xf32>
    %cst_62 = arith.constant 9.99999997E-7 : f32
    %130 = vector.broadcast %cst_62 : f32 to vector<16x16x1xf32>
    %131 = arith.addf %129, %130 : vector<16x16x1xf32>
    %132 = math.rsqrt %131 : vector<16x16x1xf32>
    %133 = vector.broadcast %132 : vector<16x16x1xf32> to vector<16x16x64xf32>
    %134 = arith.mulf %124, %133 : vector<16x16x64xf32>
    %135 = arith.index_cast %arg1 : i32 to index
    %c0_63 = arith.constant 0 : index
    %c0_64 = arith.constant 0 : index
    %136 = vector.load %arg7[%135, %c0_63, %c0_64] : memref<2x64x128xbf16, #tpu.memory_space<vmem>>, vector<1x64x128xbf16>
    %137 = vector.shape_cast %136 : vector<1x64x128xbf16> to vector<64x128xbf16>
    %138 = arith.index_cast %arg1 : i32 to index
    %c0_65 = arith.constant 0 : index
    %c0_66 = arith.constant 0 : index
    %139 = vector.load %arg13[%138, %c0_65, %c0_66] : memref<2x1x128xf32, #tpu.memory_space<vmem>>, vector<1x1x128xf32>
    %140 = vector.shape_cast %139 : vector<1x1x128xf32> to vector<1x128xf32>
    %141 = vector.shape_cast %134 : vector<16x16x64xf32> to vector<256x64xf32>
    %142 = arith.truncf %141 : vector<256x64xf32> to vector<256x64xbf16>
    %cst_67 = arith.constant dense<0.000000e+00> : vector<256x128xf32>
    %143 = tpu.matmul %142, %137, %cst_67 {dimension_numbers = #tpu.dot_dimension_numbers<[1], [0], [0], [1], [0, 0, 1, 1], [], []>} : vector<256x64xbf16>, vector<64x128xbf16>, vector<256x128xf32> -> vector<256x128xf32>
    %144 = vector.broadcast %140 : vector<1x128xf32> to vector<256x128xf32>
    %145 = arith.addf %143, %144 : vector<256x128xf32>
    %146 = vector.shape_cast %145 : vector<256x128xf32> to vector<16x16x128xf32>
    %147 = vector.extract_strided_slice %146 {offsets = [0, 0, 0], sizes = [16, 16, 64], strides = [1, 1, 1]} : vector<16x16x128xf32> to vector<16x16x64xf32>
    %148 = vector.extract_strided_slice %146 {offsets = [0, 0, 64], sizes = [16, 16, 64], strides = [1, 1, 1]} : vector<16x16x128xf32> to vector<16x16x64xf32>
    %149 = arith.mulf %147, %148 : vector<16x16x64xf32>
    %150 = arith.index_cast %arg1 : i32 to index
    %c0_68 = arith.constant 0 : index
    %c0_69 = arith.constant 0 : index
    %151 = vector.load %arg8[%150, %c0_68, %c0_69] : memref<2x64x64xbf16, #tpu.memory_space<vmem>>, vector<1x64x64xbf16>
    %152 = vector.shape_cast %151 : vector<1x64x64xbf16> to vector<64x64xbf16>
    %153 = arith.index_cast %arg1 : i32 to index
    %c0_70 = arith.constant 0 : index
    %c0_71 = arith.constant 0 : index
    %154 = vector.load %arg14[%153, %c0_70, %c0_71] : memref<2x1x64xf32, #tpu.memory_space<vmem>>, vector<1x1x64xf32>
    %155 = vector.shape_cast %154 : vector<1x1x64xf32> to vector<1x64xf32>
    %156 = vector.shape_cast %149 : vector<16x16x64xf32> to vector<256x64xf32>
    %157 = arith.truncf %156 : vector<256x64xf32> to vector<256x64xbf16>
    %cst_72 = arith.constant dense<0.000000e+00> : vector<256x64xf32>
    %158 = tpu.matmul %157, %152, %cst_72 {dimension_numbers = #tpu.dot_dimension_numbers<[1], [0], [0], [1], [0, 0, 1, 1], [], []>} : vector<256x64xbf16>, vector<64x64xbf16>, vector<256x64xf32> -> vector<256x64xf32>
    %159 = vector.broadcast %155 : vector<1x64xf32> to vector<256x64xf32>
    %160 = arith.addf %158, %159 : vector<256x64xf32>
    %161 = vector.shape_cast %160 : vector<256x64xf32> to vector<16x16x64xf32>
    %162 = arith.addf %118, %161 : vector<16x16x64xf32>
    %c1_i32 = arith.constant 1 : i32
    %163 = arith.cmpi ne, %arg1, %c1_i32 : i32
    %164 = arith.extui %163 : i1 to i32
    %c0_i32_73 = arith.constant 0 : i32
    %165 = arith.cmpi ne, %164, %c0_i32_73 : i32
    scf.if %165 {
      %c0_76 = arith.constant 0 : index
      %c0_77 = arith.constant 0 : index
      %c0_78 = arith.constant 0 : index
      %169 = vector.load %arg16[%c0_76, %c0_77, %c0_78] : memref<16x16x64xf32, #tpu.memory_space<vmem>>, vector<16x16x64xf32>
      tpu.vector_store %arg16[%c0_76, %c0_77, %c0_78], %162 {strides = array<i32>} : memref<16x16x64xf32, #tpu.memory_space<vmem>>, vector<16x16x64xf32>,
    } else {
    }
    %c1_i32_74 = arith.constant 1 : i32
    %166 = arith.cmpi eq, %arg1, %c1_i32_74 : i32
    %167 = arith.extui %166 : i1 to i32
    %c0_i32_75 = arith.constant 0 : i32
    %168 = arith.cmpi ne, %167, %c0_i32_75 : i32
    scf.if %168 {
      %c0_76 = arith.constant 0 : index
      %c0_77 = arith.constant 0 : index
      %c0_78 = arith.constant 0 : index
      %c0_79 = arith.constant 0 : index
      %169 = vector.load %arg2[%c0_76, %c0_77, %c0_78, %c0_79] : memref<1x16x16x64xf32, #tpu.memory_space<vmem>>, vector<1x16x16x64xf32>
      %170 = vector.shape_cast %169 : vector<1x16x16x64xf32> to vector<16x16x64xf32>
      %171 = arith.addf %162, %170 : vector<16x16x64xf32>
      %c0_80 = arith.constant 0 : index
      %c0_81 = arith.constant 0 : index
      %c0_82 = arith.constant 0 : index
      %c0_83 = arith.constant 0 : index
      %172 = vector.load %arg15[%c0_80, %c0_81, %c0_82, %c0_83] : memref<1x16x16x64xf32, #tpu.memory_space<vmem>>, vector<1x16x16x64xf32>
      %173 = vector.shape_cast %172 : vector<1x16x16x64xf32> to vector<16x16x64xf32>
      %174 = vector.shape_cast %171 : vector<16x16x64xf32> to vector<1x16x16x64xf32>
      tpu.vector_store %arg15[%c0_80, %c0_81, %c0_82, %c0_83], %174 {strides = array<i32>} : memref<1x16x16x64xf32, #tpu.memory_space<vmem>>, vector<1x16x16x64xf32>,
    } else {
    }
    return
  }
  func.func @transform_0(%arg0: i32, %arg1: i32) -> (i32, i32, i32, i32) {
    %c0_i32 = arith.constant 0 : i32
    %c0_i32_0 = arith.constant 0 : i32
    %c0_i32_1 = arith.constant 0 : i32
    %c0_i32_2 = arith.constant 0 : i32
    return %arg0, %c0_i32, %c0_i32_0, %c0_i32_1 : i32, i32, i32, i32
  }
  func.func @transform_1(%arg0: i32, %arg1: i32) -> (i32, i32, i32) {
    %c0_i32 = arith.constant 0 : i32
    %c0_i32_0 = arith.constant 0 : i32
    %c0_i32_1 = arith.constant 0 : i32
    %c0_i32_2 = arith.constant 0 : i32
    return %c0_i32, %c0_i32_0, %c0_i32_1 : i32, i32, i32
  }
  func.func @transform_2(%arg0: i32, %arg1: i32) -> (i32, i32, i32, i32) {
    %c0_i32 = arith.constant 0 : i32
    %c0_i32_0 = arith.constant 0 : i32
    %c0_i32_1 = arith.constant 0 : i32
    %c0_i32_2 = arith.constant 0 : i32
    %c0_i32_3 = arith.constant 0 : i32
    return %c0_i32, %c0_i32_0, %c0_i32_1, %c0_i32_2 : i32, i32, i32, i32
  }
  func.func @transform_3(%arg0: i32, %arg1: i32) -> (i32, i32, i32) {
    %c0_i32 = arith.constant 0 : i32
    %c0_i32_0 = arith.constant 0 : i32
    %c0_i32_1 = arith.constant 0 : i32
    %c0_i32_2 = arith.constant 0 : i32
    return %c0_i32, %c0_i32_0, %c0_i32_1 : i32, i32, i32
  }
  func.func @transform_4(%arg0: i32, %arg1: i32) -> (i32, i32, i32) {
    %c0_i32 = arith.constant 0 : i32
    %c0_i32_0 = arith.constant 0 : i32
    %c0_i32_1 = arith.constant 0 : i32
    %c0_i32_2 = arith.constant 0 : i32
    return %c0_i32, %c0_i32_0, %c0_i32_1 : i32, i32, i32
  }
  func.func @transform_5(%arg0: i32, %arg1: i32) -> (i32, i32, i32) {
    %c0_i32 = arith.constant 0 : i32
    %c0_i32_0 = arith.constant 0 : i32
    %c0_i32_1 = arith.constant 0 : i32
    %c0_i32_2 = arith.constant 0 : i32
    return %c0_i32, %c0_i32_0, %c0_i32_1 : i32, i32, i32
  }
  func.func @transform_6(%arg0: i32, %arg1: i32) -> (i32, i32, i32) {
    %c0_i32 = arith.constant 0 : i32
    %c0_i32_0 = arith.constant 0 : i32
    %c0_i32_1 = arith.constant 0 : i32
    %c0_i32_2 = arith.constant 0 : i32
    return %c0_i32, %c0_i32_0, %c0_i32_1 : i32, i32, i32
  }
  func.func @transform_7(%arg0: i32, %arg1: i32) -> (i32, i32, i32) {
    %c0_i32 = arith.constant 0 : i32
    %c0_i32_0 = arith.constant 0 : i32
    %c0_i32_1 = arith.constant 0 : i32
    %c0_i32_2 = arith.constant 0 : i32
    return %c0_i32, %c0_i32_0, %c0_i32_1 : i32, i32, i32
  }
  func.func @transform_8(%arg0: i32, %arg1: i32) -> (i32, i32, i32) {
    %c0_i32 = arith.constant 0 : i32
    %c0_i32_0 = arith.constant 0 : i32
    %c0_i32_1 = arith.constant 0 : i32
    %c0_i32_2 = arith.constant 0 : i32
    return %c0_i32, %c0_i32_0, %c0_i32_1 : i32, i32, i32
  }
  func.func @transform_9(%arg0: i32, %arg1: i32) -> (i32, i32, i32) {
    %c0_i32 = arith.constant 0 : i32
    %c0_i32_0 = arith.constant 0 : i32
    %c0_i32_1 = arith.constant 0 : i32
    %c0_i32_2 = arith.constant 0 : i32
    return %c0_i32, %c0_i32_0, %c0_i32_1 : i32, i32, i32
  }
  func.func @transform_10(%arg0: i32, %arg1: i32) -> (i32, i32, i32) {
    %c0_i32 = arith.constant 0 : i32
    %c0_i32_0 = arith.constant 0 : i32
    %c0_i32_1 = arith.constant 0 : i32
    %c0_i32_2 = arith.constant 0 : i32
    return %c0_i32, %c0_i32_0, %c0_i32_1 : i32, i32, i32
  }
  func.func @transform_11(%arg0: i32, %arg1: i32) -> (i32, i32, i32) {
    %c0_i32 = arith.constant 0 : i32
    %c0_i32_0 = arith.constant 0 : i32
    %c0_i32_1 = arith.constant 0 : i32
    %c0_i32_2 = arith.constant 0 : i32
    return %c0_i32, %c0_i32_0, %c0_i32_1 : i32, i32, i32
  }
  func.func @transform_12(%arg0: i32, %arg1: i32) -> (i32, i32, i32) {
    %c0_i32 = arith.constant 0 : i32
    %c0_i32_0 = arith.constant 0 : i32
    %c0_i32_1 = arith.constant 0 : i32
    %c0_i32_2 = arith.constant 0 : i32
    return %c0_i32, %c0_i32_0, %c0_i32_1 : i32, i32, i32
  }
  func.func @transform_13(%arg0: i32, %arg1: i32) -> (i32, i32, i32, i32) {
    %c0_i32 = arith.constant 0 : i32
    %c0_i32_0 = arith.constant 0 : i32
    %c0_i32_1 = arith.constant 0 : i32
    %c0_i32_2 = arith.constant 0 : i32
    return %arg0, %c0_i32, %c0_i32_0, %c0_i32_1 : i32, i32, i32, i32
  }
}

</mosaic_0001>

<bundles_post_ra>
// kernel: mul.30
= control target key start
LH: loop header
LB: loop body
LE: loop exit
PB: predicated region body
PF: predicated region fallthrough
CT: control target
= control target key end

     0   :  { %3 = vsyncpa [#allocation1], 0  ;;  %s46_s9 = smov [#allocation0]   ;;  %s80_s0 = inlined_call_operand.hbm [shape: f32[2,64], index: 0, kind: input, shape index: {}]   ;;  %s81_s1 = inlined_call_operand.vmem [shape: f32[2,64], index: 1, kind: input, shape index: {}]   ;;  %s82_s2 = inlined_call_operand.vmem [shape: f32[2,64], index: 2, kind: output, shape index: {}]  }
   0x1   :  { %s8_s10 = sshll.u32 %s46_s9, 4  ;;  %s22_s13 = scalar_lea.hbm %s80_s0, 32  ;;  %s9_s10 = int_to_ptr.vmem [resolvable:$true] %s8_s10 }
   0x2   :  { %p23_p0 = scmp.ne.s32.totalorder %s80_s0, %s22_s13  ;;  %p26_p1 = scmp.lt.u32.totalorder %s22_s13, %s80_s0 }
   0x4   :  { %p28_p2 = pnand %p26_p1, %p23_p0 }
   0x6   :  { %31 = shalt.err (!%p28_p2)
}
   0x7   :  { %s32_s18 = scalar_lea.vmem %s9_s10, 32  ;;  %p37_p4 = scmp.lt.s32.totalorder %s9_s10, %s9_s10 }
   0x8   :  { %p33_p3 = scmp.ne.s32.totalorder %s9_s10, %s32_s18  ;;  %p38_p5 = scmp.lt.s32.totalorder %s32_s18, %s32_s18 }
   0xa   :  { %p39_p6 = por %p38_p5, %p37_p4 }
   0xc   :  { %p40_p7 = pnand %p39_p6, %p33_p3 }
   0xe   :  { %43 = shalt.err (!%p40_p7)
}
   0xf   :  { %11 = dma.hbm_to_vmem [thread:$0]  %s80_s0, 32, %s9_s10, [#allocation1]  }
  0x10   :  { %44 = dma.done.wait [#allocation1], 32  }
  0x11   :  { %45 = vsyncadd [#allocation1], 4294967264  ;;  %v13_v0 = vld [vmem:[#allocation0] sm:$0x3] }
  0x12   :  { %v14_v1 = vld [vmem:[%s81_s1] sm:$0x3] }
  0x13   :  { %v17_v2 = vmul.f32 %v14_v1, %v13_v0 }
  0x15   :  { %19 = vst [vmem:[%s82_s2] sm:$0x3] %v17_v2 }
  0x16   :  { %20 = vsyncpa [#allocation1], 1 }

// kernel: blocks_forward.1
= control target key start
LH: loop header
LB: loop body
LE: loop exit
PB: predicated region body
PF: predicated region fallthrough
CT: control target
= control target key end

     0   :  { %s5032_s25 = smov 0   ;;  %s5034_s26 = smov 0   ;;  %s7593_s0 = inlined_call_operand.vmem [shape: f32[2,16,16,64], index: 0, kind: input, shape index: {}]   ;;  %s7594_s1 = inlined_call_operand.vmem [shape: bf16[2,64,128], index: 1, kind: input, shape index: {}]   ;;  %s7595_s2 = inlined_call_operand.vmem [shape: f32[2,3,3,128], index: 2, kind: input, shape index: {}]   ;;  %s7596_s3 = inlined_call_operand.vmem [shape: bf16[2,64,64], index: 3, kind: input, shape index: {}]   ;;  %s7597_s4 = inlined_call_operand.vmem [shape: bf16[2,64,64], index: 4, kind: input, shape index: {}]   ;;  %s7598_s5 = inlined_call_operand.vmem [shape: bf16[2,64,128], index: 5, kind: input, shape index: {}]   ;;  %s7599_s6 = inlined_call_operand.vmem [shape: bf16[2,64,64], index: 6, kind: input, shape index: {}]   ;;  %s7600_s7 = inlined_call_operand.vmem [shape: f32[2,1,128], index: 7, kind: input, shape index: {}]   ;;  %s7601_s8 = inlined_call_operand.vmem [shape: f32[2,1,128], index: 8, kind: input, shape index: {}]   ;;  %s7602_s9 = inlined_call_operand.vmem [shape: f32[2,1,64], index: 9, kind: input, shape index: {}]   ;;  %s7603_s10 = inlined_call_operand.vmem [shape: f32[2,1,64], index: 10, kind: input, shape index: {}]   ;;  %s7604_s11 = inlined_call_operand.vmem [shape: f32[2,1,128], index: 11, kind: input, shape index: {}]   ;;  %s7605_s12 = inlined_call_operand.vmem [shape: f32[2,1,64], index: 12, kind: input, shape index: {}]   ;;  %s7606_s13 = inlined_call_operand.vmem [shape: f32[2,16,16,64], index: 13, kind: output, shape index: {}]  }
   0x1   :  { %s5036_s27 = smov 0   ;;  %s5038_s28 = smov 0  }
   0x2   :  { %s5040_s29 = smov 0  }
   0x3 LB: > { %s32_s30 = sadd.s32 1, %s4947_s27  ;;  %s35_s14 = sadd.s32 1, %s4951_s28  ;;  %s4955_s29 = sphi %s5040_s29, %s23_s29   ;;  %s4951_s28 = sphi %s5038_s28, %s7712_s28   ;;  %s4947_s27 = sphi %s5036_s27, %s7711_s27   ;;  %s4943_s26 = sphi %s5034_s26, %s7710_s26   ;;  %s4939_s25 = sphi %s5032_s25, %s7709_s25  }
   0x4   : > { %p33_p0 = scmp.ge.s32.totalorder %s32_s30, 2  ;;  %p4254_p1 = scmp.ge.s32.totalorder %s4955_s29, 1 }
   0x5   : > { %p399_p2 = scmp.lt.s32.totalorder %s4955_s29, 5 }
   0x6   : > { %s7714_s30 = smov (%p33_p0, %s32_s30), 0  ;;  %s7716_s14 = smov (!%p33_p0, %s35_s14), %s4951_s28 }
   0x7   : > { %p400_p3 = pnand %p4254_p1, %p399_p2  ;;  %p37_p4 = scmp.ge.s32.totalorder %s7716_s14, 2 }
   0x9   : > { %s7718_s14 = smov (%p37_p4, %s7716_s14), 0  ;;  %403 = sbr.rel (%p400_p3) target bundleno = 2503 (0x9c7), region = 72 }
  0x10   : > { %p443_p5 = scmp.lt.s32.totalorder %s4943_s26, 1  ;;  %p4259_p6 = scmp.ne.s32.totalorder %s4939_s25, 0 }
  0x11   : > { %vm490_vm0 = vcmask (!%p4259_p6), 523264   ;;  %v4957_v6 = vmov (!%p4259_p6), 0.0  }
  0x12   : > { %s7720_s26 = smov (!%p443_p5, %s4943_s26), 1  ;;  %457 = sbr.rel (%p4259_p6) target bundleno = 63 (0x3f), region = 76 }
  0x13   : > { %s4360_s15 = sshll.u32 %s7720_s26, 8  ;;  %523 = vst [vmem:[#allocation3] sm:$0xff] (!%p4259_p6), %v4957_v6  ;;  %524 = vst [vmem:[#allocation3 + $0x8] sm:$0xff] (!%p4259_p6), %v4957_v6 }
  0x14   : > { %s5067_s18 = scalar_lea.vmem %s7593_s0, %s4360_s15  ;;  %s5072_s21 = scalar_lea.vmem %s7606_s13, %s4360_s15  ;;  %525 = vst [vmem:[#allocation3 + $0x10] sm:$0x3] (!%p4259_p6), %v4957_v6  ;;  %526 = vst [vmem:[#allocation3 + $0x18] sm:$0xff] (!%p4259_p6), %v4957_v6 }
  0x15   : > { %v458_v0 = vld [vmem:[%s5067_s18] sm:$0xff] (!%p4259_p6)  ;;  %v459_v1 = vld [vmem:[%s5067_s18 + $0x8] sm:$0xff] (!%p4259_p6)  ;;  %v460_v2 = vld [vmem:[%s5067_s18 + $0x10] sm:$0xff] (!%p4259_p6)  ;;  %527 = vst [vmem:[#allocation3 + $0x20] sm:$0xff] (!%p4259_p6), %v4957_v6 }
  0x16   : > { %491 = vst.msk [vmem:[#allocation2] sm:$0xff] (!%p4259_p6), %vm490_vm0, %v458_v0  ;;  %492 = vst.msk [vmem:[#allocation2 + $0x8] sm:$0xff] (!%p4259_p6), %vm490_vm0, %v459_v1  ;;  %v461_v3 = vld [vmem:[%s5067_s18 + $0x18] sm:$0xff] (!%p4259_p6)  ;;  %v462_v4 = vld [vmem:[%s5067_s18 + $0x20] sm:$0xff] (!%p4259_p6) }
  0x17   : > { %493 = vst.msk [vmem:[#allocation2 + $0x10] sm:$0xff] (!%p4259_p6), %vm490_vm0, %v460_v2  ;;  %v463_v5 = vld [vmem:[%s5067_s18 + $0x28] sm:$0xff] (!%p4259_p6)  ;;  %528 = vst [vmem:[#allocation3 + $0x28] sm:$0x3] (!%p4259_p6), %v4957_v6  ;;  %v464_v7 = vld [vmem:[%s5067_s18 + $0x30] sm:$0xff] (!%p4259_p6) }
  0x18   : > { %529 = vst [vmem:[#allocation3 + $0x30] sm:$0xff] (!%p4259_p6), %v4957_v6  ;;  %530 = vst [vmem:[#allocation3 + $0x38] sm:$0xff] (!%p4259_p6), %v4957_v6  ;;  %v465_v8 = vld [vmem:[%s5067_s18 + $0x38] sm:$0xff] (!%p4259_p6)  ;;  %v466_v9 = vld [vmem:[%s5067_s18 + $0x40] sm:$0xff] (!%p4259_p6) }
  0x19   : > { %531 = vst [vmem:[#allocation3 + $0x40] sm:$0x3] %v4957_v6  ;;  %532 = vst [vmem:[#allocation3 + $0x48] sm:$0xff] %v4957_v6  ;;  %v467_v10 = vld [vmem:[%s5067_s18 + $0x48] sm:$0xff]  ;;  %v468_v11 = vld [vmem:[%s5067_s18 + $0x50] sm:$0xff] }
  0x1a   : > { %533 = vst [vmem:[#allocation3 + $0x50] sm:$0xff] %v4957_v6  ;;  %534 = vst [vmem:[#allocation3 + $0x58] sm:$0x3] %v4957_v6  ;;  %v469_v12 = vld [vmem:[%s5067_s18 + $0x58] sm:$0xff]  ;;  %v470_v13 = vld [vmem:[%s5067_s18 + $0x60] sm:$0xff] }
  0x1b   : > { %535 = vst [vmem:[#allocation3 + $0x60] sm:$0xff] %v4957_v6  ;;  %536 = vst [vmem:[#allocation3 + $0x68] sm:$0xff] %v4957_v6  ;;  %v471_v14 = vld [vmem:[%s5067_s18 + $0x68] sm:$0xff]  ;;  %v472_v15 = vld [vmem:[%s5067_s18 + $0x70] sm:$0xff] }
  0x1c   : > { %537 = vst [vmem:[#allocation3 + $0x70] sm:$0x3] %v4957_v6  ;;  %538 = vst [vmem:[#allocation3 + $0x78] sm:$0xff] %v4957_v6  ;;  %v473_v16 = vld [vmem:[%s5067_s18 + $0x78] sm:$0xff]  ;;  %v474_v17 = vld [vmem:[%s5067_s18 + $0x80] sm:$0xff] }
  0x1d   : > { %539 = vst [vmem:[#allocation3 + $0x80] sm:$0xff] %v4957_v6  ;;  %540 = vst [vmem:[#allocation3 + $0x88] sm:$0x3] %v4957_v6  ;;  %v475_v18 = vld [vmem:[%s5067_s18 + $0x88] sm:$0xff]  ;;  %v476_v19 = vld [vmem:[%s5067_s18 + $0x90] sm:$0xff] }
  0x1e   : > { %541 = vst [vmem:[#allocation3 + $0x90] sm:$0xff] %v4957_v6  ;;  %542 = vst [vmem:[#allocation3 + $0x98] sm:$0xff] %v4957_v6  ;;  %v477_v20 = vld [vmem:[%s5067_s18 + $0x98] sm:$0xff]  ;;  %v478_v21 = vld [vmem:[%s5067_s18 + $0xa0] sm:$0xff] }
  0x1f   : > { %543 = vst [vmem:[#allocation3 + $0xa0] sm:$0x3] %v4957_v6  ;;  %544 = vst [vmem:[#allocation3 + $0xa8] sm:$0xff] %v4957_v6  ;;  %v479_v22 = vld [vmem:[%s5067_s18 + $0xa8] sm:$0xff]  ;;  %v480_v23 = vld [vmem:[%s5067_s18 + $0xb0] sm:$0xff] }
  0x20   : > { %545 = vst [vmem:[#allocation3 + $0xb0] sm:$0xff] %v4957_v6  ;;  %546 = vst [vmem:[#allocation3 + $0xb8] sm:$0x3] %v4957_v6  ;;  %v481_v24 = vld [vmem:[%s5067_s18 + $0xb8] sm:$0xff]  ;;  %v482_v25 = vld [vmem:[%s5067_s18 + $0xc0] sm:$0xff] }
  0x21   : > { %547 = vst [vmem:[#allocation3 + $0xc0] sm:$0xff] %v4957_v6  ;;  %548 = vst [vmem:[#allocation3 + $0xc8] sm:$0xff] %v4957_v6  ;;  %v483_v26 = vld [vmem:[%s5067_s18 + $0xc8] sm:$0xff]  ;;  %v484_v27 = vld [vmem:[%s5067_s18 + $0xd0] sm:$0xff] }
  0x22   : > { %549 = vst [vmem:[#allocation3 + $0xd0] sm:$0x3] %v4957_v6  ;;  %550 = vst [vmem:[#allocation3 + $0xd8] sm:$0xff] %v4957_v6  ;;  %v485_v28 = vld [vmem:[%s5067_s18 + $0xd8] sm:$0xff]  ;;  %v486_v29 = vld [vmem:[%s5067_s18 + $0xe0] sm:$0xff] }
  0x23   : > { %551 = vst [vmem:[#allocation3 + $0xe0] sm:$0xff] %v4957_v6  ;;  %552 = vst [vmem:[#allocation3 + $0xe8] sm:$0x3] %v4957_v6  ;;  %v487_v30 = vld [vmem:[%s5067_s18 + $0xe8] sm:$0xff]  ;;  %v488_v31 = vld [vmem:[%s5067_s18 + $0xf0] sm:$0xff] }
  0x24   : > { %553 = vst [vmem:[#allocation3 + $0xf0] sm:$0xff] %v4957_v6  ;;  %554 = vst [vmem:[#allocation3 + $0xf8] sm:$0xff] %v4957_v6  ;;  %v489_v32 = vld [vmem:[%s5067_s18 + $0xf8] sm:$0xff] }
  0x25   : > { %555 = vst [vmem:[#allocation3 + $0x100] sm:$0x3] %v4957_v6  ;;  %556 = vst [vmem:[#allocation3 + $0x108] sm:$0xff] %v4957_v6 }
  0x26   : > { %557 = vst [vmem:[#allocation3 + $0x110] sm:$0xff] %v4957_v6  ;;  %558 = vst [vmem:[#allocation3 + $0x118] sm:$0x3] %v4957_v6 }
  0x27   : > { %559 = vst [vmem:[#allocation3 + $0x120] sm:$0xff] %v4957_v6  ;;  %560 = vst [vmem:[#allocation3 + $0x128] sm:$0xff] %v4957_v6 }
  0x28   : > { %561 = vst [vmem:[#allocation3 + $0x130] sm:$0x3] %v4957_v6  ;;  %562 = vst [vmem:[#allocation3 + $0x138] sm:$0xff] %v4957_v6 }
  0x29   : > { %563 = vst [vmem:[#allocation3 + $0x140] sm:$0xff] %v4957_v6  ;;  %564 = vst [vmem:[#allocation3 + $0x148] sm:$0x3] %v4957_v6 }
  0x2a   : > { %565 = vst [vmem:[#allocation3 + $0x150] sm:$0xff] %v4957_v6  ;;  %566 = vst [vmem:[#allocation3 + $0x158] sm:$0xff] %v4957_v6 }
  0x2b   : > { %567 = vst [vmem:[#allocation3 + $0x160] sm:$0x3] %v4957_v6  ;;  %568 = vst [vmem:[#allocation3 + $0x168] sm:$0xff] %v4957_v6 }
  0x2c   : > { %569 = vst [vmem:[#allocation3 + $0x170] sm:$0xff] %v4957_v6  ;;  %570 = vst [vmem:[#allocation3 + $0x178] sm:$0x3] %v4957_v6 }
  0x2d   : > { %571 = vst [vmem:[#allocation3 + $0x180] sm:$0xff] %v4957_v6  ;;  %572 = vst [vmem:[#allocation3 + $0x188] sm:$0xff] %v4957_v6 }
  0x2e   : > { %573 = vst [vmem:[#allocation3 + $0x190] sm:$0x3] %v4957_v6  ;;  %574 = vst [vmem:[#allocation3 + $0x198] sm:$0xff] %v4957_v6 }
  0x2f   : > { %575 = vst [vmem:[#allocation3 + $0x1a0] sm:$0xff] %v4957_v6  ;;  %576 = vst [vmem:[#allocation3 + $0x1a8] sm:$0x3] %v4957_v6 }
  0x30   : > { %494 = vst.msk [vmem:[#allocation2 + $0x18] sm:$0xff] %vm490_vm0, %v461_v3  ;;  %495 = vst.msk [vmem:[#allocation2 + $0x20] sm:$0xff] %vm490_vm0, %v462_v4 }
  0x31   : > { %496 = vst.msk [vmem:[#allocation2 + $0x28] sm:$0xff] %vm490_vm0, %v463_v5  ;;  %497 = vst.msk [vmem:[#allocation2 + $0x30] sm:$0xff] %vm490_vm0, %v464_v7 }
  0x32   : > { %498 = vst.msk [vmem:[#allocation2 + $0x38] sm:$0xff] %vm490_vm0, %v465_v8  ;;  %499 = vst.msk [vmem:[#allocation2 + $0x40] sm:$0xff] %vm490_vm0, %v466_v9 }
  0x33   : > { %500 = vst.msk [vmem:[#allocation2 + $0x48] sm:$0xff] %vm490_vm0, %v467_v10  ;;  %501 = vst.msk [vmem:[#allocation2 + $0x50] sm:$0xff] %vm490_vm0, %v468_v11 }
  0x34   : > { %502 = vst.msk [vmem:[#allocation2 + $0x58] sm:$0xff] %vm490_vm0, %v469_v12  ;;  %503 = vst.msk [vmem:[#allocation2 + $0x60] sm:$0xff] %vm490_vm0, %v470_v13 }
  0x35   : > { %504 = vst.msk [vmem:[#allocation2 + $0x68] sm:$0xff] %vm490_vm0, %v471_v14  ;;  %505 = vst.msk [vmem:[#allocation2 + $0x70] sm:$0xff] %vm490_vm0, %v472_v15 }
  0x36   : > { %506 = vst.msk [vmem:[#allocation2 + $0x78] sm:$0xff] %vm490_vm0, %v473_v16  ;;  %507 = vst.msk [vmem:[#allocation2 + $0x80] sm:$0xff] %vm490_vm0, %v474_v17 }
  0x37   : > { %508 = vst.msk [vmem:[#allocation2 + $0x88] sm:$0xff] %vm490_vm0, %v475_v18  ;;  %509 = vst.msk [vmem:[#allocation2 + $0x90] sm:$0xff] %vm490_vm0, %v476_v19 }
  0x38   : > { %510 = vst.msk [vmem:[#allocation2 + $0x98] sm:$0xff] %vm490_vm0, %v477_v20  ;;  %511 = vst.msk [vmem:[#allocation2 + $0xa0] sm:$0xff] %vm490_vm0, %v478_v21 }
  0x39   : > { %512 = vst.msk [vmem:[#allocation2 + $0xa8] sm:$0xff] %vm490_vm0, %v479_v22  ;;  %513 = vst.msk [vmem:[#allocation2 + $0xb0] sm:$0xff] %vm490_vm0, %v480_v23 }
  0x3a   : > { %514 = vst.msk [vmem:[#allocation2 + $0xb8] sm:$0xff] %vm490_vm0, %v481_v24  ;;  %515 = vst.msk [vmem:[#allocation2 + $0xc0] sm:$0xff] %vm490_vm0, %v482_v25 }
  0x3b   : > { %516 = vst.msk [vmem:[#allocation2 + $0xc8] sm:$0xff] %vm490_vm0, %v483_v26  ;;  %517 = vst.msk [vmem:[#allocation2 + $0xd0] sm:$0xff] %vm490_vm0, %v484_v27 }
  0x3c   : > { %518 = vst.msk [vmem:[#allocation2 + $0xd8] sm:$0xff] %vm490_vm0, %v485_v28  ;;  %519 = vst.msk [vmem:[#allocation2 + $0xe0] sm:$0xff] %vm490_vm0, %v486_v29 }
  0x3d   : > { %520 = vst.msk [vmem:[#allocation2 + $0xe8] sm:$0xff] %vm490_vm0, %v487_v30  ;;  %521 = vst.msk [vmem:[#allocation2 + $0xf0] sm:$0xff] %vm490_vm0, %v488_v31 }
  0x3e   : > { %522 = vst.msk [vmem:[#allocation2 + $0xf8] sm:$0xff] %vm490_vm0, %v489_v32 }
  0x3f PF: > { %vm609_vm1 = vcmask 523264   ;;  %v5149_v38 = vld [vmem:[#allocation2 + $0x18] sm:$0xff]  ;;  %v5155_v41 = vld [vmem:[#allocation2 + $0x20] sm:$0xff]  ;;  %v5157_v42 = vld [vmem:[#allocation2 + $0x28] sm:$0xff]  ;;  %s5350_s22 = sshll.u32 %s4939_s25, 5  ;;  %s1295_s15 = smul.u32 12, %s4939_s25 }
  0x40   : > { %v619_v40 = vsel %vm609_vm1, %v5149_v38, 0.0  ;;  %v622_v43 = vsel %vm609_vm1, %v5155_v41, 0.0  ;;  %v625_v44 = vsel %vm609_vm1, %v5157_v42, 0.0  ;;  %v5163_v45 = vld [vmem:[#allocation2 + $0x30] sm:$0xff]  ;;  %v5165_v46 = vld [vmem:[#allocation2 + $0x38] sm:$0xff]  ;;  %v5171_v49 = vld [vmem:[#allocation2 + $0x40] sm:$0xff]  ;;  %s5363_s26 = scalar_lea.vmem %s7594_s1, %s5350_s22  ;;  %s1038_s24 = scalar_lea.vmem %s7600_s7, %s4939_s25 }
  0x41   : > { %v628_v47 = vsel %vm609_vm1, %v5163_v45, 0.0  ;;  %v631_v48 = vsel %vm609_vm1, %v5165_v46, 0.0  ;;  %v5173_v50 = vld [vmem:[#allocation2 + $0x48] sm:$0xff]  ;;  %v634_v51 = vsel %vm609_vm1, %v5171_v49, 0.0  ;;  %v5179_v53 = vld [vmem:[#allocation2 + $0x50] sm:$0xff]  ;;  %v5181_v54 = vld [vmem:[#allocation2 + $0x58] sm:$0xff]  ;;  %s1296_s19 = scalar_lea.vmem %s7595_s2, %s1295_s15  ;;  %s5650_s16 = scalar_lea.vmem %s7601_s8, %s4939_s25 }
  0x42   : > { %v637_v52 = vsel %vm609_vm1, %v5173_v50, 0.0  ;;  %v640_v55 = vsel %vm609_vm1, %v5179_v53, 0.0  ;;  %v643_v56 = vsel %vm609_vm1, %v5181_v54, 0.0  ;;  %v5187_v57 = vld [vmem:[#allocation2 + $0x60] sm:$0xff]  ;;  %v5189_v58 = vld [vmem:[#allocation2 + $0x68] sm:$0xff]  ;;  %v5195_v61 = vld [vmem:[#allocation2 + $0x70] sm:$0xff]  ;;  %s6408_s23 = scalar_lea.vmem %s7596_s3, %s5350_s22  ;;  %s2590_s15 = scalar_lea.vmem %s7597_s4, %s5350_s22 }
  0x43   : > { %v5139_v33 = vld [vmem:[#allocation2] sm:$0xff]  ;;  %v5143_v35 = vld [vmem:[#allocation2 + $0x8] sm:$0xff]  ;;  %v646_v59 = vsel %vm609_vm1, %v5187_v57, 0.0  ;;  %v649_v60 = vsel %vm609_vm1, %v5189_v58, 0.0  ;;  %v5197_v62 = vld [vmem:[#allocation2 + $0x78] sm:$0xff]  ;;  %v652_v63 = vsel %vm609_vm1, %v5195_v61, 0.0  ;;  %s2484_s20 = scalar_lea.vmem %s7602_s9, %s4939_s25 }
  0x44   : > { %v5141_v34 = vld [vmem:[#allocation2 + $0x10] sm:$0xff]  ;;  %v610_v36 = vsel %vm609_vm1, %v5139_v33, 0.0  ;;  %v613_v39 = vsel %vm609_vm1, %v5143_v35, 0.0  ;;  %v655_v0 = vsel %vm609_vm1, %v5197_v62, 0.0  ;;  %v5203_v1 = vld [vmem:[#allocation2 + $0x80] sm:$0xff]  ;;  %v5205_v2 = vld [vmem:[#allocation2 + $0x88] sm:$0xff] }
  0x45   : > { %v616_v37 = vsel %vm609_vm1, %v5141_v34, 0.0  ;;  %611 = vadd.xlane.f32.xlu0 %v610_v36  ;;  %v658_v3 = vsel %vm609_vm1, %v5203_v1, 0.0  ;;  %v661_v4 = vsel %vm609_vm1, %v5205_v2, 0.0  ;;  %v5211_v5 = vld [vmem:[#allocation2 + $0x90] sm:$0xff]  ;;  %v5213_v6 = vld [vmem:[#allocation2 + $0x98] sm:$0xff]  ;;  %v5219_v9 = vld [vmem:[#allocation2 + $0xa0] sm:$0xff] }
  0x46   : > { %617 = vadd.xlane.f32.xlu1 %v616_v37  ;;  %v664_v7 = vsel %vm609_vm1, %v5211_v5, 0.0  ;;  %v667_v8 = vsel %vm609_vm1, %v5213_v6, 0.0  ;;  %v5221_v10 = vld [vmem:[#allocation2 + $0xa8] sm:$0xff]  ;;  %v670_v11 = vsel %vm609_vm1, %v5219_v9, 0.0  ;;  %v5227_v13 = vld [vmem:[#allocation2 + $0xb0] sm:$0xff]  ;;  %v5229_v14 = vld [vmem:[#allocation2 + $0xb8] sm:$0xff] }
  0x47   : > { %v673_v12 = vsel %vm609_vm1, %v5221_v10, 0.0  ;;  %v676_v15 = vsel %vm609_vm1, %v5227_v13, 0.0  ;;  %v679_v16 = vsel %vm609_vm1, %v5229_v14, 0.0  ;;  %v5235_v17 = vld [vmem:[#allocation2 + $0xc0] sm:$0xff]  ;;  %v5237_v18 = vld [vmem:[#allocation2 + $0xc8] sm:$0xff]  ;;  %v5243_v21 = vld [vmem:[#allocation2 + $0xd0] sm:$0xff] }
  0x48   : > { %v682_v19 = vsel %vm609_vm1, %v5235_v17, 0.0  ;;  %v685_v20 = vsel %vm609_vm1, %v5237_v18, 0.0  ;;  %v5245_v22 = vld [vmem:[#allocation2 + $0xd8] sm:$0xff]  ;;  %v688_v23 = vsel %vm609_vm1, %v5243_v21, 0.0  ;;  %v5251_v25 = vld [vmem:[#allocation2 + $0xe0] sm:$0xff]  ;;  %v5253_v26 = vld [vmem:[#allocation2 + $0xe8] sm:$0xff] }
  0x49   : > { %614 = vadd.xlane.f32.xlu0 %v613_v39  ;;  %v691_v24 = vsel %vm609_vm1, %v5245_v22, 0.0  ;;  %v694_v27 = vsel %vm609_vm1, %v5251_v25, 0.0  ;;  %v697_v28 = vsel %vm609_vm1, %v5253_v26, 0.0  ;;  %v5259_v29 = vld [vmem:[#allocation2 + $0xf0] sm:$0xff]  ;;  %v5261_v30 = vld [vmem:[#allocation2 + $0xf8] sm:$0xff]  ;;  %s4958_s17 = smov 64  }
  0x4a   : > { %620 = vadd.xlane.f32.xlu1 %v619_v40  ;;  %v700_v31 = vsel %vm609_vm1, %v5259_v29, 0.0  ;;  %v703_v32 = vsel %vm609_vm1, %v5261_v30, 0.0  ;;  %vm4961_vm2 = vmmov 0   ;;  %p4356_p7 = scmp.eq.s32.totalorder %s4939_s25, 1 }
  0x4d   : > { %623 = vadd.xlane.f32.xlu0 %v622_v43 }
  0x4e   : > { %626 = vadd.xlane.f32.xlu1 %v625_v44 }
  0x51   : > { %629 = vadd.xlane.f32.xlu0 %v628_v47 }
  0x52   : > { %632 = vadd.xlane.f32.xlu1 %v631_v48 }
  0x55   : > { %635 = vadd.xlane.f32.xlu0 %v634_v51 }
  0x56   : > { %638 = vadd.xlane.f32.xlu1 %v637_v52 }
  0x59   : > { %641 = vadd.xlane.f32.xlu0 %v640_v55 }
  0x5a   : > { %644 = vadd.xlane.f32.xlu1 %v643_v56 }
  0x5d   : > { %647 = vadd.xlane.f32.xlu0 %v646_v59 }
  0x5e   : > { %650 = vadd.xlane.f32.xlu1 %v649_v60 }
  0x61   : > { %653 = vadd.xlane.f32.xlu0 %v652_v63 }
  0x62   : > { %656 = vadd.xlane.f32.xlu1 %v655_v0 }
  0x65   : > { %659 = vadd.xlane.f32.xlu0 %v658_v3 }
  0x66   : > { %662 = vadd.xlane.f32.xlu1 %v661_v4 }
  0x69   : > { %665 = vadd.xlane.f32.xlu0 %v664_v7 }
  0x6a   : > { %668 = vadd.xlane.f32.xlu1 %v667_v8 }
  0x6d   : > { %671 = vadd.xlane.f32.xlu0 %v670_v11 }
  0x6e   : > { %674 = vadd.xlane.f32.xlu1 %v673_v12 }
  0x71   : > { %677 = vadd.xlane.f32.xlu0 %v676_v15 }
  0x72   : > { %680 = vadd.xlane.f32.xlu1 %v679_v16 }
  0x75   : > { %683 = vadd.xlane.f32.xlu0 %v682_v19 }
  0x76   : > { %686 = vadd.xlane.f32.xlu1 %v685_v20 }
  0x79   : > { %689 = vadd.xlane.f32.xlu0 %v688_v23 }
  0x7a   : > { %692 = vadd.xlane.f32.xlu1 %v691_v24 }
  0x7d   : > { %695 = vadd.xlane.f32.xlu0 %v694_v27 }
  0x7e   : > { %698 = vadd.xlane.f32.xlu1 %v697_v28 }
  0x81   : > { %701 = vadd.xlane.f32.xlu0 %v700_v31 }
  0x82   : > { %704 = vadd.xlane.f32.xlu1 %v703_v32 }
  0xd2   : > { %v612_v36 = vpop.xlane.xlu0 %611 }
  0xd3   : > { %v618_v37 = vpop.xlane.xlu1 %617  ;;  %v707_v39 = vmul.f32 0.015625, %v612_v36 }
  0xd4   : > { %v709_v40 = vmul.f32 0.015625, %v618_v37 }
  0xd5   : > { %v5268_v43 = vsub.f32 %v5139_v33, %v707_v39 }
  0xd6   : > { %v5271_v44 = vsub.f32 %v5141_v34, %v709_v40  ;;  %v615_v47 = vpop.xlane.xlu0 %614 }
  0xd7   : > { %v621_v48 = vpop.xlane.xlu1 %620  ;;  %v708_v51 = vmul.f32 0.015625, %v615_v47  ;;  %v771_v55 = vmul.f32 %v5268_v43, %v5268_v43 }
  0xd8   : > { %v710_v52 = vmul.f32 0.015625, %v621_v48  ;;  %v773_v56 = vmul.f32 %v5271_v44, %v5271_v44 }
  0xd9   : > { %v5278_v59 = vsub.f32 %v5143_v35, %v708_v51  ;;  %v803_v33 = vsel %vm609_vm1, %v771_v55, 0.0 }
  0xda   : > { %v5281_v60 = vsub.f32 %v5149_v38, %v710_v52  ;;  %804 = vadd.xlane.f32.xlu0 %v803_v33  ;;  %v624_v34 = vpop.xlane.xlu0 %623  ;;  %v809_v0 = vsel %vm609_vm1, %v773_v56, 0.0 }
  0xdb   : > { %v627_v63 = vpop.xlane.xlu1 %626  ;;  %v711_v3 = vmul.f32 0.015625, %v624_v34  ;;  %v772_v7 = vmul.f32 %v5278_v59, %v5278_v59 }
  0xdc   : > { %v712_v4 = vmul.f32 0.015625, %v627_v63  ;;  %v774_v8 = vmul.f32 %v5281_v60, %v5281_v60 }
  0xdd   : > { %v5290_v35 = vsub.f32 %v5155_v41, %v711_v3  ;;  %v806_v11 = vsel %vm609_vm1, %v772_v7, 0.0 }
  0xde   : > { %v5293_v38 = vsub.f32 %v5157_v42, %v712_v4  ;;  %810 = vadd.xlane.f32.xlu0 %v809_v0  ;;  %807 = vadd.xlane.f32.xlu1 %v806_v11  ;;  %v630_v12 = vpop.xlane.xlu0 %629  ;;  %v812_v16 = vsel %vm609_vm1, %v774_v8, 0.0 }
  0xdf   : > { %v633_v15 = vpop.xlane.xlu1 %632  ;;  %v713_v19 = vmul.f32 0.015625, %v630_v12  ;;  %v775_v23 = vmul.f32 %v5290_v35, %v5290_v35 }
  0xe0   : > { %v714_v20 = vmul.f32 0.015625, %v633_v15  ;;  %v776_v41 = vmul.f32 %v5293_v38, %v5293_v38 }
  0xe1   : > { %v5302_v24 = vsub.f32 %v5163_v45, %v713_v19  ;;  %v815_v27 = vsel %vm609_vm1, %v775_v23, 0.0 }
  0xe2   : > { %v5305_v42 = vsub.f32 %v5165_v46, %v714_v20  ;;  %813 = vadd.xlane.f32.xlu1 %v812_v16  ;;  %816 = vadd.xlane.f32.xlu0 %v815_v27  ;;  %v636_v28 = vpop.xlane.xlu0 %635  ;;  %v818_v32 = vsel %vm609_vm1, %v776_v41, 0.0 }
  0xe3   : > { %v639_v31 = vpop.xlane.xlu1 %638  ;;  %v715_v36 = vmul.f32 0.015625, %v636_v28  ;;  %v777_v39 = vmul.f32 %v5302_v24, %v5302_v24 }
  0xe4   : > { %v716_v37 = vmul.f32 0.015625, %v639_v31  ;;  %v778_v45 = vmul.f32 %v5305_v42, %v5305_v42 }
  0xe5   : > { %v5314_v40 = vsub.f32 %v5171_v49, %v715_v36  ;;  %v821_v47 = vsel %vm609_vm1, %v777_v39, 0.0 }
  0xe6   : > { %v5317_v46 = vsub.f32 %v5173_v50, %v716_v37  ;;  %819 = vadd.xlane.f32.xlu1 %v818_v32  ;;  %822 = vadd.xlane.f32.xlu0 %v821_v47  ;;  %v642_v48 = vpop.xlane.xlu0 %641  ;;  %v824_v52 = vsel %vm609_vm1, %v778_v45, 0.0 }
  0xe7   : > { %v645_v51 = vpop.xlane.xlu1 %644  ;;  %v717_v55 = vmul.f32 0.015625, %v642_v48  ;;  %v779_v33 = vmul.f32 %v5314_v40, %v5314_v40 }
  0xe8   : > { %v718_v56 = vmul.f32 0.015625, %v645_v51  ;;  %v780_v49 = vmul.f32 %v5317_v46, %v5317_v46 }
  0xe9   : > { %v5326_v34 = vsub.f32 %v5179_v53, %v717_v55  ;;  %v827_v63 = vsel %vm609_vm1, %v779_v33, 0.0 }
  0xea   : > { %v5329_v50 = vsub.f32 %v5181_v54, %v718_v56  ;;  %825 = vadd.xlane.f32.xlu1 %v824_v52  ;;  %828 = vadd.xlane.f32.xlu0 %v827_v63  ;;  %v648_v0 = vpop.xlane.xlu0 %647  ;;  %v830_v4 = vsel %vm609_vm1, %v780_v49, 0.0  ;;  %v4737_v49 = vld [vmem:[%s5363_s26 + $0x8] sm:$0xff]  }
  0xeb   : > { %v651_v3 = vpop.xlane.xlu1 %650  ;;  %v719_v7 = vmul.f32 0.015625, %v648_v0  ;;  %v781_v11 = vmul.f32 %v5326_v34, %v5326_v34 }
  0xec   : > { %v720_v8 = vmul.f32 0.015625, %v651_v3  ;;  %v782_v53 = vmul.f32 %v5329_v50, %v5329_v50 }
  0xed   : > { %v5338_v54 = vsub.f32 %v5187_v57, %v719_v7  ;;  %v833_v15 = vsel %vm609_vm1, %v781_v11, 0.0 }
  0xee   : > { %v5341_v12 = vsub.f32 %v5189_v58, %v720_v8  ;;  %831 = vadd.xlane.f32.xlu1 %v830_v4  ;;  %834 = vadd.xlane.f32.xlu0 %v833_v15  ;;  %v654_v16 = vpop.xlane.xlu0 %653  ;;  %v836_v20 = vsel %vm609_vm1, %v782_v53, 0.0  ;;  %v4738_v15 = vld [vmem:[%s5363_s26 + $0x10] sm:$0xff]  }
  0xef   : > { %v657_v19 = vpop.xlane.xlu1 %656  ;;  %v721_v23 = vmul.f32 0.015625, %v654_v16  ;;  %v783_v27 = vmul.f32 %v5338_v54, %v5338_v54 }
  0xf0   : > { %v722_v41 = vmul.f32 0.015625, %v657_v19  ;;  %v784_v57 = vmul.f32 %v5341_v12, %v5341_v12 }
  0xf1   : > { %v5353_v58 = vsub.f32 %v5195_v61, %v721_v23  ;;  %v839_v31 = vsel %vm609_vm1, %v783_v27, 0.0  ;;  %v4736_v61 = vld [vmem:[%s5363_s26] sm:$0xff]  }
  0xf2   : > { %v5356_v28 = vsub.f32 %v5197_v62, %v722_v41  ;;  %837 = vadd.xlane.f32.xlu1 %v836_v20  ;;  %840 = vadd.xlane.f32.xlu0 %v839_v31  ;;  %v660_v32 = vpop.xlane.xlu0 %659  ;;  %v842_v37 = vsel %vm609_vm1, %v784_v57, 0.0 }
  0xf3   : > { %v663_v36 = vpop.xlane.xlu1 %662  ;;  %v723_v39 = vmul.f32 0.015625, %v660_v32  ;;  %v785_v62 = vmul.f32 %v5353_v58, %v5353_v58  ;;  %4487 = vmatprep.subr.bf16.mxu0 %v4736_v61  ;;  %v4739_v32 = vld [vmem:[%s5363_s26 + $0x18] sm:$0xff]   ;;  %s2599_s26 = scalar_lea.vmem %s7603_s10, %s4939_s25 }
  0xf4   : > { %v724_v45 = vmul.f32 0.015625, %v663_v36  ;;  %v786_v47 = vmul.f32 %v5356_v28, %v5356_v28  ;;  %4488 = vmatpush3.bf16.msra.mxu0 %v4736_v61 }
  0xf5   : > { %v5372_v48 = vsub.f32 %v5203_v1, %v723_v39  ;;  %v845_v52 = vsel %vm609_vm1, %v785_v62, 0.0  ;;  %4489 = vmatprep.subr.bf16.mxu0 %v4737_v49 }
  0xf6   : > { %v5375_v51 = vsub.f32 %v5205_v2, %v724_v45  ;;  %843 = vadd.xlane.f32.xlu1 %v842_v37  ;;  %846 = vadd.xlane.f32.xlu0 %v845_v52  ;;  %v666_v55 = vpop.xlane.xlu0 %665  ;;  %v848_v33 = vsel %vm609_vm1, %v786_v47, 0.0 }
  0xf7   : > { %v669_v56 = vpop.xlane.xlu1 %668  ;;  %v725_v63 = vmul.f32 0.015625, %v666_v55  ;;  %v787_v1 = vmul.f32 %v5372_v48, %v5372_v48 }
  0xf8   : > { %v726_v0 = vmul.f32 0.015625, %v669_v56  ;;  %v788_v2 = vmul.f32 %v5375_v51, %v5375_v51  ;;  %4490 = vmatpush3.bf16.msra.mxu0 %v4737_v49 }
  0xf9   : > { %v5385_v3 = vsub.f32 %v5211_v5, %v725_v63  ;;  %v851_v7 = vsel %vm609_vm1, %v787_v1, 0.0  ;;  %4491 = vmatprep.subr.bf16.mxu0 %v4738_v15 }
  0xfa   : > { %v5388_v4 = vsub.f32 %v5213_v6, %v726_v0  ;;  %849 = vadd.xlane.f32.xlu1 %v848_v33  ;;  %852 = vadd.xlane.f32.xlu0 %v851_v7  ;;  %v672_v8 = vpop.xlane.xlu0 %671  ;;  %v854_v53 = vsel %vm609_vm1, %v788_v2, 0.0 }
  0xfb   : > { %v675_v11 = vpop.xlane.xlu1 %674  ;;  %v727_v16 = vmul.f32 0.015625, %v672_v8  ;;  %v789_v5 = vmul.f32 %v5385_v3, %v5385_v3 }
  0xfc   : > { %v728_v19 = vmul.f32 0.015625, %v675_v11  ;;  %v790_v6 = vmul.f32 %v5388_v4, %v5388_v4  ;;  %4492 = vmatpush3.bf16.msra.mxu0 %v4738_v15 }
  0xfd   : > { %v5398_v20 = vsub.f32 %v5219_v9, %v727_v16  ;;  %v857_v41 = vsel %vm609_vm1, %v789_v5, 0.0  ;;  %4493 = vmatprep.subr.bf16.mxu0 %v4739_v32 }
  0xfe   : > { %v5401_v23 = vsub.f32 %v5221_v10, %v728_v19  ;;  %855 = vadd.xlane.f32.xlu1 %v854_v53  ;;  %858 = vadd.xlane.f32.xlu0 %v857_v41  ;;  %v678_v27 = vpop.xlane.xlu0 %677  ;;  %v860_v31 = vsel %vm609_vm1, %v790_v6, 0.0 }
  0xff   : > { %v681_v57 = vpop.xlane.xlu1 %680  ;;  %v729_v36 = vmul.f32 0.015625, %v678_v27  ;;  %v791_v61 = vmul.f32 %v5398_v20, %v5398_v20 }
 0x100   : > { %v730_v37 = vmul.f32 0.015625, %v681_v57  ;;  %v792_v9 = vmul.f32 %v5401_v23, %v5401_v23  ;;  %4494 = vmatpush3.bf16.msra.mxu0 %v4739_v32 }
 0x101   : > { %v5411_v10 = vsub.f32 %v5227_v13, %v729_v36  ;;  %v863_v45 = vsel %vm609_vm1, %v791_v61, 0.0 }
 0x102   : > { %v5414_v39 = vsub.f32 %v5229_v14, %v730_v37  ;;  %861 = vadd.xlane.f32.xlu1 %v860_v31  ;;  %864 = vadd.xlane.f32.xlu0 %v863_v45  ;;  %v684_v62 = vpop.xlane.xlu0 %683  ;;  %v866_v52 = vsel %vm609_vm1, %v792_v9, 0.0 }
 0x103   : > { %v687_v47 = vpop.xlane.xlu1 %686  ;;  %v731_v55 = vmul.f32 0.015625, %v684_v62  ;;  %v793_v33 = vmul.f32 %v5411_v10, %v5411_v10 }
 0x104   : > { %v732_v56 = vmul.f32 0.015625, %v687_v47  ;;  %v794_v13 = vmul.f32 %v5414_v39, %v5414_v39 }
 0x105   : > { %v5423_v14 = vsub.f32 %v5235_v17, %v731_v55  ;;  %v869_v63 = vsel %vm609_vm1, %v793_v33, 0.0 }
 0x106   : > { %v5426_v49 = vsub.f32 %v5237_v18, %v732_v56  ;;  %867 = vadd.xlane.f32.xlu1 %v866_v52  ;;  %870 = vadd.xlane.f32.xlu0 %v869_v63  ;;  %v690_v0 = vpop.xlane.xlu0 %689  ;;  %v872_v2 = vsel %vm609_vm1, %v794_v13, 0.0 }
 0x107   : > { %v693_v1 = vpop.xlane.xlu1 %692  ;;  %v733_v7 = vmul.f32 0.015625, %v690_v0  ;;  %v795_v11 = vmul.f32 %v5423_v14, %v5423_v14 }
 0x108   : > { %v734_v8 = vmul.f32 0.015625, %v693_v1  ;;  %v796_v17 = vmul.f32 %v5426_v49, %v5426_v49 }
 0x109   : > { %v5435_v53 = vsub.f32 %v5243_v21, %v733_v7  ;;  %v875_v15 = vsel %vm609_vm1, %v795_v11, 0.0 }
 0x10a   : > { %v5438_v18 = vsub.f32 %v5245_v22, %v734_v8  ;;  %873 = vadd.xlane.f32.xlu1 %v872_v2  ;;  %876 = vadd.xlane.f32.xlu0 %v875_v15  ;;  %v696_v16 = vpop.xlane.xlu0 %695  ;;  %v878_v5 = vsel %vm609_vm1, %v796_v17, 0.0 }
 0x10b   : > { %v699_v19 = vpop.xlane.xlu1 %698  ;;  %v735_v6 = vmul.f32 0.015625, %v696_v16  ;;  %v797_v27 = vmul.f32 %v5435_v53, %v5435_v53 }
 0x10c   : > { %v736_v41 = vmul.f32 0.015625, %v699_v19  ;;  %v798_v21 = vmul.f32 %v5438_v18, %v5438_v18 }
 0x10d   : > { %v5447_v57 = vsub.f32 %v5251_v25, %v735_v6  ;;  %v881_v31 = vsel %vm609_vm1, %v797_v27, 0.0 }
 0x10e   : > { %v5450_v22 = vsub.f32 %v5253_v26, %v736_v41  ;;  %879 = vadd.xlane.f32.xlu1 %v878_v5  ;;  %882 = vadd.xlane.f32.xlu0 %v881_v31  ;;  %v702_v32 = vpop.xlane.xlu0 %701  ;;  %v884_v37 = vsel %vm609_vm1, %v798_v21, 0.0 }
 0x10f   : > { %v705_v36 = vpop.xlane.xlu1 %704  ;;  %v737_v61 = vmul.f32 0.015625, %v702_v32  ;;  %v799_v45 = vmul.f32 %v5447_v57, %v5447_v57 }
 0x110   : > { %v738_v9 = vmul.f32 0.015625, %v705_v36  ;;  %v800_v25 = vmul.f32 %v5450_v22, %v5450_v22 }
 0x111   : > { %v5459_v62 = vsub.f32 %v5259_v29, %v737_v61  ;;  %v887_v47 = vsel %vm609_vm1, %v799_v45, 0.0 }
 0x112   : > { %v5462_v26 = vsub.f32 %v5261_v30, %v738_v9  ;;  %885 = vadd.xlane.f32.xlu1 %v884_v37  ;;  %888 = vadd.xlane.f32.xlu0 %v887_v47  ;;  %v890_v52 = vsel %vm609_vm1, %v800_v25, 0.0 }
 0x113   : > { %v801_v55 = vmul.f32 %v5459_v62, %v5459_v62 }
 0x114   : > { %v802_v56 = vmul.f32 %v5462_v26, %v5462_v26 }
 0x115   : > { %v893_v33 = vsel %vm609_vm1, %v801_v55, 0.0 }
 0x116   : > { %891 = vadd.xlane.f32.xlu1 %v890_v52  ;;  %894 = vadd.xlane.f32.xlu0 %v893_v33  ;;  %v896_v29 = vsel %vm609_vm1, %v802_v56, 0.0 }
 0x11a   : > { %897 = vadd.xlane.f32.xlu1 %v896_v29 }
 0x167   : > { %v805_v30 = vpop.xlane.xlu0 %804 }
 0x168   : > { %v899_v13 = vmul.f32 0.015625, %v805_v30 }
 0x16a   : > { %v931_v63 = vadd.f32 1e-06, %v899_v13 }
 0x16b   : > { %v808_v0 = vpop.xlane.xlu1 %807  ;;  %v811_v1 = vpop.xlane.xlu0 %810 }
 0x16c   : > { %v900_v2 = vmul.f32 0.015625, %v808_v0  ;;  %v901_v7 = vmul.f32 0.015625, %v811_v1  ;;  %4756 = vrsqrt.f32 %v931_v63 }
 0x16e   : > { %v932_v8 = vadd.f32 1e-06, %v900_v2  ;;  %v933_v11 = vadd.f32 1e-06, %v901_v7 }
 0x16f   : > { %v814_v17 = vpop.xlane.xlu1 %813  ;;  %v817_v15 = vpop.xlane.xlu0 %816 }
 0x170   : > { %4758 = vrsqrt.f32 %v932_v8  ;;  %v902_v16 = vmul.f32 0.015625, %v814_v17  ;;  %v903_v19 = vmul.f32 0.015625, %v817_v15 }
 0x171   : > { %4760 = vrsqrt.f32 %v933_v11 }
 0x172   : > { %v934_v5 = vadd.f32 1e-06, %v902_v16  ;;  %v935_v6 = vadd.f32 1e-06, %v903_v19 }
 0x173   : > { %v820_v41 = vpop.xlane.xlu1 %819  ;;  %v823_v27 = vpop.xlane.xlu0 %822 }
 0x174   : > { %4762 = vrsqrt.f32 %v934_v5  ;;  %v904_v21 = vmul.f32 0.015625, %v820_v41  ;;  %v905_v31 = vmul.f32 0.015625, %v823_v27 }
 0x175   : > { %4764 = vrsqrt.f32 %v935_v6 }
 0x176   : > { %v936_v32 = vadd.f32 1e-06, %v904_v21  ;;  %v937_v36 = vadd.f32 1e-06, %v905_v31  ;;  %v4757_v9 = vpop.eup %4756 }
 0x177   : > { %v826_v37 = vpop.xlane.xlu1 %825  ;;  %v829_v61 = vpop.xlane.xlu0 %828  ;;  %v995_v29 = vmul.f32 %v4757_v9, %v5268_v43 }
 0x178   : > { %4766 = vrsqrt.f32 %v936_v32  ;;  %v906_v45 = vmul.f32 0.015625, %v826_v37  ;;  %v907_v25 = vmul.f32 0.015625, %v829_v61 }
 0x179   : > { %4768 = vrsqrt.f32 %v937_v36 }
 0x17a   : > { %v4759_v47 = vpop.eup %4758  ;;  %v938_v52 = vadd.f32 1e-06, %v906_v45  ;;  %v939_v55 = vadd.f32 1e-06, %v907_v25 }
 0x17b   : > { %v832_v56 = vpop.xlane.xlu1 %831  ;;  %v835_v33 = vpop.xlane.xlu0 %834  ;;  %v996_v30 = vmul.f32 %v4759_v47, %v5278_v59 }
 0x17c   : > { %v4761_v13 = vpop.eup %4760  ;;  %4770 = vrsqrt.f32 %v938_v52  ;;  %v908_v63 = vmul.f32 0.015625, %v832_v56  ;;  %v909_v0 = vmul.f32 0.015625, %v835_v33 }
 0x17d   : > { %v1040_v1 = vpack.c.bf16 %v996_v30, %v995_v29  ;;  %4772 = vrsqrt.f32 %v939_v55  ;;  %v997_v15 = vmul.f32 %v4761_v13, %v5271_v44 }
 0x17e   : > { %v4763_v2 = vpop.eup %4762  ;;  %v940_v7 = vadd.f32 1e-06, %v908_v63  ;;  %v941_v8 = vadd.f32 1e-06, %v909_v0 }
 0x17f   : > { %v838_v11 = vpop.xlane.xlu1 %837  ;;  %4495 = vmatprep.mubr.msk.bf16.mxu0 %vm609_vm1, %v1040_v1  ;;  %v841_v17 = vpop.xlane.xlu0 %840  ;;  %v998_v16 = vmul.f32 %v4763_v2, %v5281_v60 }
 0x180   : > { %v4765_v43 = vpop.eup %4764  ;;  %4774 = vrsqrt.f32 %v940_v7  ;;  %v910_v59 = vmul.f32 0.015625, %v838_v11  ;;  %v911_v19 = vmul.f32 0.015625, %v841_v17 }
 0x181   : > { %v1041_v5 = vpack.c.bf16 %v998_v16, %v997_v15  ;;  %4776 = vrsqrt.f32 %v941_v8  ;;  %v999_v32 = vmul.f32 %v4765_v43, %v5290_v35 }
 0x182   : > { %v4767_v6 = vpop.eup %4766  ;;  %v942_v41 = vadd.f32 1e-06, %v910_v59  ;;  %v943_v27 = vadd.f32 1e-06, %v911_v19 }
 0x183   : > { %v844_v21 = vpop.xlane.xlu1 %843  ;;  %4496 = vmatmul.mubr.msk.bf16.vlgmr.msra.gmra.mrb[0].mxu0 %vm609_vm1, %v1041_v5  ;;  %v847_v31 = vpop.xlane.xlu0 %846  ;;  %v1000_v36 = vmul.f32 %v4767_v6, %v5293_v38 }
 0x184   : > { %v4769_v44 = vpop.eup %4768  ;;  %4778 = vrsqrt.f32 %v942_v41  ;;  %v912_v60 = vmul.f32 0.015625, %v844_v21  ;;  %v913_v37 = vmul.f32 0.015625, %v847_v31 }
 0x185   : > { %v1042_v61 = vpack.c.bf16 %v1000_v36, %v999_v32  ;;  %4780 = vrsqrt.f32 %v943_v27  ;;  %v1001_v55 = vmul.f32 %v4769_v44, %v5302_v24 }
 0x186   : > { %v4771_v9 = vpop.eup %4770  ;;  %v944_v45 = vadd.f32 1e-06, %v912_v60  ;;  %v945_v25 = vadd.f32 1e-06, %v913_v37 }
 0x187   : > { %v850_v47 = vpop.xlane.xlu1 %849  ;;  %4499 = vmatprep.mubr.msk.bf16.mxu0 %vm609_vm1, %v1042_v61  ;;  %v853_v52 = vpop.xlane.xlu0 %852  ;;  %v1002_v56 = vmul.f32 %v4771_v9, %v5305_v42 }
 0x188   : > { %v4773_v35 = vpop.eup %4772  ;;  %4782 = vrsqrt.f32 %v944_v45  ;;  %v914_v38 = vmul.f32 0.015625, %v850_v47  ;;  %v915_v33 = vmul.f32 0.015625, %v853_v52 }
 0x189   : > { %v1043_v29 = vpack.c.bf16 %v1002_v56, %v1001_v55  ;;  %4784 = vrsqrt.f32 %v945_v25  ;;  %v1003_v2 = vmul.f32 %v4773_v35, %v5314_v40 }
 0x18a   : > { %v4775_v30 = vpop.eup %4774  ;;  %v946_v13 = vadd.f32 1e-06, %v914_v38  ;;  %v947_v63 = vadd.f32 1e-06, %v915_v33 }
 0x18b   : > { %v856_v0 = vpop.xlane.xlu1 %855  ;;  %4500 = vmatmul.mubr.msk.bf16.gmra.mrb[4].mxu0 %vm609_vm1, %v1043_v29  ;;  %v859_v1 = vpop.xlane.xlu0 %858  ;;  %v1004_v7 = vmul.f32 %v4775_v30, %v5317_v46 }
 0x18c   : > { %v4777_v24 = vpop.eup %4776  ;;  %4786 = vrsqrt.f32 %v946_v13  ;;  %v916_v42 = vmul.f32 0.015625, %v856_v0  ;;  %v917_v8 = vmul.f32 0.015625, %v859_v1 }
 0x18d   : > { %v1044_v11 = vpack.c.bf16 %v1004_v7, %v1003_v2  ;;  %4788 = vrsqrt.f32 %v947_v63  ;;  %v1005_v19 = vmul.f32 %v4777_v24, %v5326_v34 }
 0x18e   : > { %v4779_v17 = vpop.eup %4778  ;;  %v948_v15 = vadd.f32 1e-06, %v916_v42  ;;  %v949_v16 = vadd.f32 1e-06, %v917_v8 }
 0x18f   : > { %v862_v43 = vpop.xlane.xlu1 %861  ;;  %4503 = vmatprep.mubr.msk.bf16.mxu0 %vm609_vm1, %v1044_v11  ;;  %v865_v59 = vpop.xlane.xlu0 %864  ;;  %v1006_v5 = vmul.f32 %v4779_v17, %v5329_v50 }
 0x190   : > { %v4781_v40 = vpop.eup %4780  ;;  %4790 = vrsqrt.f32 %v948_v15  ;;  %v918_v46 = vmul.f32 0.015625, %v862_v43  ;;  %v919_v6 = vmul.f32 0.015625, %v865_v59 }
 0x191   : > { %v1045_v41 = vpack.c.bf16 %v1006_v5, %v1005_v19  ;;  %4792 = vrsqrt.f32 %v949_v16  ;;  %v1007_v44 = vmul.f32 %v4781_v40, %v5338_v54 }
 0x192   : > { %v4783_v27 = vpop.eup %4782  ;;  %v950_v21 = vadd.f32 1e-06, %v918_v46  ;;  %v951_v31 = vadd.f32 1e-06, %v919_v6 }
 0x193   : > { %v868_v32 = vpop.xlane.xlu1 %867  ;;  %4504 = vmatmul.mubr.msk.bf16.gmra.mrb[8].mxu0 %vm609_vm1, %v1045_v41  ;;  %v871_v36 = vpop.xlane.xlu0 %870  ;;  %v1008_v60 = vmul.f32 %v4783_v27, %v5341_v12 }
 0x194   : > { %v4785_v34 = vpop.eup %4784  ;;  %4794 = vrsqrt.f32 %v950_v21  ;;  %v920_v50 = vmul.f32 0.015625, %v868_v32  ;;  %v921_v37 = vmul.f32 0.015625, %v871_v36 }
 0x195   : > { %v1046_v61 = vpack.c.bf16 %v1008_v60, %v1007_v44  ;;  %4796 = vrsqrt.f32 %v951_v31  ;;  %v1009_v55 = vmul.f32 %v4785_v34, %v5353_v58 }
 0x196   : > { %v4787_v9 = vpop.eup %4786  ;;  %v952_v45 = vadd.f32 1e-06, %v920_v50  ;;  %v953_v25 = vadd.f32 1e-06, %v921_v37 }
 0x197   : > { %v874_v47 = vpop.xlane.xlu1 %873  ;;  %4507 = vmatprep.mubr.msk.bf16.mxu0 %vm609_vm1, %v1046_v61  ;;  %v877_v52 = vpop.xlane.xlu0 %876  ;;  %v1010_v56 = vmul.f32 %v4787_v9, %v5356_v28 }
 0x198   : > { %v4789_v54 = vpop.eup %4788  ;;  %4798 = vrsqrt.f32 %v952_v45  ;;  %v922_v12 = vmul.f32 0.015625, %v874_v47  ;;  %v923_v35 = vmul.f32 0.015625, %v877_v52 }
 0x199   : > { %v1047_v38 = vpack.c.bf16 %v1010_v56, %v1009_v55  ;;  %4800 = vrsqrt.f32 %v953_v25  ;;  %v1011_v0 = vmul.f32 %v4789_v54, %v5372_v48 }
 0x19a   : > { %v4791_v33 = vpop.eup %4790  ;;  %v954_v29 = vadd.f32 1e-06, %v922_v12  ;;  %v955_v30 = vadd.f32 1e-06, %v923_v35 }
 0x19b   : > { %v880_v13 = vpop.xlane.xlu1 %879  ;;  %4508 = vmatmul.mubr.msk.bf16.gmra.mrb[12].mxu0 %vm609_vm1, %v1047_v38  ;;  %v883_v63 = vpop.xlane.xlu0 %882  ;;  %v1012_v1 = vmul.f32 %v4791_v33, %v5375_v51 }
 0x19c   : > { %v4793_v58 = vpop.eup %4792  ;;  %4802 = vrsqrt.f32 %v954_v29  ;;  %v924_v28 = vmul.f32 0.015625, %v880_v13  ;;  %v925_v2 = vmul.f32 0.015625, %v883_v63  ;;  %v1297_v63 = vld [vmem:[%s1296_s19] sm:$0x7] }
 0x19d   : > { %v1048_v7 = vpack.c.bf16 %v1012_v1, %v1011_v0  ;;  %4804 = vrsqrt.f32 %v955_v30  ;;  %v1013_v15 = vmul.f32 %v4793_v58, %v5385_v3  ;;  %v1367_v30 = vlaneseq  ;;  %v1403_v0 = vld [vmem:[#allocation3 + $0x1] sm:$0xff] }
 0x19e   : > { %v4795_v24 = vpop.eup %4794  ;;  %v956_v42 = vadd.f32 1e-06, %v924_v28  ;;  %v957_v8 = vadd.f32 1e-06, %v925_v2  ;;  %v1336_v28 = vld [vmem:[#allocation3 + $0x8] sm:$0xff] }
 0x19f   : > { %v886_v11 = vpop.xlane.xlu1 %885  ;;  %4511 = vmatprep.mubr.msk.bf16.mxu0 %vm609_vm1, %v1048_v7  ;;  %v889_v17 = vpop.xlane.xlu0 %888  ;;  %v1014_v16 = vmul.f32 %v4795_v24, %v5388_v4  ;;  %v1368_v13 = vshrl.u32 %v1367_v30, 7  ;;  %v1404_v2 = vld [vmem:[#allocation3 + $0x9] sm:$0xff]  ;;  %v5535_v7 = vld [vmem:[%s1038_s24] ss:$0 sm:$0xff]  ;;  %s3732_s24 = scalar_lea.vmem %s7599_s6, %s5350_s22 }
 0x1a0   : > { %v4797_v48 = vpop.eup %4796  ;;  %4806 = vrsqrt.f32 %v956_v42  ;;  %v926_v51 = vmul.f32 0.015625, %v886_v11  ;;  %v927_v43 = vmul.f32 0.015625, %v889_v17 }
 0x1a1   : > { %v1049_v59 = vpack.c.bf16 %v1014_v16, %v1013_v15  ;;  %4808 = vrsqrt.f32 %v957_v8  ;;  %v1015_v41 = vmul.f32 %v4797_v48, %v5398_v20  ;;  %v1537_v1 = vsub.s32 2, %v1368_v13 }
 0x1a2   : > { %v4799_v19 = vpop.eup %4798  ;;  %v958_v5 = vadd.f32 1e-06, %v926_v51  ;;  %v959_v40 = vadd.f32 1e-06, %v927_v43  ;;  %v1503_v51 = vld [vmem:[#allocation3 + $0x2] sm:$0xff]  ;;  %v1504_v43 = vld [vmem:[#allocation3 + $0xa] sm:$0xff] }
 0x1a3   : > { %v892_v46 = vpop.xlane.xlu1 %891  ;;  %4512 = vmatmul.mubr.msk.bf16.gmra.mrb[16].mxu0 %vm609_vm1, %v1049_v59  ;;  %v895_v6 = vpop.xlane.xlu0 %894  ;;  %v1016_v27 = vmul.f32 %v4799_v19, %v5401_v23  ;;  %v5539_v11 = vrot.slane %v1297_v63, %v1537_v1 }
 0x1a4   : > { %v4801_v3 = vpop.eup %4800  ;;  %4810 = vrsqrt.f32 %v958_v5  ;;  %v928_v4 = vmul.f32 0.015625, %v892_v46  ;;  %v929_v21 = vmul.f32 0.015625, %v895_v6  ;;  %v1298_v5 = vld [vmem:[%s1296_s19 + $0x4] sm:$0x7] }
 0x1a5   : > { %v1050_v31 = vpack.c.bf16 %v1016_v27, %v1015_v41  ;;  %4812 = vrsqrt.f32 %v959_v40  ;;  %v1017_v34 = vmul.f32 %v4801_v3, %v5411_v10  ;;  %v1299_v40 = vld [vmem:[%s1296_s19 + $0x8] sm:$0x7]  ;;  %v1539_v3 = vmul.f32 %v5539_v11, %v1503_v51  ;;  %s6907_s19 = scalar_lea.vmem %s7598_s5, %s5350_s22 }
 0x1a6   : > { %v4803_v32 = vpop.eup %4802  ;;  %v960_v36 = vadd.f32 1e-06, %v928_v4  ;;  %v961_v44 = vadd.f32 1e-06, %v929_v21  ;;  %v1540_v21 = vmul.f32 %v5539_v11, %v1504_v43 }
 0x1a7   : > { %v898_v60 = vpop.xlane.xlu1 %897  ;;  %4515 = vmatprep.mubr.msk.bf16.mxu0 %vm609_vm1, %v1050_v31  ;;  %v1018_v50 = vmul.f32 %v4803_v32, %v5414_v39  ;;  %v4805_v37 = vpop.eup %4804 }
 0x1a8   : > { %4814 = vrsqrt.f32 %v960_v36  ;;  %v930_v20 = vmul.f32 0.015625, %v898_v60  ;;  %v1019_v45 = vmul.f32 %v4805_v37, %v5423_v14  ;;  %v5564_v37 = vrot.slane %v1299_v40, %v1537_v1 }
 0x1a9   : > { %v1051_v23 = vpack.c.bf16 %v1018_v50, %v1017_v34  ;;  %4816 = vrsqrt.f32 %v961_v44  ;;  %v5562_v50 = vrot.slane %v1298_v5, %v1537_v1 }
 0x1aa   : > { %v4807_v61 = vpop.eup %4806  ;;  %v962_v9 = vadd.f32 1e-06, %v930_v20 }
 0x1ab   : > { %4516 = vmatmul.mubr.msk.bf16.gmra.mrb[20].mxu0 %vm609_vm1, %v1051_v23  ;;  %v1020_v25 = vmul.f32 %v4807_v61, %v5426_v49  ;;  %v4809_v47 = vpop.eup %4808 }
 0x1ac   : > { %4818 = vrsqrt.f32 %v962_v9  ;;  %v1021_v10 = vmul.f32 %v4809_v47, %v5435_v53 }
 0x1ad   : > { %v1052_v52 = vpack.c.bf16 %v1020_v25, %v1019_v45 }
 0x1ae   : > { %v4811_v55 = vpop.eup %4810 }
 0x1af   : > { %4519 = vmatprep.mubr.msk.bf16.mxu0 %vm609_vm1, %v1052_v52  ;;  %v1022_v39 = vmul.f32 %v4811_v55, %v5438_v18  ;;  %v4813_v56 = vpop.eup %4812 }
 0x1b0   : > { %v1023_v14 = vmul.f32 %v4813_v56, %v5447_v57  ;;  %v5524_v57 = vsub.s32 0, %v1368_v13 }
 0x1b1   : > { %v1053_v54 = vpack.c.bf16 %v1022_v39, %v1021_v10 }
 0x1b2   : > { %v4815_v12 = vpop.eup %4814  ;;  %7641 = vst [vmem:[#allocation4_spill] sm:$0xff] %v5524_v57  ;;  %v5557_v36 = vrot.slane %v1298_v5, %v5524_v57  ;;  %v5560_v44 = vrot.slane %v1299_v40, %v5524_v57 }
 0x1b3   : > { %4520 = vmatmul.mubr.msk.bf16.gmra.mrb[24].mxu0 %vm609_vm1, %v1053_v54  ;;  %v1024_v49 = vmul.f32 %v4815_v12, %v5450_v22  ;;  %v4817_v35 = vpop.eup %4816  ;;  %v1437_v22 = vsub.s32 1, %v1368_v13 }
 0x1b4   : > { %v1025_v53 = vmul.f32 %v4817_v35, %v5459_v62  ;;  %v5531_v62 = vrot.slane %v1297_v63, %v5524_v57 }
 0x1b5   : > { %v1054_v38 = vpack.c.bf16 %v1024_v49, %v1023_v14  ;;  %v5533_v58 = vrot.slane %v1297_v63, %v1437_v22  ;;  %v5552_v31 = vrot.slane %v1298_v5, %v1437_v22  ;;  %v5554_v32 = vrot.slane %v1299_v40, %v1437_v22 }
 0x1b6   : > { %v4819_v33 = vpop.eup %4818  ;;  %v1372_v17 = vmul.f32 %v5531_v62, %v1336_v28 }
 0x1b7   : > { %4523 = vmatprep.mubr.msk.bf16.mxu0 %vm609_vm1, %v1054_v38  ;;  %v1026_v18 = vmul.f32 %v4819_v33, %v5462_v26  ;;  %v1335_v26 = vld [vmem:[#allocation3] sm:$0xff]  ;;  %v1439_v42 = vmul.f32 %v5533_v58, %v1403_v0  ;;  %v1440_v15 = vmul.f32 %v5533_v58, %v1404_v2 }
 0x1b8   : > { %v1371_v24 = vmul.f32 %v5531_v62, %v1335_v26 }
 0x1b9   : > { %v1055_v29 = vpack.c.bf16 %v1026_v18, %v1025_v53  ;;  %v1472_v4 = vadd.f32 %v1440_v15, %v1372_v17 }
 0x1ba   : > { %v1471_v41 = vadd.f32 %v1439_v42, %v1371_v24 }
 0x1bb   : > { %4524 = vmatmul.mubr.msk.bf16.gmra.mrb[28].mxu0 %vm609_vm1, %v1055_v29  ;;  %v1572_v20 = vadd.f32 %v1540_v21, %v1472_v4 }
 0x1bc   : > { %v1571_v34 = vadd.f32 %v1539_v3, %v1471_v41 }
 0x256   : > { %v4497_v8 = vpop.f32.mrb[0].mxu0 }
 0x257   : > { %v1177_v16 = vadd.f32 %v4497_v8, %v5535_v7  ;;  %v1168_v48 = vpop.f32.mrb[1].mxu0 }
 0x258   : > { %v1169_v59 = vadd.f32 %v5535_v7, %v1168_v48  ;;  %v4498_v19 = vpop.f32.mrb[2].mxu0 }
 0x259   : > { %1305 = vst [vmem:[#allocation3 + $0x31] sm:$0xff] %v1177_v16  ;;  %v5546_v46 = vadd.f32 %v4498_v19, %v5535_v7  ;;  %v1171_v6 = vpop.f32.mrb[3].mxu0  ;;  %v5570_v9 = vmul.f32 %v5554_v32, %v1177_v16  ;;  %v5573_v45 = vmul.f32 %v5552_v31, %v1177_v16  ;;  %v1443_v25 = vmul.f32 %v5533_v58, %v1177_v16 }
 0x25a   : > { %1303 = vst [vmem:[#allocation3 + $0x19] sm:$0xff] %v1169_v59  ;;  %v1172_v27 = vadd.f32 %v5535_v7, %v1171_v6  ;;  %v1739_v55 = vmul.f32 %v5552_v31, %v1169_v59  ;;  %v1441_v56 = vmul.f32 %v5533_v58, %v1169_v59 }
 0x25b   : > { %1306 = vst [vmem:[#allocation3 + $0x39] sm:$0xff] %v5546_v46  ;;  %v5582_v39 = vmul.f32 %v5554_v32, %v5546_v46  ;;  %v5593_v38 = vmul.f32 %v5552_v31, %v5546_v46 }
 0x25c   : > { %1304 = vst [vmem:[#allocation3 + $0x21] sm:$0xff] %v1172_v27  ;;  %v1740_v49 = vmul.f32 %v5552_v31, %v1172_v27  ;;  %v1442_v35 = vmul.f32 %v5533_v58, %v1172_v27 }
 0x25e   : > { %v4501_v60 = vpop.f32.mrb[4].mxu0 }
 0x25f   : > { %v5567_v23 = vadd.f32 %v4501_v60, %v5535_v7  ;;  %v1184_v61 = vpop.f32.mrb[5].mxu0 }
 0x260   : > { %v5577_v47 = vadd.f32 %v5535_v7, %v1184_v61  ;;  %v4502_v52 = vpop.f32.mrb[6].mxu0  ;;  %v1904_v10 = vld [vmem:[#allocation3 + $0x30] sm:$0xff] }
 0x261   : > { %1309 = vst [vmem:[#allocation3 + $0x61] sm:$0xff] %v5567_v23  ;;  %v5587_v54 = vadd.f32 %v4502_v52, %v5535_v7  ;;  %v1187_v12 = vpop.f32.mrb[7].mxu0  ;;  %v1603_v14 = vld [vmem:[#allocation3 + $0x18] sm:$0xff]  ;;  %v1940_v18 = vmul.f32 %v5560_v44, %v1904_v10  ;;  %v1641_v28 = vmul.f32 %v1904_v10, %v5557_v36  ;;  %v1375_v24 = vmul.f32 %v1904_v10, %v5531_v62 }
 0x262   : > { %1307 = vst [vmem:[#allocation3 + $0x49] sm:$0xff] %v5577_v47  ;;  %v5597_v33 = vadd.f32 %v5535_v7, %v1187_v12  ;;  %v1639_v53 = vmul.f32 %v5557_v36, %v1603_v14  ;;  %v2104_v29 = vld [vmem:[#allocation3 + $0x32] sm:$0xff]  ;;  %v5603_v13 = vld [vmem:[#allocation3 + $0x3a] sm:$0xff]  ;;  %v1373_v22 = vmul.f32 %v1603_v14, %v5531_v62  ;;  %v5611_v2 = vmul.f32 %v5554_v32, %v5577_v47 }
 0x263   : > { %v5601_v30 = vld [vmem:[#allocation3 + $0x38] sm:$0xff]  ;;  %1310 = vst [vmem:[#allocation3 + $0x69] sm:$0xff] %v5587_v54  ;;  %v2140_v26 = vmul.f32 %v5564_v37, %v2104_v29  ;;  %v1604_v0 = vld [vmem:[#allocation3 + $0x20] sm:$0xff]  ;;  %v5620_v15 = vmul.f32 %v5564_v37, %v5603_v13  ;;  %v1475_v52 = vadd.f32 %v1443_v25, %v1375_v24 }
 0x264   : > { %v1803_v63 = vld [vmem:[#allocation3 + $0x1a] sm:$0xff]  ;;  %v1804_v1 = vld [vmem:[#allocation3 + $0x22] sm:$0xff]  ;;  %1308 = vst [vmem:[#allocation3 + $0x51] sm:$0xff] %v5597_v33  ;;  %v1671_v42 = vadd.f32 %v1639_v53, %v1571_v34  ;;  %v1640_v8 = vmul.f32 %v5557_v36, %v1604_v0  ;;  %v1941_v17 = vmul.f32 %v5560_v44, %v5601_v30  ;;  %v1473_v48 = vadd.f32 %v1441_v56, %v1373_v22 }
 0x265   : > { %v1839_v16 = vmul.f32 %v5562_v50, %v1803_v63  ;;  %v1541_v51 = vmul.f32 %v1803_v63, %v5539_v11  ;;  %v1374_v43 = vmul.f32 %v1604_v0, %v5531_v62  ;;  %v1840_v40 = vmul.f32 %v5562_v50, %v1804_v1 }
 0x266   : > { %v4505_v59 = vpop.f32.mrb[8].mxu0  ;;  %v1771_v19 = vadd.f32 %v1739_v55, %v1671_v42  ;;  %v1672_v5 = vadd.f32 %v1640_v8, %v1572_v20  ;;  %v1542_v6 = vmul.f32 %v1804_v1, %v5539_v11  ;;  %v1642_v21 = vmul.f32 %v5601_v30, %v5557_v36 }
 0x267   : > { %v5628_v41 = vadd.f32 %v4505_v59, %v5535_v7  ;;  %v1200_v27 = vpop.f32.mrb[9].mxu0  ;;  %v1573_v3 = vadd.f32 %v1541_v51, %v1473_v48  ;;  %v1474_v4 = vadd.f32 %v1442_v35, %v1374_v43  ;;  %v1543_v35 = vmul.f32 %v2104_v29, %v5539_v11 }
 0x268   : > { %v5633_v60 = vadd.f32 %v5535_v7, %v1200_v27  ;;  %v4506_v34 = vpop.f32.mrb[10].mxu0  ;;  %v1871_v61 = vadd.f32 %v1839_v16, %v1771_v19  ;;  %v1772_v20 = vadd.f32 %v1740_v49, %v1672_v5  ;;  %v1841_v22 = vmul.f32 %v2104_v29, %v5562_v50  ;;  %v5668_v16 = vld [vmem:[%s5650_s16] ss:$0 sm:$0xff] }
 0x269   : > { %1313 = vst [vmem:[#allocation3 + $0x91] sm:$0xff] %v5628_v41  ;;  %v5637_v55 = vadd.f32 %v4506_v34, %v5535_v7  ;;  %v1203_v10 = vpop.f32.mrb[11].mxu0  ;;  %v1673_v56 = vadd.f32 %v1641_v28, %v1573_v3  ;;  %v5639_v12 = vld [vmem:[#allocation3 + $0x48] sm:$0xff]  ;;  %v1574_v14 = vadd.f32 %v1542_v6, %v1474_v4  ;;  %v1575_v28 = vadd.f32 %v1543_v35, %v1475_v52 }
 0x26a   : > { %1311 = vst [vmem:[#allocation3 + $0x79] sm:$0xff] %v5633_v60  ;;  %v5644_v53 = vadd.f32 %v5535_v7, %v1203_v10  ;;  %v1972_v25 = vadd.f32 %v1940_v18, %v1871_v61  ;;  %v1872_v49 = vadd.f32 %v1840_v40, %v1772_v20  ;;  %v1643_v24 = vmul.f32 %v5639_v12, %v5557_v36 }
 0x26b   : > { %1314 = vst [vmem:[#allocation3 + $0x99] sm:$0xff] %v5637_v55  ;;  %v1773_v63 = vadd.f32 %v5573_v45, %v1673_v56  ;;  %v1674_v0 = vadd.f32 %v1642_v21, %v1574_v14  ;;  %v5655_v1 = vld [vmem:[#allocation3 + $0x50] sm:$0xff]  ;;  %v1842_v29 = vmul.f32 %v5603_v13, %v5562_v50  ;;  %v2043_v45 = vmul.f32 %v5554_v32, %v5597_v33  ;;  %v5683_v21 = vld [vmem:[#allocation3 + $0x60] sm:$0xff] }
 0x26c   : > { %1312 = vst [vmem:[#allocation3 + $0x81] sm:$0xff] %v5644_v53  ;;  %v2072_v42 = vadd.f32 %v5570_v9, %v1972_v25  ;;  %v1973_v8 = vadd.f32 %v1941_v17, %v1872_v49  ;;  %v5661_v18 = vld [vmem:[#allocation3 + $0x4a] sm:$0xff]  ;;  %v1942_v51 = vmul.f32 %v5560_v44, %v5639_v12  ;;  %v1675_v59 = vadd.f32 %v1643_v24, %v1575_v28  ;;  %v5692_v20 = vld [vmem:[#allocation3 + $0x52] sm:$0xff]  ;;  %v5714_v24 = vld [vmem:[#allocation3 + $0x62] sm:$0xff] }
 0x26d   : > { %v1873_v48 = vadd.f32 %v1841_v22, %v1773_v63  ;;  %v1774_v43 = vadd.f32 %v5593_v38, %v1674_v0  ;;  %v1943_v5 = vmul.f32 %v5560_v44, %v5655_v1  ;;  %v1743_v40 = vmul.f32 %v5552_v31, %v5577_v47 }
 0x26e   : > { %v4509_v19 = vpop.f32.mrb[12].mxu0  ;;  %v2172_v9 = vadd.f32 %v2140_v26, %v2072_v42  ;;  %v2073_v17 = vadd.f32 %v5582_v39, %v1973_v8  ;;  %v1843_v38 = vmul.f32 %v5661_v18, %v5562_v50  ;;  %v2142_v35 = vmul.f32 %v5564_v37, %v5661_v18 }
 0x26f   : > { %v5679_v6 = vadd.f32 %v4509_v19, %v5535_v7  ;;  %v1216_v27 = vpop.f32.mrb[13].mxu0  ;;  %v1974_v3 = vadd.f32 %v1942_v51, %v1873_v48  ;;  %v1874_v4 = vadd.f32 %v1842_v29, %v1774_v43  ;;  %v1775_v52 = vadd.f32 %v1743_v40, %v1675_v59 }
 0x270   : > { %v5686_v26 = vadd.f32 %v5535_v7, %v1216_v27  ;;  %v4510_v39 = vpop.f32.mrb[14].mxu0  ;;  %v5689_v34 = vadd.f32 %v5668_v16, %v2172_v9  ;;  %v2173_v61 = vadd.f32 %v5620_v15, %v2073_v17  ;;  %v1944_v22 = vmul.f32 %v5560_v44, %v5683_v21  ;;  %v5742_v27 = vld [vmem:[#allocation3 + $0x68] sm:$0xff] }
 0x271   : > { %1317 = vst [vmem:[#allocation3 + $0xc1] sm:$0xff] %v5679_v6  ;;  %v5696_v10 = vadd.f32 %v4510_v39, %v5535_v7  ;;  %v1219_v56 = vpop.f32.mrb[15].mxu0  ;;  %v2074_v14 = vadd.f32 %v5611_v2, %v1974_v3  ;;  %v1975_v25 = vadd.f32 %v1943_v5, %v1874_v4  ;;  %v1875_v15 = vadd.f32 %v1843_v38, %v1775_v52 }
 0x272   : > { %7642 = vst [vmem:[#allocation5_spill] sm:$0xff] %v5689_v34  ;;  %1315 = vst [vmem:[#allocation3 + $0xa9] sm:$0xff] %v5686_v26  ;;  %v5703_v49 = vadd.f32 %v5535_v7, %v1219_v56  ;;  %2274 = vrot.lane.b32.xlu1 %v5689_v34, %s4958_s17  ;;  %v1444_v2 = vmul.f32 %v5533_v58, %v5546_v46  ;;  %v2143_v28 = vmul.f32 %v5564_v37, %v5692_v20 }
 0x273   : > { %1318 = vst [vmem:[#allocation3 + $0xc9] sm:$0xff] %v5696_v10  ;;  %v2174_v63 = vadd.f32 %v2142_v35, %v2074_v14  ;;  %v2075_v0 = vadd.f32 %v2043_v45, %v1975_v25  ;;  %v1376_v42 = vmul.f32 %v5601_v30, %v5531_v62  ;;  %v5720_v8 = vadd.f32 %v5668_v16, %v2173_v61  ;;  %v5760_v35 = vld [vmem:[#allocation3 + $0x6a] sm:$0xff] }
 0x274   : > { %1316 = vst [vmem:[#allocation3 + $0xb1] sm:$0xff] %v5703_v49  ;;  %v1976_v29 = vadd.f32 %v1944_v22, %v1875_v15  ;;  %v2044_v46 = vmul.f32 %v5554_v32, %v5567_v23  ;;  %v1544_v45 = vmul.f32 %v5603_v13, %v5539_v11  ;;  %v1644_v30 = vmul.f32 %v5655_v1, %v5557_v36 }
 0x275   : > { %7643 = vst [vmem:[#allocation6_spill] sm:$0xff] %v5720_v8  ;;  %v5727_v48 = vadd.f32 %v5668_v16, %v2174_v63  ;;  %v2175_v51 = vadd.f32 %v2143_v28, %v2075_v0  ;;  %v1476_v43 = vadd.f32 %v1444_v2, %v1376_v42  ;;  %v2144_v9 = vmul.f32 %v5564_v37, %v5714_v24  ;;  %v5775_v63 = vld [vmem:[#allocation3 + $0x78] sm:$0xff] }
 0x276   : > { %2276 = vrot.lane.b32.xlu1 %v5720_v8, %s4958_s17  ;;  %v4513_v59 = vpop.f32.mrb[16].mxu0  ;;  %v2076_v19 = vadd.f32 %v2044_v46, %v1976_v29  ;;  %v1377_v17 = vmul.f32 %v5639_v12, %v5531_v62  ;;  %v1445_v3 = vmul.f32 %v5533_v58, %v5577_v47  ;;  %v1545_v61 = vmul.f32 %v5661_v18, %v5539_v11 }
 0x277   : > { %7644 = vst [vmem:[#allocation7_spill] sm:$0xff] %v5727_v48  ;;  %2278 = vrot.lane.b32.xlu0 %v5727_v48, %s4958_s17  ;;  %v5740_v13 = vadd.f32 %v4513_v59, %v5535_v7  ;;  %v1232_v5 = vpop.f32.mrb[17].mxu0  ;;  %v1576_v40 = vadd.f32 %v1544_v45, %v1476_v43  ;;  %v5750_v39 = vadd.f32 %v5668_v16, %v2175_v51 }
 0x278   : > { %v5747_v4 = vadd.f32 %v5535_v7, %v1232_v5  ;;  %v4514_v38 = vpop.f32.mrb[18].mxu0  ;;  %v2176_v12 = vadd.f32 %v2144_v9, %v2076_v19  ;;  %v1744_v47 = vmul.f32 %v5552_v31, %v5597_v33  ;;  %v1477_v25 = vadd.f32 %v1445_v3, %v1377_v17 }
 0x279   : > { %7645 = vst [vmem:[#allocation8_spill] sm:$0xff] %v5750_v39  ;;  %1321 = vst [vmem:[#allocation3 + $0xf1] sm:$0xff] %v5740_v13  ;;  %v5756_v52 = vadd.f32 %v4514_v38, %v5535_v7  ;;  %v1235_v56 = vpop.f32.mrb[19].mxu0  ;;  %v1676_v14 = vadd.f32 %v1644_v30, %v1576_v40  ;;  %v1844_v22 = vmul.f32 %v5692_v20, %v5562_v50 }
 0x27a   : > { %1319 = vst [vmem:[#allocation3 + $0xd9] sm:$0xff] %v5747_v4  ;;  %v5764_v15 = vadd.f32 %v5535_v7, %v1235_v56  ;;  %2280 = vrot.lane.b32.xlu1 %v5750_v39, %s4958_s17  ;;  %v5769_v18 = vadd.f32 %v5668_v16, %v2176_v12  ;;  %v1945_v2 = vmul.f32 %v5560_v44, %v5742_v27 }
 0x27b   : > { %1322 = vst [vmem:[#allocation3 + $0xf9] sm:$0xff] %v5756_v52  ;;  %v1776_v0 = vadd.f32 %v1744_v47, %v1676_v14  ;;  %v2045_v28 = vmul.f32 %v5554_v32, %v5587_v54  ;;  %v1577_v42 = vadd.f32 %v1545_v61, %v1477_v25  ;;  %v1645_v29 = vmul.f32 %v5683_v21, %v5557_v36  ;;  %v2110_v14 = vld [vmem:[#allocation3 + $0x7a] sm:$0xff] }
 0x27c   : > { %7646 = vst [vmem:[#allocation9_spill] sm:$0xff] %v5769_v18  ;;  %1320 = vst [vmem:[#allocation3 + $0xe1] sm:$0xff] %v5764_v15  ;;  %2282 = vrot.lane.b32.xlu0 %v5769_v18, %s4958_s17  ;;  %v2145_v46 = vmul.f32 %v5564_v37, %v5760_v35  ;;  %v1745_v45 = vmul.f32 %v5552_v31, %v5567_v23  ;;  %v1378_v51 = vmul.f32 %v5655_v1, %v5531_v62 }
 0x27d   : > { %v1446_v43 = vmul.f32 %v5533_v58, %v5597_v33  ;;  %v1876_v30 = vadd.f32 %v1844_v22, %v1776_v0  ;;  %v1677_v59 = vadd.f32 %v1645_v29, %v1577_v42  ;;  %v1845_v19 = vmul.f32 %v5714_v24, %v5562_v50 }
 0x27e   : > { %v1946_v9 = vmul.f32 %v5560_v44, %v5775_v63  ;;  %v2046_v17 = vmul.f32 %v5554_v32, %v5633_v60  ;;  %v4517_v5 = vpop.f32.mrb[20].mxu0  ;;  %v1546_v3 = vmul.f32 %v5692_v20, %v5539_v11  ;;  %v1646_v1 = vmul.f32 %v5742_v27, %v5557_v36 }
 0x27f   : > { %v1478_v40 = vadd.f32 %v1446_v43, %v1378_v51  ;;  %v1977_v33 = vadd.f32 %v1945_v2, %v1876_v30  ;;  %v1777_v38 = vadd.f32 %v1745_v45, %v1677_v59  ;;  %v5804_v12 = vadd.f32 %v4517_v5, %v5535_v7  ;;  %v1248_v61 = vpop.f32.mrb[21].mxu0  ;;  %v5821_v51 = vld [vmem:[#allocation3 + $0x80] sm:$0xff] }
 0x280   : > { %v1379_v56 = vmul.f32 %v5683_v21, %v5531_v62  ;;  %v5809_v47 = vadd.f32 %v5535_v7, %v1248_v61  ;;  %v4518_v25 = vpop.f32.mrb[22].mxu0  ;;  %v1447_v20 = vmul.f32 %v5533_v58, %v5567_v23  ;;  %v1547_v2 = vmul.f32 %v5714_v24, %v5539_v11  ;;  %v5843_v61 = vld [vmem:[#allocation3 + $0x90] sm:$0xff] }
 0x281   : > { %v1578_v22 = vadd.f32 %v1546_v3, %v1478_v40  ;;  %v2077_v0 = vadd.f32 %v2045_v28, %v1977_v33  ;;  %v1877_v42 = vadd.f32 %v1845_v19, %v1777_v38  ;;  %1325 = vst [vmem:[#allocation3 + $0x121] sm:$0xff] %v5804_v12  ;;  %v5817_v29 = vadd.f32 %v4518_v25, %v5535_v7  ;;  %v1251_v21 = vpop.f32.mrb[23].mxu0  ;;  %v5833_v40 = vld [vmem:[#allocation3 + $0x82] sm:$0xff] }
 0x282   : > { %v1746_v45 = vmul.f32 %v5552_v31, %v5587_v54  ;;  %1323 = vst [vmem:[#allocation3 + $0x109] sm:$0xff] %v5809_v47  ;;  %v5825_v23 = vadd.f32 %v5535_v7, %v1251_v21  ;;  %v1479_v24 = vadd.f32 %v1447_v20, %v1379_v56  ;;  %v1647_v28 = vmul.f32 %v5775_v63, %v5557_v36 }
 0x283   : > { %v1678_v43 = vadd.f32 %v1646_v1, %v1578_v22  ;;  %v2177_v30 = vadd.f32 %v2145_v46, %v2077_v0  ;;  %v1978_v59 = vadd.f32 %v1946_v9, %v1877_v42  ;;  %v2146_v19 = vmul.f32 %v5564_v37, %v2110_v14  ;;  %1326 = vst [vmem:[#allocation3 + $0x129] sm:$0xff] %v5817_v29 }
 0x284   : > { %v1846_v5 = vmul.f32 %v5760_v35, %v5562_v50  ;;  %1324 = vst [vmem:[#allocation3 + $0x111] sm:$0xff] %v5825_v23  ;;  %v1947_v1 = vmul.f32 %v5560_v44, %v5821_v51  ;;  %v2047_v33 = vmul.f32 %v5554_v32, %v5644_v53  ;;  %v1579_v46 = vadd.f32 %v1547_v2, %v1479_v24 }
 0x285   : > { %v1778_v3 = vadd.f32 %v1746_v45, %v1678_v43  ;;  %v5841_v9 = vadd.f32 %v5668_v16, %v2177_v30  ;;  %v2078_v38 = vadd.f32 %v2046_v17, %v1978_v59  ;;  %v1380_v56 = vmul.f32 %v5742_v27, %v5531_v62  ;;  %v5862_v59 = vld [vmem:[#allocation3 + $0x92] sm:$0xff] }
 0x286   : > { %v1448_v25 = vmul.f32 %v5533_v58, %v5587_v54  ;;  %v2147_v20 = vmul.f32 %v5564_v37, %v5833_v40  ;;  %v1679_v0 = vadd.f32 %v1647_v28, %v1579_v46  ;;  %v1747_v2 = vmul.f32 %v5552_v31, %v5633_v60  ;;  %v4521_v42 = vpop.f32.mrb[24].mxu0  ;;  %v5869_v46 = vld [vmem:[#allocation3 + $0x98] sm:$0xff] }
 0x287   : > { %7647 = vst [vmem:[#allocation10_spill] sm:$0xff] %v5841_v9  ;;  %v1878_v22 = vadd.f32 %v1846_v5, %v1778_v3  ;;  %2284 = vrot.lane.b32.xlu1 %v5841_v9, %s4958_s17  ;;  %v2178_v17 = vadd.f32 %v2146_v19, %v2078_v38  ;;  %v1548_v27 = vmul.f32 %v5760_v35, %v5539_v11  ;;  %v1264_v45 = vpop.f32.mrb[25].mxu0 }
 0x288   : > { %v1480_v21 = vadd.f32 %v1448_v25, %v1380_v56  ;;  %v1648_v54 = vmul.f32 %v5821_v51, %v5557_v36  ;;  %v1779_v24 = vadd.f32 %v1747_v2, %v1679_v0  ;;  %v1847_v28 = vmul.f32 %v2110_v14, %v5562_v50  ;;  %v4522_v5 = vpop.f32.mrb[26].mxu0 }
 0x289   : > { %v1979_v43 = vadd.f32 %v1947_v1, %v1878_v22  ;;  %v1948_v30 = vmul.f32 %v5560_v44, %v5843_v61  ;;  %v5865_v19 = vadd.f32 %v5668_v16, %v2178_v17  ;;  %v2048_v35 = vmul.f32 %v5554_v32, %v5628_v41  ;;  %v1267_v38 = vpop.f32.mrb[27].mxu0 }
 0x28a   : > { %v1580_v3 = vadd.f32 %v1548_v27, %v1480_v21  ;;  %v1381_v1 = vmul.f32 %v5775_v63, %v5531_v62  ;;  %v1879_v25 = vadd.f32 %v1847_v28, %v1779_v24  ;;  %v1449_v22 = vmul.f32 %v5533_v58, %v5633_v60 }
 0x28b   : > { %7648 = vst [vmem:[#allocation11_spill] sm:$0xff] %v5865_v19  ;;  %v2079_v56 = vadd.f32 %v2047_v33, %v1979_v43  ;;  %v1549_v0 = vmul.f32 %v2110_v14, %v5539_v11  ;;  %2286 = vrot.lane.b32.xlu0 %v5865_v19, %s4958_s17  ;;  %v2148_v2 = vmul.f32 %v5564_v37, %v5862_v59  ;;  %v2122_v39 = vld [vmem:[#allocation3 + $0x10a] sm:$0xff] }
 0x28c   : > { %v1680_v17 = vadd.f32 %v1648_v54, %v1580_v3  ;;  %v1748_v21 = vmul.f32 %v5552_v31, %v5644_v53  ;;  %v1848_v63 = vmul.f32 %v5833_v40, %v5562_v50  ;;  %v1980_v27 = vadd.f32 %v1948_v30, %v1879_v25  ;;  %v6097_v8 = vld [vmem:[#allocation3 + $0x110] sm:$0xff] }
 0x28d   : > { %v2179_v33 = vadd.f32 %v2147_v20, %v2079_v56  ;;  %v1949_v60 = vmul.f32 %v5560_v44, %v5869_v46  ;;  %v1481_v43 = vadd.f32 %v1449_v22, %v1381_v1  ;;  %v2049_v24 = vmul.f32 %v5554_v32, %v5637_v55  ;;  %v2113_v20 = vld [vmem:[#allocation3 + $0x9a] sm:$0xff]  ;;  %v1914_v56 = vld [vmem:[#allocation3 + $0xa8] sm:$0xff] }
 0x28e   : > { %v1780_v14 = vadd.f32 %v1748_v21, %v1680_v17  ;;  %v1649_v28 = vmul.f32 %v5843_v61, %v5557_v36  ;;  %v5891_v54 = vadd.f32 %v4521_v42, %v5535_v7  ;;  %v2080_v57 = vadd.f32 %v2048_v35, %v1980_v27  ;;  %v5899_v1 = vpop.f32.mrb[28].mxu0 }
 0x28f   : > { %v5894_v3 = vadd.f32 %v5668_v16, %v2179_v33  ;;  %v1581_v30 = vadd.f32 %v1549_v0, %v1481_v43  ;;  %v5897_v25 = vadd.f32 %v5535_v7, %v1264_v45  ;;  %v5903_v17 = vadd.f32 %v4522_v5, %v5535_v7  ;;  %v5910_v21 = vpop.f32.mrb[29].mxu0 }
 0x290   : > { %v1880_v22 = vadd.f32 %v1848_v63, %v1780_v14  ;;  %1329 = vst [vmem:[#allocation3 + $0x151] sm:$0xff] %v5891_v54  ;;  %v5906_v42 = vadd.f32 %v5535_v7, %v1267_v38  ;;  %v1382_v35 = vmul.f32 %v5821_v51, %v5531_v62  ;;  %v2180_v45 = vadd.f32 %v2148_v2, %v2080_v57  ;;  %v4526_v38 = vpop.f32.mrb[30].mxu0 }
 0x291   : > { %7649 = vst [vmem:[#allocation12_spill] sm:$0xff] %v5894_v3  ;;  %2288 = vrot.lane.b32.xlu1 %v5894_v3, %s4958_s17  ;;  %v1681_v0 = vadd.f32 %v1649_v28, %v1581_v30  ;;  %v1749_v63 = vmul.f32 %v5552_v31, %v5628_v41  ;;  %1327 = vst [vmem:[#allocation3 + $0x139] sm:$0xff] %v5897_v25  ;;  %v1450_v5 = vmul.f32 %v5533_v58, %v5644_v53  ;;  %v1283_v57 = vpop.f32.mrb[31].mxu0  ;;  %v2114_v28 = vld [vmem:[#allocation3 + $0xaa] sm:$0xff] }
 0x292   : > { %v1981_v33 = vadd.f32 %v1949_v60, %v1880_v22  ;;  %v2149_v27 = vmul.f32 %v5564_v37, %v2113_v20  ;;  %v1849_v51 = vmul.f32 %v5862_v59, %v5562_v50  ;;  %v1950_v43 = vmul.f32 %v5560_v44, %v1914_v56  ;;  %1330 = vst [vmem:[#allocation3 + $0x159] sm:$0xff] %v5903_v17 }
 0x293   : > { %1328 = vst [vmem:[#allocation3 + $0x141] sm:$0xff] %v5906_v42  ;;  %v5926_v2 = vadd.f32 %v5668_v16, %v2180_v45  ;;  %v1781_v14 = vadd.f32 %v1749_v63, %v1681_v0  ;;  %v1482_v53 = vadd.f32 %v1450_v5, %v1382_v35  ;;  %v1550_v60 = vmul.f32 %v5833_v40, %v5539_v11  ;;  %v1915_v63 = vld [vmem:[#allocation3 + $0xb0] sm:$0xff] }
 0x294   : > { %v2081_v30 = vadd.f32 %v2049_v24, %v1981_v33  ;;  %v2050_v22 = vmul.f32 %v5554_v32, %v5686_v26  ;;  %v1650_v19 = vmul.f32 %v5869_v46, %v5557_v36  ;;  %v1383_v3 = vmul.f32 %v5843_v61, %v5531_v62 }
 0x295   : > { %7650 = vst [vmem:[#allocation13_spill] sm:$0xff] %v5926_v2  ;;  %2290 = vrot.lane.b32.xlu0 %v5926_v2, %s4958_s17  ;;  %v1881_v45 = vadd.f32 %v1849_v51, %v1781_v14  ;;  %v1582_v0 = vadd.f32 %v1550_v60, %v1482_v53  ;;  %v1451_v35 = vmul.f32 %v5533_v58, %v5628_v41  ;;  %v2115_v2 = vld [vmem:[#allocation3 + $0xb2] sm:$0xff] }
 0x296   : > { %v1551_v40 = vmul.f32 %v5862_v59, %v5539_v11  ;;  %v2181_v24 = vadd.f32 %v2149_v27, %v2081_v30  ;;  %v2150_v5 = vmul.f32 %v5564_v37, %v2114_v28  ;;  %v1750_v33 = vmul.f32 %v5552_v31, %v5637_v55 }
 0x297   : > { %v1850_v61 = vmul.f32 %v2113_v20, %v5562_v50  ;;  %v1982_v18 = vadd.f32 %v1950_v43, %v1881_v45  ;;  %v1682_v9 = vadd.f32 %v1650_v19, %v1582_v0  ;;  %v1483_v51 = vadd.f32 %v1451_v35, %v1383_v3  ;;  %v5955_v43 = vld [vmem:[#allocation3 + $0xc0] sm:$0xff] }
 0x298   : > { %v1651_v14 = vmul.f32 %v1914_v56, %v5557_v36  ;;  %v5948_v53 = vadd.f32 %v5668_v16, %v2181_v24  ;;  %v1951_v41 = vmul.f32 %v5560_v44, %v1915_v63  ;;  %v2051_v59 = vmul.f32 %v5554_v32, %v5703_v49 }
 0x299   : > { %v1384_v27 = vmul.f32 %v5869_v46, %v5531_v62  ;;  %v2082_v60 = vadd.f32 %v2050_v22, %v1982_v18  ;;  %v1782_v30 = vadd.f32 %v1750_v33, %v1682_v9  ;;  %v1583_v48 = vadd.f32 %v1551_v40, %v1483_v51  ;;  %v5980_v33 = vld [vmem:[#allocation3 + $0xd8] sm:$0xff] }
 0x29a   : > { %7651 = vst [vmem:[#allocation14_spill] sm:$0xff] %v5948_v53  ;;  %v1452_v19 = vmul.f32 %v5533_v58, %v5637_v55  ;;  %2292 = vrot.lane.b32.xlu1 %v5948_v53, %s4958_s17  ;;  %v2151_v3 = vmul.f32 %v5564_v37, %v2115_v2  ;;  %v1751_v56 = vmul.f32 %v5552_v31, %v5686_v26 }
 0x29b   : > { %v1552_v45 = vmul.f32 %v2113_v20, %v5539_v11  ;;  %v1652_v46 = vmul.f32 %v1915_v63, %v5557_v36  ;;  %v2182_v18 = vadd.f32 %v2150_v5, %v2082_v60  ;;  %v1882_v9 = vadd.f32 %v1850_v61, %v1782_v30  ;;  %v5978_v5 = vld [vmem:[#allocation3 + $0xc2] sm:$0xff] }
 0x29c   : > { %v1683_v22 = vadd.f32 %v1651_v14, %v1583_v48  ;;  %v1484_v0 = vadd.f32 %v1452_v19, %v1384_v27  ;;  %v1851_v35 = vmul.f32 %v2114_v28, %v5562_v50  ;;  %v1952_v55 = vmul.f32 %v5560_v44, %v5955_v43  ;;  %v5997_v27 = vld [vmem:[#allocation3 + $0xc8] sm:$0xff] }
 0x29d   : > { %v1752_v40 = vmul.f32 %v5552_v31, %v5703_v49  ;;  %v5973_v24 = vadd.f32 %v5899_v1, %v5535_v7  ;;  %v5976_v26 = vadd.f32 %v5668_v16, %v2182_v18  ;;  %v1983_v20 = vadd.f32 %v1951_v41, %v1882_v9  ;;  %v1920_v9 = vld [vmem:[#allocation3 + $0xf0] sm:$0xff] }
 0x29e   : > { %v1783_v63 = vadd.f32 %v1751_v56, %v1683_v22  ;;  %v1584_v48 = vadd.f32 %v1552_v45, %v1484_v0  ;;  %v5985_v28 = vadd.f32 %v5535_v7, %v5910_v21  ;;  %v5988_v49 = vadd.f32 %v4526_v38, %v5535_v7  ;;  %v6011_v56 = vld [vmem:[#allocation3 + $0xca] sm:$0xff]  ;;  %v6013_v45 = vld [vmem:[#allocation3 + $0xda] sm:$0xff] }
 0x29f   : > { %7652 = vst [vmem:[#allocation15_spill] sm:$0xff] %v5976_v26  ;;  %1333 = vst [vmem:[#allocation3 + $0x181] sm:$0xff] %v5973_v24  ;;  %v5991_v1 = vadd.f32 %v5535_v7, %v1283_v57  ;;  %v1387_v61 = vmul.f32 %v5955_v43, %v5531_v62  ;;  %2294 = vrot.lane.b32.xlu0 %v5976_v26, %s4958_s17  ;;  %v2083_v51 = vadd.f32 %v2051_v59, %v1983_v20  ;;  %v6071_v26 = vld [vmem:[#allocation3 + $0x108] sm:$0xff] }
 0x2a0   : > { %v1883_v14 = vadd.f32 %v1851_v35, %v1783_v63  ;;  %v1684_v41 = vadd.f32 %v1652_v46, %v1584_v48  ;;  %v1455_v21 = vmul.f32 %v5533_v58, %v5679_v6  ;;  %v2052_v38 = vmul.f32 %v5554_v32, %v5679_v6  ;;  %1331 = vst [vmem:[#allocation3 + $0x169] sm:$0xff] %v5985_v28 }
 0x2a1   : > { %v1852_v7 = vmul.f32 %v2115_v2, %v5562_v50  ;;  %1334 = vst [vmem:[#allocation3 + $0x189] sm:$0xff] %v5988_v49  ;;  %1332 = vst [vmem:[#allocation3 + $0x171] sm:$0xff] %v5991_v1  ;;  %v1555_v57 = vmul.f32 %v5978_v5, %v5539_v11  ;;  %v1655_v59 = vmul.f32 %v5557_v36, %v5980_v33 }
 0x2a2   : > { %v2183_v60 = vadd.f32 %v2151_v3, %v2083_v51  ;;  %v1984_v30 = vadd.f32 %v1952_v55, %v1883_v14  ;;  %v1784_v19 = vadd.f32 %v1752_v40, %v1684_v41  ;;  %v1487_v6 = vadd.f32 %v1455_v21, %v1387_v61  ;;  %v6026_v40 = vld [vmem:[#allocation3 + $0xe0] sm:$0xff] }
 0x2a3   : > { %v2152_v2 = vmul.f32 %v5564_v37, %v5978_v5  ;;  %v1953_v46 = vmul.f32 %v5560_v44, %v5997_v27  ;;  %v2053_v18 = vmul.f32 %v5554_v32, %v5696_v10  ;;  %v1388_v3 = vmul.f32 %v5997_v27, %v5531_v62 }
 0x2a4   : > { %v6024_v22 = vadd.f32 %v5668_v16, %v2183_v60  ;;  %v2084_v0 = vadd.f32 %v2052_v38, %v1984_v30  ;;  %v1884_v35 = vadd.f32 %v1852_v7, %v1784_v19  ;;  %v1587_v55 = vadd.f32 %v1555_v57, %v1487_v6  ;;  %v2120_v38 = vld [vmem:[#allocation3 + $0xf2] sm:$0xff] }
 0x2a5   : > { %v2153_v20 = vmul.f32 %v5564_v37, %v6011_v56  ;;  %v1755_v63 = vmul.f32 %v5552_v31, %v5747_v4  ;;  %v1855_v48 = vmul.f32 %v5562_v50, %v6013_v45  ;;  %v1456_v61 = vmul.f32 %v5533_v58, %v5696_v10  ;;  %v6045_v10 = vld [vmem:[#allocation3 + $0xe2] sm:$0xff] }
 0x2a6   : > { %7653 = vst [vmem:[#allocation16_spill] sm:$0xff] %v6024_v22  ;;  %2296 = vrot.lane.b32.xlu1 %v6024_v22, %s4958_s17  ;;  %v2184_v51 = vadd.f32 %v2152_v2, %v2084_v0  ;;  %v1985_v14 = vadd.f32 %v1953_v46, %v1884_v35  ;;  %v1687_v41 = vadd.f32 %v1655_v59, %v1587_v55  ;;  %v6050_v2 = vld [vmem:[#allocation3 + $0xf8] sm:$0xff] }
 0x2a7   : > { %v1956_v21 = vmul.f32 %v5560_v44, %v1920_v9  ;;  %v2056_v7 = vmul.f32 %v5554_v32, %v5740_v13  ;;  %v1488_v57 = vadd.f32 %v1456_v61, %v1388_v3  ;;  %v1556_v60 = vmul.f32 %v6011_v56, %v5539_v11  ;;  %v6055_v35 = vld [vmem:[#allocation3 + $0xfa] sm:$0xff] }
 0x2a8   : > { %v1656_v30 = vmul.f32 %v5557_v36, %v6026_v40  ;;  %v6048_v19 = vadd.f32 %v5668_v16, %v2184_v51  ;;  %v2085_v6 = vadd.f32 %v2053_v18, %v1985_v14  ;;  %v1787_v59 = vadd.f32 %v1755_v63, %v1687_v41 }
 0x2a9   : > { %v1389_v46 = vmul.f32 %v5980_v33, %v5531_v62  ;;  %v2156_v3 = vmul.f32 %v5564_v37, %v2120_v38  ;;  %v1588_v0 = vadd.f32 %v1556_v60, %v1488_v57  ;;  %v1457_v55 = vmul.f32 %v5533_v58, %v5747_v4 }
 0x2aa   : > { %7654 = vst [vmem:[#allocation17_spill] sm:$0xff] %v6048_v19  ;;  %v1557_v61 = vmul.f32 %v6013_v45, %v5539_v11  ;;  %2298 = vrot.lane.b32.xlu0 %v6048_v19, %s4958_s17  ;;  %v2185_v18 = vadd.f32 %v2153_v20, %v2085_v6  ;;  %v1887_v63 = vadd.f32 %v1855_v48, %v1787_v59 }
 0x2ab   : > { %v1756_v51 = vmul.f32 %v5552_v31, %v5764_v15  ;;  %v1856_v14 = vmul.f32 %v5562_v50, %v6045_v10  ;;  %v1688_v41 = vadd.f32 %v1656_v30, %v1588_v0  ;;  %v1957_v57 = vmul.f32 %v5560_v44, %v6050_v2 }
 0x2ac   : > { %v2057_v4 = vmul.f32 %v5554_v32, %v5756_v52  ;;  %v1489_v60 = vadd.f32 %v1457_v55, %v1389_v46  ;;  %v6074_v19 = vadd.f32 %v5668_v16, %v2185_v18  ;;  %v1988_v20 = vadd.f32 %v1956_v21, %v1887_v63 }
 0x2ad   : > { %v2157_v48 = vmul.f32 %v5564_v37, %v6055_v35  ;;  %v1390_v6 = vmul.f32 %v6026_v40, %v5531_v62  ;;  %v1788_v30 = vadd.f32 %v1756_v51, %v1688_v41  ;;  %v1657_v0 = vmul.f32 %v1920_v9, %v5557_v36 }
 0x2ae   : > { %7655 = vst [vmem:[#allocation18_spill] sm:$0xff] %v6074_v19  ;;  %v1589_v59 = vadd.f32 %v1557_v61, %v1489_v60  ;;  %v1458_v22 = vmul.f32 %v5533_v58, %v5764_v15  ;;  %2300 = vrot.lane.b32.xlu1 %v6074_v19, %s4958_s17  ;;  %v2088_v46 = vadd.f32 %v2056_v7, %v1988_v20 }
 0x2af   : > { %v1757_v21 = vmul.f32 %v5552_v31, %v5740_v13  ;;  %v1857_v55 = vmul.f32 %v2120_v38, %v5562_v50  ;;  %v1958_v18 = vmul.f32 %v5560_v44, %v6071_v26  ;;  %v1888_v63 = vadd.f32 %v1856_v14, %v1788_v30 }
 0x2b0   : > { %v1689_v51 = vadd.f32 %v1657_v0, %v1589_v59  ;;  %v1490_v61 = vadd.f32 %v1458_v22, %v1390_v6  ;;  %v1558_v41 = vmul.f32 %v6045_v10, %v5539_v11  ;;  %v2188_v60 = vadd.f32 %v2156_v3, %v2088_v46  ;;  %v6109_v0 = vld [vmem:[#allocation3 + $0x112] sm:$0xff] }
 0x2b1   : > { %v2058_v15 = vmul.f32 %v5554_v32, %v5809_v47  ;;  %v1658_v7 = vmul.f32 %v6050_v2, %v5557_v36  ;;  %v1391_v20 = vmul.f32 %v1920_v9, %v5531_v62  ;;  %v1989_v19 = vadd.f32 %v1957_v57, %v1888_v63 }
 0x2b2   : > { %v1789_v53 = vadd.f32 %v1757_v21, %v1689_v51  ;;  %v1590_v34 = vadd.f32 %v1558_v41, %v1490_v61  ;;  %v1459_v22 = vmul.f32 %v5533_v58, %v5740_v13  ;;  %v6102_v14 = vadd.f32 %v5668_v16, %v2188_v60  ;;  %v1924_v61 = vld [vmem:[#allocation3 + $0x120] sm:$0xff] }
 0x2b3   : > { %v1758_v3 = vmul.f32 %v5552_v31, %v5756_v52  ;;  %v1559_v6 = vmul.f32 %v2120_v38, %v5539_v11  ;;  %v1659_v9 = vmul.f32 %v6071_v26, %v5557_v36  ;;  %v2089_v57 = vadd.f32 %v2057_v4, %v1989_v19 }
 0x2b4   : > { %v1889_v30 = vadd.f32 %v1857_v55, %v1789_v53  ;;  %v1690_v59 = vadd.f32 %v1658_v7, %v1590_v34  ;;  %v1491_v46 = vadd.f32 %v1459_v22, %v1391_v20  ;;  %2306 = vrot.lane.b32.xlu0 %v6102_v14, %s4958_s17  ;;  %v2158_v13 = vmul.f32 %v5564_v37, %v2122_v39 }
 0x2b5   : > { %v1858_v21 = vmul.f32 %v6055_v35, %v5562_v50  ;;  %v1959_v38 = vmul.f32 %v5560_v44, %v6097_v8  ;;  %v2059_v63 = vmul.f32 %v5554_v32, %v5825_v23  ;;  %v2189_v19 = vadd.f32 %v2157_v48, %v2089_v57 }
 0x2b6   : > { %v1990_v53 = vadd.f32 %v1958_v18, %v1889_v30  ;;  %v1790_v34 = vadd.f32 %v1758_v3, %v1690_v59  ;;  %v1591_v4 = vadd.f32 %v1559_v6, %v1491_v46  ;;  %v2159_v55 = vmul.f32 %v5564_v37, %v6109_v0 }
 0x2b7   : > { %v1759_v51 = vmul.f32 %v5552_v31, %v5809_v47  ;;  %v1392_v41 = vmul.f32 %v6050_v2, %v5531_v62  ;;  %v1460_v60 = vmul.f32 %v5533_v58, %v5756_v52  ;;  %v6129_v7 = vadd.f32 %v5668_v16, %v2189_v19 }
 0x2b8   : > { %v2090_v48 = vadd.f32 %v2058_v15, %v1990_v53  ;;  %v1890_v18 = vadd.f32 %v1858_v21, %v1790_v34  ;;  %v1691_v20 = vadd.f32 %v1659_v9, %v1591_v4  ;;  %v1859_v22 = vmul.f32 %v2122_v39, %v5562_v50  ;;  %v2124_v15 = vld [vmem:[#allocation3 + $0x122] sm:$0xff] }
 0x2b9   : > { %v1492_v3 = vadd.f32 %v1460_v60, %v1392_v41  ;;  %v1560_v6 = vmul.f32 %v6055_v35, %v5539_v11  ;;  %v1660_v57 = vmul.f32 %v6097_v8, %v5557_v36  ;;  %2308 = vrot.lane.b32.xlu1 %v6129_v7, %s4958_s17  ;;  %v1960_v59 = vmul.f32 %v5560_v44, %v1924_v61  ;;  %v1925_v21 = vld [vmem:[#allocation3 + $0x128] sm:$0xff] }
 0x2ba   : > { %v2190_v2 = vadd.f32 %v2158_v13, %v2090_v48  ;;  %v1991_v52 = vadd.f32 %v1959_v38, %v1890_v18  ;;  %v1791_v30 = vadd.f32 %v1759_v51, %v1691_v20  ;;  %v2060_v9 = vmul.f32 %v5554_v32, %v5804_v12  ;;  %v2125_v18 = vld [vmem:[#allocation3 + $0x12a] sm:$0xff] }
 0x2bb   : > { %v1592_v46 = vadd.f32 %v1560_v6, %v1492_v3  ;;  %v1393_v35 = vmul.f32 %v6071_v26, %v5531_v62  ;;  %v1461_v19 = vmul.f32 %v5533_v58, %v5809_v47  ;;  %v1561_v34 = vmul.f32 %v2122_v39, %v5539_v11 }
 0x2bc   : > { %v6146_v53 = vadd.f32 %v5668_v16, %v2190_v2  ;;  %v2091_v13 = vadd.f32 %v2059_v63, %v1991_v52  ;;  %v1891_v38 = vadd.f32 %v1859_v22, %v1791_v30  ;;  %v2160_v4 = vmul.f32 %v5564_v37, %v2124_v15  ;;  %v6163_v2 = vld [vmem:[#allocation3 + $0x138] sm:$0xff] }
 0x2bd   : > { %v1692_v51 = vadd.f32 %v1660_v57, %v1592_v46  ;;  %v1760_v41 = vmul.f32 %v5552_v31, %v5825_v23  ;;  %v1493_v60 = vadd.f32 %v1461_v19, %v1393_v35  ;;  %v1860_v47 = vmul.f32 %v6109_v0, %v5562_v50 }
 0x2be   : > { %2310 = vrot.lane.b32.xlu0 %v6146_v53, %s4958_s17  ;;  %v2191_v26 = vadd.f32 %v2159_v55, %v2091_v13  ;;  %v1992_v48 = vadd.f32 %v1960_v59, %v1891_v38  ;;  %v1961_v63 = vmul.f32 %v5560_v44, %v1925_v21  ;;  %v2061_v39 = vmul.f32 %v5554_v32, %v5817_v29 }
 0x2bf   : > { %v1792_v20 = vadd.f32 %v1760_v41, %v1692_v51  ;;  %v1593_v22 = vadd.f32 %v1561_v34, %v1493_v60  ;;  %v1661_v3 = vmul.f32 %v1924_v61, %v5557_v36  ;;  %v1394_v55 = vmul.f32 %v6097_v8, %v5531_v62  ;;  %v2126_v41 = vld [vmem:[#allocation3 + $0x13a] sm:$0xff] }
 0x2c0   : > { %v6161_v6 = vadd.f32 %v5668_v16, %v2191_v26  ;;  %v2092_v57 = vadd.f32 %v2060_v9, %v1992_v48  ;;  %v1462_v52 = vmul.f32 %v5533_v58, %v5825_v23  ;;  %v2161_v59 = vmul.f32 %v5564_v37, %v2125_v18 }
 0x2c1   : > { %v1892_v30 = vadd.f32 %v1860_v47, %v1792_v20  ;;  %v1693_v46 = vadd.f32 %v1661_v3, %v1593_v22  ;;  %v1761_v35 = vmul.f32 %v5552_v31, %v5804_v12  ;;  %v1861_v9 = vmul.f32 %v2124_v15, %v5562_v50 }
 0x2c2   : > { %2312 = vrot.lane.b32.xlu1 %v6161_v6, %s4958_s17  ;;  %v2192_v19 = vadd.f32 %v2160_v4, %v2092_v57  ;;  %v1494_v13 = vadd.f32 %v1462_v52, %v1394_v55  ;;  %v1562_v8 = vmul.f32 %v6109_v0, %v5539_v11  ;;  %v1962_v23 = vmul.f32 %v5560_v44, %v6163_v2  ;;  %v1927_v0 = vld [vmem:[#allocation3 + $0x140] sm:$0xff] }
 0x2c3   : > { %v1993_v38 = vadd.f32 %v1961_v63, %v1892_v30  ;;  %v1793_v34 = vadd.f32 %v1761_v35, %v1693_v46  ;;  %v2062_v51 = vmul.f32 %v5554_v32, %v5897_v25  ;;  %v1662_v4 = vmul.f32 %v1925_v21, %v5557_v36  ;;  %v2127_v30 = vld [vmem:[#allocation3 + $0x142] sm:$0xff] }
 0x2c4   : > { %v6182_v60 = vadd.f32 %v5668_v16, %v2192_v19  ;;  %v1594_v26 = vadd.f32 %v1562_v8, %v1494_v13  ;;  %v1395_v48 = vmul.f32 %v1924_v61, %v5531_v62  ;;  %v1463_v63 = vmul.f32 %v5533_v58, %v5804_v12 }
 0x2c5   : > { %v2093_v47 = vadd.f32 %v2061_v39, %v1993_v38  ;;  %v1893_v20 = vadd.f32 %v1861_v9, %v1793_v34  ;;  %v1563_v22 = vmul.f32 %v2124_v15, %v5539_v11  ;;  %v2162_v3 = vmul.f32 %v5564_v37, %v2126_v41 }
 0x2c6   : > { %2314 = vrot.lane.b32.xlu0 %v6182_v60, %s4958_s17  ;;  %v1694_v57 = vadd.f32 %v1662_v4, %v1594_v26  ;;  %v1762_v55 = vmul.f32 %v5552_v31, %v5817_v29  ;;  %v1862_v52 = vmul.f32 %v2125_v18, %v5562_v50  ;;  %v1495_v46 = vadd.f32 %v1463_v63, %v1395_v48 }
 0x2c7   : > { %v2193_v61 = vadd.f32 %v2161_v59, %v2093_v47  ;;  %v1994_v39 = vadd.f32 %v1962_v23, %v1893_v20  ;;  %v1663_v12 = vmul.f32 %v6163_v2, %v5557_v36  ;;  %v1963_v15 = vmul.f32 %v5560_v44, %v1927_v0  ;;  %v1928_v59 = vld [vmem:[#allocation3 + $0x150] sm:$0xff] }
 0x2c8   : > { %v1794_v35 = vadd.f32 %v1762_v55, %v1694_v57  ;;  %v2063_v19 = vmul.f32 %v5554_v32, %v5906_v42  ;;  %v1396_v9 = vmul.f32 %v1925_v21, %v5531_v62  ;;  %v1595_v38 = vadd.f32 %v1563_v22, %v1495_v46  ;;  %v2128_v20 = vld [vmem:[#allocation3 + $0x152] sm:$0xff] }
 0x2c9   : > { %v6202_v13 = vadd.f32 %v5668_v16, %v2193_v61  ;;  %v2094_v8 = vadd.f32 %v2062_v51, %v1994_v39  ;;  %v1464_v34 = vmul.f32 %v5533_v58, %v5817_v29  ;;  %v2163_v26 = vmul.f32 %v5564_v37, %v2127_v30  ;;  %v6220_v39 = vld [vmem:[#allocation3 + $0x158] sm:$0xff] }
 0x2ca   : > { %v1894_v23 = vadd.f32 %v1862_v52, %v1794_v35  ;;  %v1763_v4 = vmul.f32 %v5552_v31, %v5897_v25  ;;  %v1564_v48 = vmul.f32 %v2125_v18, %v5539_v11  ;;  %v1695_v47 = vadd.f32 %v1663_v12, %v1595_v38  ;;  %v6225_v35 = vld [vmem:[#allocation3 + $0x15a] sm:$0xff] }
 0x2cb   : > { %2316 = vrot.lane.b32.xlu1 %v6202_v13, %s4958_s17  ;;  %v2194_v21 = vadd.f32 %v2162_v3, %v2094_v8  ;;  %v1496_v51 = vadd.f32 %v1464_v34, %v1396_v9  ;;  %v1664_v63 = vmul.f32 %v1927_v0, %v5557_v36  ;;  %v1863_v29 = vmul.f32 %v2126_v41, %v5562_v50 }
 0x2cc   : > { %v1995_v22 = vadd.f32 %v1963_v15, %v1894_v23  ;;  %v1964_v57 = vmul.f32 %v5560_v44, %v1928_v59  ;;  %v2064_v55 = vmul.f32 %v5554_v32, %v5891_v54  ;;  %v1795_v18 = vadd.f32 %v1763_v4, %v1695_v47  ;;  %v6241_v47 = vld [vmem:[#allocation3 + $0x168] sm:$0xff] }
 0x2cd   : > { %v6218_v52 = vadd.f32 %v5668_v16, %v2194_v21  ;;  %v1596_v61 = vadd.f32 %v1564_v48, %v1496_v51  ;;  %v1397_v3 = vmul.f32 %v6163_v2, %v5531_v62  ;;  %v2164_v12 = vmul.f32 %v5564_v37, %v2128_v20 }
 0x2ce   : > { %v2095_v46 = vadd.f32 %v2063_v19, %v1995_v22  ;;  %v1465_v15 = vmul.f32 %v5533_v58, %v5897_v25  ;;  %v1565_v9 = vmul.f32 %v2126_v41, %v5539_v11  ;;  %v1895_v8 = vadd.f32 %v1863_v29, %v1795_v18 }
 0x2cf   : > { %2318 = vrot.lane.b32.xlu0 %v6218_v52, %s4958_s17  ;;  %v1696_v38 = vadd.f32 %v1664_v63, %v1596_v61  ;;  %v1764_v34 = vmul.f32 %v5552_v31, %v5906_v42  ;;  %v1864_v2 = vmul.f32 %v2127_v30, %v5562_v50  ;;  %v1965_v23 = vmul.f32 %v5560_v44, %v6220_v39 }
 0x2d0   : > { %v2195_v19 = vadd.f32 %v2163_v26, %v2095_v46  ;;  %v2065_v4 = vmul.f32 %v5554_v32, %v5903_v17  ;;  %v1497_v25 = vadd.f32 %v1465_v15, %v1397_v3  ;;  %v1996_v48 = vadd.f32 %v1964_v57, %v1895_v8 }
 0x2d1   : > { %v1796_v41 = vadd.f32 %v1764_v34, %v1696_v38  ;;  %v2165_v21 = vmul.f32 %v5564_v37, %v6225_v35  ;;  %v1398_v51 = vmul.f32 %v1927_v0, %v5531_v62  ;;  %v1665_v22 = vmul.f32 %v1928_v59, %v5557_v36  ;;  %v2130_v34 = vld [vmem:[#allocation3 + $0x16a] sm:$0xff] }
 0x2d2   : > { %v6245_v63 = vadd.f32 %v5668_v16, %v2195_v19  ;;  %v1597_v26 = vadd.f32 %v1565_v9, %v1497_v25  ;;  %v1466_v29 = vmul.f32 %v5533_v58, %v5906_v42  ;;  %v2096_v18 = vadd.f32 %v2064_v55, %v1996_v48  ;;  %v6262_v19 = vld [vmem:[#allocation3 + $0x170] sm:$0xff] }
 0x2d3   : > { %v1896_v61 = vadd.f32 %v1864_v2, %v1796_v41  ;;  %v1765_v57 = vmul.f32 %v5552_v31, %v5891_v54  ;;  %v1865_v3 = vmul.f32 %v2128_v20, %v5562_v50  ;;  %v1966_v16 = vmul.f32 %v5560_v44, %v6241_v47  ;;  %v6268_v41 = vld [vmem:[%s5650_s16] ss:$0 sm:$0xff]  ;;  %s3314_s16 = scalar_lea.vmem %s7604_s11, %s4939_s25 }
 0x2d4   : > { %2320 = vrot.lane.b32.xlu1 %v6245_v63, %s4958_s17  ;;  %v1697_v0 = vadd.f32 %v1665_v22, %v1597_v26  ;;  %v1498_v46 = vadd.f32 %v1466_v29, %v1398_v51  ;;  %v1566_v15 = vmul.f32 %v2127_v30, %v5539_v11  ;;  %v2196_v9 = vadd.f32 %v2164_v12, %v2096_v18  ;;  %v6276_v29 = vld [vmem:[#allocation3 + $0x172] sm:$0xff] }
 0x2d5   : > { %v1997_v42 = vadd.f32 %v1965_v23, %v1896_v61  ;;  %v2066_v55 = vmul.f32 %v5554_v32, %v5985_v28  ;;  %v1666_v8 = vmul.f32 %v6220_v39, %v5557_v36  ;;  %v1399_v25 = vmul.f32 %v1928_v59, %v5531_v62 }
 0x2d6   : > { %v1797_v38 = vadd.f32 %v1765_v57, %v1697_v0  ;;  %v1598_v2 = vadd.f32 %v1566_v15, %v1498_v46  ;;  %v1467_v48 = vmul.f32 %v5533_v58, %v5891_v54  ;;  %v6271_v30 = vadd.f32 %v6268_v41, %v2196_v9  ;;  %v1932_v9 = vld [vmem:[#allocation3 + $0x180] sm:$0xff] }
 0x2d7   : > { %v2097_v12 = vadd.f32 %v2065_v4, %v1997_v42  ;;  %v1766_v23 = vmul.f32 %v5552_v31, %v5903_v17  ;;  %v1567_v51 = vmul.f32 %v2128_v20, %v5539_v11  ;;  %v1667_v59 = vmul.f32 %v6241_v47, %v5557_v36 }
 0x2d8   : > { %v1897_v26 = vadd.f32 %v1865_v3, %v1797_v38  ;;  %v1698_v22 = vadd.f32 %v1666_v8, %v1598_v2  ;;  %v1499_v18 = vadd.f32 %v1467_v48, %v1399_v25  ;;  %2322 = vrot.lane.b32.xlu0 %v6271_v30, %s4958_s17  ;;  %v2166_v61 = vmul.f32 %v5564_v37, %v2130_v34 }
 0x2d9   : > { %v2197_v54 = vadd.f32 %v2165_v21, %v2097_v12  ;;  %v1866_v4 = vmul.f32 %v6225_v35, %v5562_v50  ;;  %v1967_v20 = vmul.f32 %v5560_v44, %v6262_v19  ;;  %v2067_v0 = vmul.f32 %v5554_v32, %v5991_v1 }
 0x2da   : > { %v1998_v57 = vadd.f32 %v1966_v16, %v1897_v26  ;;  %v1798_v3 = vadd.f32 %v1766_v23, %v1698_v22  ;;  %v1599_v46 = vadd.f32 %v1567_v51, %v1499_v18  ;;  %v2167_v21 = vmul.f32 %v5564_v37, %v6276_v29  ;;  %v2132_v22 = vld [vmem:[#allocation3 + $0x182] sm:$0xff] }
 0x2db   : > { %v6290_v15 = vadd.f32 %v6268_v41, %v2197_v54  ;;  %v1400_v42 = vmul.f32 %v6220_v39, %v5531_v62  ;;  %v1468_v8 = vmul.f32 %v5533_v58, %v5903_v17  ;;  %v1767_v25 = vmul.f32 %v5552_v31, %v5985_v28  ;;  %v1933_v54 = vld [vmem:[#allocation3 + $0x188] sm:$0xff] }
 0x2dc   : > { %v2098_v38 = vadd.f32 %v2066_v55, %v1998_v57  ;;  %v1898_v16 = vadd.f32 %v1866_v4, %v1798_v3  ;;  %v1699_v2 = vadd.f32 %v1667_v59, %v1599_v46  ;;  %v1867_v48 = vmul.f32 %v2130_v34, %v5562_v50 }
 0x2dd   : > { %2324 = vrot.lane.b32.xlu1 %v6290_v15, %s4958_s17  ;;  %v1500_v12 = vadd.f32 %v1468_v8, %v1400_v42  ;;  %v1568_v23 = vmul.f32 %v6225_v35, %v5539_v11  ;;  %v1668_v39 = vmul.f32 %v6262_v19, %v5557_v36  ;;  %v1968_v26 = vmul.f32 %v5560_v44, %v1932_v9 }
 0x2de   : > { %v2198_v51 = vadd.f32 %v2166_v61, %v2098_v38  ;;  %v1999_v17 = vadd.f32 %v1967_v20, %v1898_v16  ;;  %v1799_v55 = vadd.f32 %v1767_v25, %v1699_v2  ;;  %v2068_v18 = vmul.f32 %v5554_v32, %v5973_v24  ;;  %v2133_v2 = vld [vmem:[#allocation3 + $0x18a] sm:$0xff] }
 0x2df   : > { %v1600_v59 = vadd.f32 %v1568_v23, %v1500_v12  ;;  %v1401_v4 = vmul.f32 %v6241_v47, %v5531_v62  ;;  %v1469_v35 = vmul.f32 %v5533_v58, %v5985_v28  ;;  %v1569_v3 = vmul.f32 %v2130_v34, %v5539_v11 }
 0x2e0   : > { %v6315_v57 = vadd.f32 %v6268_v41, %v2198_v51  ;;  %v2099_v61 = vadd.f32 %v2067_v0, %v1999_v17  ;;  %v1899_v20 = vadd.f32 %v1867_v48, %v1799_v55  ;;  %v2168_v46 = vmul.f32 %v5564_v37, %v2132_v22  ;;  %v1934_v51 = vld [vmem:[#allocation3 + $0x198] sm:$0xff] }
 0x2e1   : > { %v1700_v42 = vadd.f32 %v1668_v39, %v1600_v59  ;;  %v1768_v8 = vmul.f32 %v5552_v31, %v5991_v1  ;;  %v1501_v38 = vadd.f32 %v1469_v35, %v1401_v4  ;;  %v1868_v28 = vmul.f32 %v6276_v29, %v5562_v50 }
 0x2e2   : > { %2326 = vrot.lane.b32.xlu0 %v6315_v57, %s4958_s17  ;;  %v2199_v47 = vadd.f32 %v2167_v21, %v2099_v61  ;;  %v2000_v16 = vadd.f32 %v1968_v26, %v1899_v20  ;;  %v1969_v0 = vmul.f32 %v5560_v44, %v1933_v54  ;;  %v2069_v34 = vmul.f32 %v5554_v32, %v5988_v49  ;;  %v2034_v21 = vld [vmem:[#allocation3 + $0x199] sm:$0xff] }
 0x2e3   : > { %v1800_v25 = vadd.f32 %v1768_v8, %v1700_v42  ;;  %v1601_v48 = vadd.f32 %v1569_v3, %v1501_v38  ;;  %v1669_v12 = vmul.f32 %v1932_v9, %v5557_v36  ;;  %v1402_v17 = vmul.f32 %v6262_v19, %v5531_v62  ;;  %v1349_v9 = vld [vmem:[#allocation3 + $0xa8] sm:$0xff] }
 0x2e4   : > { %v6330_v23 = vadd.f32 %v6268_v41, %v2199_v47  ;;  %v2100_v39 = vadd.f32 %v2068_v18, %v2000_v16  ;;  %v1470_v55 = vmul.f32 %v5533_v58, %v5991_v1  ;;  %v2169_v59 = vmul.f32 %v5564_v37, %v2133_v2  ;;  %v1417_v3 = vld [vmem:[#allocation3 + $0xa9] sm:$0xff] }
 0x2e5   : > { %v1900_v26 = vadd.f32 %v1868_v28, %v1800_v25  ;;  %v1701_v4 = vadd.f32 %v1669_v12, %v1601_v48  ;;  %v1769_v35 = vmul.f32 %v5552_v31, %v5973_v24  ;;  %v1869_v61 = vmul.f32 %v2132_v22, %v5562_v50  ;;  %v1517_v1 = vld [vmem:[#allocation3 + $0xaa] sm:$0xff]  ;;  %v2134_v24 = vld [vmem:[#allocation3 + $0x19a] sm:$0xff] }
 0x2e6   : > { %2328 = vrot.lane.b32.xlu1 %v6330_v23, %s4958_s17  ;;  %v2200_v18 = vadd.f32 %v2168_v46, %v2100_v39  ;;  %v1502_v20 = vadd.f32 %v1470_v55, %v1402_v17  ;;  %v1570_v19 = vmul.f32 %v6276_v29, %v5539_v11  ;;  %v1970_v38 = vmul.f32 %v5560_v44, %v1934_v51  ;;  %v1935_v29 = vld [vmem:[#allocation3 + $0x1a0] sm:$0xff]  ;;  %v1350_v39 = vld [vmem:[#allocation3 + $0xb0] sm:$0xff] }
 0x2e7   : > { %v2001_v42 = vadd.f32 %v1969_v0, %v1900_v26  ;;  %v1801_v8 = vadd.f32 %v1769_v35, %v1701_v4  ;;  %v2070_v47 = vmul.f32 %v5554_v32, %v2034_v21  ;;  %v1670_v46 = vmul.f32 %v1933_v54, %v5557_v36  ;;  %v1418_v54 = vld [vmem:[#allocation3 + $0xb1] sm:$0xff]  ;;  %v2035_v4 = vld [vmem:[#allocation3 + $0x1a1] sm:$0xff] }
 0x2e8   : > { %v6347_v16 = vadd.f32 %v6268_v41, %v2200_v18  ;;  %v1602_v28 = vadd.f32 %v1570_v19, %v1502_v20  ;;  %v1385_v22 = vmul.f32 %v5531_v62, %v1349_v9  ;;  %v1453_v12 = vmul.f32 %v5533_v58, %v1417_v3  ;;  %v1717_v9 = vld [vmem:[#allocation3 + $0xc1] sm:$0xff]  ;;  %v1518_v3 = vld [vmem:[#allocation3 + $0xb2] sm:$0xff] }
 0x2e9   : > { %v2101_v25 = vadd.f32 %v2069_v34, %v2001_v42  ;;  %v1901_v48 = vadd.f32 %v1869_v61, %v1801_v8  ;;  %v1553_v0 = vmul.f32 %v5539_v11, %v1517_v1  ;;  %v2170_v51 = vmul.f32 %v5564_v37, %v2134_v24 }
 0x2ea   : > { %2330 = vrot.lane.b32.xlu0 %v6347_v16, %s4958_s17  ;;  %v1702_v21 = vadd.f32 %v1670_v46, %v1602_v28  ;;  %v1770_v17 = vmul.f32 %v5552_v31, %v5988_v49  ;;  %v1870_v34 = vmul.f32 %v2133_v2, %v5562_v50  ;;  %v1485_v35 = vadd.f32 %v1453_v12, %v1385_v22 }
 0x2eb   : > { %v2201_v55 = vadd.f32 %v2169_v59, %v2101_v25  ;;  %v2002_v26 = vadd.f32 %v1970_v38, %v1901_v48  ;;  %v1971_v61 = vmul.f32 %v5560_v44, %v1935_v29  ;;  %v1653_v20 = vmul.f32 %v5955_v43, %v5557_v36  ;;  %v2135_v59 = vld [vmem:[#allocation3 + $0x1a2] sm:$0xff] }
 0x2ec   : > { %v1802_v18 = vadd.f32 %v1770_v17, %v1702_v21  ;;  %v1386_v19 = vmul.f32 %v5531_v62, %v1350_v39  ;;  %v1585_v42 = vadd.f32 %v1553_v0, %v1485_v35  ;;  %v1454_v2 = vmul.f32 %v5533_v58, %v1418_v54  ;;  %v1718_v58 = vld [vmem:[#allocation3 + $0xc9] sm:$0xff] }
 0x2ed   : > { %v6364_v1 = vadd.f32 %v6268_v41, %v2201_v55  ;;  %v2102_v49 = vadd.f32 %v2070_v47, %v2002_v26  ;;  %v2071_v38 = vmul.f32 %v5554_v32, %v2035_v4  ;;  %v1753_v24 = vmul.f32 %v5552_v31, %v1717_v9  ;;  %v2019_v4 = vld [vmem:[#allocation3 + $0xe1] sm:$0xff] }
 0x2ee   : > { %v1902_v8 = vadd.f32 %v1870_v34, %v1802_v18  ;;  %v1685_v28 = vadd.f32 %v1653_v20, %v1585_v42  ;;  %v1486_v62 = vadd.f32 %v1454_v2, %v1386_v19  ;;  %v1554_v46 = vmul.f32 %v5539_v11, %v1518_v3  ;;  %v4741_v3 = vld [vmem:[%s6408_s23 + $0x8] sm:$0xff]  }
 0x2ef   : > { %2332 = vrot.lane.b32.xlu1 %v6364_v1, %s4958_s17  ;;  %v2202_v43 = vadd.f32 %v2170_v51, %v2102_v49  ;;  %v2171_v47 = vmul.f32 %v5564_v37, %v2135_v59  ;;  %v1853_v25 = vmul.f32 %v5978_v5, %v5562_v50  ;;  %v1654_v0 = vmul.f32 %v5997_v27, %v5557_v36  ;;  %v2018_v51 = vld [vmem:[#allocation3 + $0xd9] sm:$0xff]  ;;  %v2275_v49 = vpop.permute.xlu1 %2274  ;;  %v2279_v59 = vpop.permute.xlu0 %2278 }
 0x2f0   : > { %v2003_v22 = vadd.f32 %v1971_v61, %v1902_v8  ;;  %v1785_v29 = vadd.f32 %v1753_v24, %v1685_v28  ;;  %v1586_v12 = vadd.f32 %v1554_v46, %v1486_v62  ;;  %v1954_v21 = vmul.f32 %v5560_v44, %v5980_v33 }
 0x2f1   : > { %v6376_v48 = vadd.f32 %v6268_v41, %v2202_v43  ;;  %v1754_v5 = vmul.f32 %v5552_v31, %v1718_v58  ;;  %v2054_v26 = vmul.f32 %v5554_v32, %v2018_v51  ;;  %v1854_v36 = vmul.f32 %v6011_v56, %v5562_v50 }
 0x2f2   : > { %v2103_v39 = vadd.f32 %v2071_v38, %v2003_v22  ;;  %v1885_v11 = vadd.f32 %v1853_v25, %v1785_v29  ;;  %v1686_v17 = vadd.f32 %v1654_v0, %v1586_v12  ;;  %v2154_v33 = vmul.f32 %v5564_v37, %v6013_v45  ;;  %v7656_v25 = vld [vmem:[#allocation6_spill] sm:$0xff] }
 0x2f3   : > { %2334 = vrot.lane.b32.xlu0 %v6376_v48, %s4958_s17  ;;  %v1955_v31 = vmul.f32 %v5560_v44, %v6026_v40  ;;  %v2055_v50 = vmul.f32 %v5554_v32, %v2019_v4  ;;  %v4959_v56 = vmov 1.0   ;;  %v2155_v45 = vmul.f32 %v5564_v37, %v6045_v10  ;;  %v4740_v32 = vld [vmem:[%s6408_s23] sm:$0xff]   ;;  %v2277_v10 = vpop.permute.xlu1 %2276  ;;  %v2283_v2 = vpop.permute.xlu0 %2282 }
 0x2f4   : > { %v2203_v54 = vadd.f32 %v2171_v47, %v2103_v39  ;;  %v1986_v55 = vadd.f32 %v1954_v21, %v1885_v11  ;;  %v1786_v34 = vadd.f32 %v1754_v5, %v1686_v17  ;;  %2466 = vmatprep.mubr.f32.mxu0 %v4959_v56  ;;  %v4960_v44 = vmov 0.0   ;;  %v7657_v39 = vld [vmem:[#allocation5_spill] sm:$0xff]  ;;  %v7658_v5 = vld [vmem:[#allocation8_spill] sm:$0xff] }
 0x2f5   : > { %4527 = vmatprep.subr.bf16.mxu1 %v4960_v44  ;;  %v6425_v58 = vmul.f32 %v2277_v10, %v7656_v25  ;;  %v6434_v51 = vmul.f32 %v2275_v49, %v7657_v39  ;;  %v7663_v49 = vld [vmem:[#allocation11_spill] sm:$0xff]  ;;  %4535 = vmatprep.mubr.msk.bf16.mxu1 %vm4961_vm2, %v4960_v44 }
 0x2f6   : > { %v6389_v27 = vadd.f32 %v6268_v41, %v2203_v54  ;;  %v2086_v35 = vadd.f32 %v2054_v26, %v1986_v55  ;;  %v1886_v9 = vadd.f32 %v1854_v36, %v1786_v34  ;;  %4528 = vmatpush3.bf16.msra.mxu1 %v4740_v32  ;;  %v7659_v26 = vld [vmem:[#allocation7_spill] sm:$0xff]  ;;  %v7662_v32 = vld [vmem:[#allocation12_spill] sm:$0xff] }
 0x2f7   : > { %4529 = vmatprep.subr.bf16.mxu1 %v4960_v44  ;;  %v2281_v42 = vpop.permute.xlu1 %2280  ;;  %v4661_v21 = vpack.c.bf16 %v6425_v58, %v6434_v51  ;;  %v6450_v34 = vmul.f32 %v2279_v59, %v7659_v26 }
 0x2f8   : > { %2336 = vrot.lane.b32.xlu1 %v6389_v27, %s4958_s17  ;;  %v2186_v18 = vadd.f32 %v2154_v33, %v2086_v35  ;;  %v1987_v61 = vadd.f32 %v1955_v31, %v1886_v9  ;;  %v6441_v54 = vmul.f32 %v2281_v42, %v7658_v5  ;;  %v7660_v33 = vld [vmem:[#allocation10_spill] sm:$0xff] }
 0x2fa   : > { %v6400_v20 = vadd.f32 %v6268_v41, %v2186_v18  ;;  %v2087_v19 = vadd.f32 %v2055_v50, %v1987_v61  ;;  %4530 = vmatpush3.bf16.msra.mxu1 %v4741_v3  ;;  %v4665_v4 = vpack.c.bf16 %v6441_v54, %v6450_v34  ;;  %v7661_v18 = vld [vmem:[#allocation9_spill] sm:$0xff] }
 0x2fb   : > { %4531 = vmatprep.subr.bf16.mxu1 %v4960_v44  ;;  %v2285_v8 = vpop.permute.xlu1 %2284  ;;  %v6466_v61 = vmul.f32 %v2283_v2, %v7661_v18 }
 0x2fc   : > { %2302 = vrot.lane.b32.xlu0 %v6400_v20, %s4958_s17  ;;  %v2187_v40 = vadd.f32 %v2155_v45, %v2087_v19  ;;  %v6457_v9 = vmul.f32 %v2285_v8, %v7660_v33  ;;  %v7664_v8 = vld [vmem:[#allocation14_spill] sm:$0xff] }
 0x2fd   : > { %v2287_v38 = vpop.permute.xlu0 %2286 }
 0x2fe   : > { %v6416_v37 = vadd.f32 %v6268_v41, %v2187_v40  ;;  %v4669_v19 = vpack.c.bf16 %v6457_v9, %v6466_v61  ;;  %v6482_v10 = vmul.f32 %v2287_v38, %v7663_v49  ;;  %v7665_v38 = vld [vmem:[#allocation13_spill] sm:$0xff] }
 0x2ff   : > { %v4743_v49 = vld [vmem:[%s6408_s23 + $0x18] sm:$0xff]  }
 0x300   : > { %2304 = vrot.lane.b32.xlu1 %v6416_v37, %s4958_s17 }
 0x303   : > { %v2289_v24 = vpop.permute.xlu1 %2288 }
 0x304   : > { %v6473_v40 = vmul.f32 %v2289_v24, %v7662_v32 }
 0x306   : > { %v4673_v42 = vpack.c.bf16 %v6473_v40, %v6482_v10 }
 0x307   : > { %v2291_v43 = vpop.permute.xlu0 %2290 }
 0x308   : > { %v6498_v25 = vmul.f32 %v2291_v43, %v7665_v38  ;;  %v7667_v43 = vld [vmem:[#allocation15_spill] sm:$0xff]  ;;  %v4747_v38 = vld [vmem:[%s2590_s15 + $0x18] sm:$0xff]  }
 0x30c   : > { %v2293_v28 = vpop.permute.xlu1 %2292 }
 0x30d   : > { %v6489_v24 = vmul.f32 %v2293_v28, %v7664_v8  ;;  %v4745_v8 = vld [vmem:[%s2590_s15 + $0x8] sm:$0xff]  }
 0x30f   : > { %v4677_v39 = vpack.c.bf16 %v6489_v24, %v6498_v25 }
 0x311   : > { %v2295_v62 = vpop.permute.xlu0 %2294 }
 0x312   : > { %v6514_v5 = vmul.f32 %v2295_v62, %v7667_v43  ;;  %v7669_v62 = vld [vmem:[#allocation17_spill] sm:$0xff]  ;;  %v7670_v43 = vld [vmem:[#allocation4_spill] sm:$0xff] }
 0x318   : > { %v2297_v41 = vpop.permute.xlu1 %2296 }
 0x31c   : > { %v6422_v46 = vpop.permute.xlu0 %2298 }
 0x31d   : > { %v6531_v33 = vmul.f32 %v6422_v46, %v7669_v62 }
 0x320   : > { %v2301_v22 = vpop.permute.xlu1 %2300 }
 0x326   : > { %v2307_v47 = vpop.permute.xlu0 %2306 }
 0x327   : > { %v6428_v12 = vmul.f32 %v2307_v47, %v6102_v14 }
 0x32b   : > { %v2309_v29 = vpop.permute.xlu1 %2308 }
 0x32c   : > { %v6431_v0 = vmul.f32 %v2309_v29, %v6129_v7 }
 0x32e   : > { %v4659_v11 = vpack.c.bf16 %v6431_v0, %v6428_v12 }
 0x330   : > { %4660 = vmatprep.subr.bf16.mxu0 %v4659_v11  ;;  %v2311_v17 = vpop.permute.xlu0 %2310  ;;  %v7666_v11 = vld [vmem:[#allocation16_spill] sm:$0xff] }
 0x331   : > { %4662 = vmatpush3.bf16.msra.mxu0 %v4661_v21  ;;  %v6444_v55 = vmul.f32 %v2311_v17, %v6146_v53  ;;  %v6505_v21 = vmul.f32 %v2297_v41, %v7666_v11 }
 0x333   : > { %v4681_v26 = vpack.c.bf16 %v6505_v21, %v6514_v5 }
 0x334   : > { %v2313_v14 = vpop.permute.xlu1 %2312 }
 0x335   : > { %v6447_v7 = vmul.f32 %v2313_v14, %v6161_v6 }
 0x337   : > { %v4663_v36 = vpack.c.bf16 %v6447_v7, %v6444_v55 }
 0x338   : > { %v2315_v35 = vpop.permute.xlu0 %2314 }
 0x339   : > { %4664 = vmatprep.subr.bf16.mxu0 %v4663_v36  ;;  %v6460_v31 = vmul.f32 %v2315_v35, %v6182_v60  ;;  %v7668_v36 = vld [vmem:[#allocation18_spill] sm:$0xff] }
 0x33a   : > { %4666 = vmatpush3.bf16.msra.mxu0 %v4665_v4  ;;  %v6521_v4 = vmul.f32 %v2301_v22, %v7668_v36 }
 0x33c   : > { %v4685_v18 = vpack.c.bf16 %v6521_v4, %v6531_v33 }
 0x33d   : > { %v2317_v53 = vpop.permute.xlu1 %2316 }
 0x33e   : > { %v6463_v6 = vmul.f32 %v2317_v53, %v6202_v13 }
 0x340   : > { %v4667_v50 = vpack.c.bf16 %v6463_v6, %v6460_v31 }
 0x341   : > { %v2319_v45 = vpop.permute.xlu0 %2318 }
 0x342   : > { %4668 = vmatprep.subr.bf16.mxu0 %v4667_v50  ;;  %v6476_v3 = vmul.f32 %v2319_v45, %v6218_v52 }
 0x343   : > { %4670 = vmatpush3.bf16.msra.mxu0 %v4669_v19 }
 0x346   : > { %v2321_v60 = vpop.permute.xlu1 %2320 }
 0x347   : > { %v6479_v13 = vmul.f32 %v2321_v60, %v6245_v63 }
 0x349   : > { %v4671_v59 = vpack.c.bf16 %v6479_v13, %v6476_v3 }
 0x34a   : > { %v2323_v2 = vpop.permute.xlu0 %2322 }
 0x34b   : > { %4672 = vmatprep.subr.bf16.mxu0 %v4671_v59  ;;  %v6492_v47 = vmul.f32 %v2323_v2, %v6271_v30 }
 0x34c   : > { %4674 = vmatpush3.bf16.msra.mxu0 %v4673_v42 }
 0x34f   : > { %v2325_v52 = vpop.permute.xlu1 %2324 }
 0x350   : > { %v6495_v63 = vmul.f32 %v2325_v52, %v6290_v15  ;;  %v4746_v52 = vld [vmem:[%s2590_s15 + $0x10] sm:$0xff]  }
 0x352   : > { %v4675_v29 = vpack.c.bf16 %v6495_v63, %v6492_v47 }
 0x354   : > { %4676 = vmatprep.subr.bf16.mxu0 %v4675_v29  ;;  %v2327_v28 = vpop.permute.xlu0 %2326 }
 0x355   : > { %4678 = vmatpush3.bf16.msra.mxu0 %v4677_v39  ;;  %v6508_v17 = vmul.f32 %v2327_v28, %v6315_v57 }
 0x358   : > { %v2329_v30 = vpop.permute.xlu1 %2328 }
 0x359   : > { %v6511_v15 = vmul.f32 %v2329_v30, %v6330_v23 }
 0x35b   : > { %v4679_v14 = vpack.c.bf16 %v6511_v15, %v6508_v17 }
 0x35c   : > { %v2331_v41 = vpop.permute.xlu0 %2330 }
 0x35d   : > { %4680 = vmatprep.subr.bf16.mxu0 %v4679_v14  ;;  %v6524_v35 = vmul.f32 %v2331_v41, %v6347_v16 }
 0x35e   : > { %4682 = vmatpush3.bf16.msra.mxu0 %v4681_v26 }
 0x361   : > { %v2333_v57 = vpop.permute.xlu1 %2332 }
 0x362   : > { %v6527_v23 = vmul.f32 %v2333_v57, %v6364_v1 }
 0x364   : > { %v4683_v53 = vpack.c.bf16 %v6527_v23, %v6524_v35 }
 0x365   : > { %v2335_v22 = vpop.permute.xlu0 %2334 }
 0x366   : > { %4684 = vmatprep.subr.bf16.mxu0 %v4683_v53  ;;  %v6538_v16 = vmul.f32 %v2335_v22, %v6376_v48 }
 0x367   : > { %4686 = vmatpush3.bf16.msra.mxu0 %v4685_v18 }
 0x36a   : > { %v2337_v50 = vpop.permute.xlu1 %2336 }
 0x36b   : > { %v6541_v1 = vmul.f32 %v2337_v50, %v6389_v27  ;;  %v4742_v27 = vld [vmem:[%s6408_s23 + $0x10] sm:$0xff]  }
 0x36c   : > { %4532 = vmatpush3.bf16.msra.mxu1 %v4742_v27 }
 0x36d   : > { %v4687_v46 = vpack.c.bf16 %v6541_v1, %v6538_v16  ;;  %4533 = vmatprep.subr.bf16.mxu1 %v4960_v44  ;;  %v2485_v44 = vld [vmem:[%s2484_s20] sm:$0x1] }
 0x36e   : > { %v2303_v19 = vpop.permute.xlu0 %2302 }
 0x36f   : > { %4688 = vmatprep.subr.bf16.mxu0 %v4687_v46  ;;  %v6546_v32 = vmul.f32 %v2303_v19, %v6400_v20  ;;  %v4744_v20 = vld [vmem:[%s2590_s15] sm:$0xff]  }
 0x370   : > { %4534 = vmatpush3.bf16.msra.mxu1 %v4743_v49 }
 0x371   : > { %4539 = vmatprep.subr.bf16.mxu1 %v4744_v20 }
 0x372   : > { %v2305_v45 = vpop.permute.xlu1 %2304 }
 0x373   : > { %v6549_v60 = vmul.f32 %v2305_v45, %v6416_v37 }
 0x375   : > { %v4689_v48 = vpack.c.bf16 %v6549_v60, %v6546_v32 }
 0x377   : > { %4690 = vmatpush3.bf16.msra.mxu0 %v4689_v48 }
 0x37a   : > { %2467 = vmatmul.mubr.f32.vlgmr.msra.gmra.mrb[32].mxu0 %v4959_v56 }
 0x44d   : > { %v4419_v37 = vpop.f32.mrb[32].mxu0 }
 0x44e   : > { %v4420_v59 = vpop.f32.mrb[33].mxu0 }
 0x44f   : > { %v4421_v42 = vadd.f32 %v4420_v59, %v4419_v37 }
 0x451   : > { %v2472_v56 = vmul.f32 0.00390625, %v4421_v42 }
 0x453   : > { %v2473_v2 = vpack.c.bf16 %v2472_v56, %v2472_v56 }
 0x455   : > { %4536 = vmatmul.mubr.msk.bf16.vlgmr.msra.gmra.mrb[0].mxu1 %vm609_vm1, %v2473_v2 }
 0x456   : > { %4540 = vmatpush3.bf16.msra.mxu1 %v4744_v20 }
 0x457   : > { %4541 = vmatprep.subr.bf16.mxu1 %v4745_v8 }
 0x45a   : > { %4542 = vmatpush3.bf16.msra.mxu1 %v4745_v8 }
 0x45b   : > { %4543 = vmatprep.subr.bf16.mxu1 %v4746_v52 }
 0x45e   : > { %4544 = vmatpush3.bf16.msra.mxu1 %v4746_v52 }
 0x45f   : > { %4545 = vmatprep.subr.bf16.mxu1 %v4747_v38 }
 0x462   : > { %4546 = vmatpush3.bf16.msra.mxu1 %v4747_v38 }
 0x528   : > { %v2547_v29 = vpop.f32.mrb[0].mxu1 }
 0x529   : > { %v2548_v39 = vadd.f32 %v2547_v29, %v2485_v44  ;;  %v4537_v28 = vpop.f32.mrb[1].mxu1 }
 0x52a   : > { %v2550_v11 = vpop.f32.mrb[2].mxu1 }
 0x52b   : > { %v4538_v30 = vpop.f32.mrb[3].mxu1  ;;  %v2556_v14 = vrot.slane %v2548_v39, %v7670_v43  ;;  %v4886_v39 = vld [vmem:[#allocation2 + $0x10] sm:$0xff] }
 0x52c   : > { %v4887_v30 = vld [vmem:[#allocation2 + $0x8] sm:$0xff] }
 0x52d   : > { %v2557_v26 = vmul.f32 %v2556_v14, %v6434_v51  ;;  %v2558_v41 = vmul.f32 %v2556_v14, %v6425_v58  ;;  %v2559_v36 = vmul.f32 %v2556_v14, %v6450_v34  ;;  %v2560_v57 = vmul.f32 %v2556_v14, %v6441_v54 }
 0x52e   : > { %v2561_v62 = vmul.f32 %v2556_v14, %v6466_v61  ;;  %v2562_v53 = vmul.f32 %v2556_v14, %v6457_v9  ;;  %v2563_v51 = vmul.f32 %v2556_v14, %v6482_v10  ;;  %v2564_v58 = vmul.f32 %v2556_v14, %v6473_v40 }
 0x52f   : > { %v2601_v18 = vpack.c.bf16 %v2558_v41, %v2557_v26  ;;  %v2602_v22 = vpack.c.bf16 %v2560_v57, %v2559_v36  ;;  %v2565_v34 = vmul.f32 %v2556_v14, %v6498_v25  ;;  %v2566_v54 = vmul.f32 %v2556_v14, %v6489_v24  ;;  %v4888_v57 = vld [vmem:[#allocation2 + $0x18] sm:$0xff] }
 0x530   : > { %v2603_v50 = vpack.c.bf16 %v2562_v53, %v2561_v62  ;;  %v2604_v61 = vpack.c.bf16 %v2564_v58, %v2563_v51  ;;  %v2567_v9 = vmul.f32 %v2556_v14, %v6514_v5  ;;  %v2568_v19 = vmul.f32 %v2556_v14, %v6505_v21 }
 0x531   : > { %4547 = vmatprep.mubr.msk.bf16.mxu1 %vm609_vm1, %v2601_v18  ;;  %v2605_v46 = vpack.c.bf16 %v2566_v54, %v2565_v34  ;;  %v2569_v45 = vmul.f32 %v2556_v14, %v6531_v33  ;;  %v2570_v10 = vmul.f32 %v2556_v14, %v6521_v4  ;;  %v2571_v24 = vmul.f32 %v2556_v14, %v6546_v32  ;;  %v4889_v54 = vld [vmem:[#allocation2 + $0x20] sm:$0xff] }
 0x532   : > { %4548 = vmatmul.mubr.msk.bf16.vlgmr.msra.gmra.mrb[4].mxu1 %vm609_vm1, %v2602_v22  ;;  %v2606_v48 = vpack.c.bf16 %v2568_v19, %v2567_v9  ;;  %v2572_v25 = vmul.f32 %v2556_v14, %v6549_v60  ;;  %v2573_v27 = vmul.f32 %v2556_v14, %v6428_v12  ;;  %v2574_v5 = vmul.f32 %v2556_v14, %v6431_v0 }
 0x533   : > { %4551 = vmatprep.mubr.msk.bf16.mxu1 %vm609_vm1, %v2603_v50  ;;  %v2607_v40 = vpack.c.bf16 %v2570_v10, %v2569_v45  ;;  %v2575_v4 = vmul.f32 %v2556_v14, %v6444_v55  ;;  %v2576_v33 = vmul.f32 %v2556_v14, %v6447_v7  ;;  %v2577_v20 = vmul.f32 %v2556_v14, %v6460_v31  ;;  %v4891_v45 = vld [vmem:[#allocation2 + $0x38] sm:$0xff] }
 0x534   : > { %v2608_v49 = vpack.c.bf16 %v2572_v25, %v2571_v24  ;;  %v2609_v21 = vpack.c.bf16 %v2574_v5, %v2573_v27  ;;  %v2578_v32 = vmul.f32 %v2556_v14, %v6463_v6  ;;  %v2579_v12 = vmul.f32 %v2556_v14, %v6476_v3  ;;  %v4892_v25 = vld [vmem:[#allocation2 + $0x30] sm:$0xff] }
 0x535   : > { %v2610_v37 = vpack.c.bf16 %v2576_v33, %v2575_v4  ;;  %v2580_v0 = vmul.f32 %v2556_v14, %v6479_v13  ;;  %v2581_v59 = vmul.f32 %v2556_v14, %v6492_v47  ;;  %v2582_v55 = vmul.f32 %v2556_v14, %v6495_v63 }
 0x536   : > { %v2611_v60 = vpack.c.bf16 %v2578_v32, %v2577_v20  ;;  %v2583_v31 = vmul.f32 %v2556_v14, %v6508_v17  ;;  %v2584_v6 = vmul.f32 %v2556_v14, %v6511_v15  ;;  %v2585_v56 = vmul.f32 %v2556_v14, %v6524_v35  ;;  %v6620_v17 = vld [vmem:[%s2599_s26] ss:$0 sm:$0xff] }
 0x537   : > { %v2612_v42 = vpack.c.bf16 %v2580_v0, %v2579_v12  ;;  %v2613_v7 = vpack.c.bf16 %v2582_v55, %v2581_v59  ;;  %v2586_v3 = vmul.f32 %v2556_v14, %v6527_v23  ;;  %v2587_v47 = vmul.f32 %v2556_v14, %v6538_v16  ;;  %v4885_v16 = vld [vmem:[#allocation2] sm:$0xff]  ;;  %v4894_v0 = vld [vmem:[#allocation2 + $0x48] sm:$0xff] }
 0x538   : > { %v2614_v13 = vpack.c.bf16 %v2584_v6, %v2583_v31  ;;  %v2588_v63 = vmul.f32 %v2556_v14, %v6541_v1 }
 0x539   : > { %v2615_v2 = vpack.c.bf16 %v2586_v3, %v2585_v56  ;;  %v4896_v3 = vld [vmem:[#allocation2 + $0x50] sm:$0xff] }
 0x53a   : > { %4552 = vmatmul.mubr.msk.bf16.gmra.mrb[8].mxu1 %vm609_vm1, %v2604_v61  ;;  %v2616_v8 = vpack.c.bf16 %v2588_v63, %v2587_v47 }
 0x53b   : > { %4555 = vmatprep.mubr.msk.bf16.mxu1 %vm609_vm1, %v2605_v46  ;;  %v4890_v46 = vld [vmem:[#allocation2 + $0x28] sm:$0xff] }
 0x542   : > { %4556 = vmatmul.mubr.msk.bf16.gmra.mrb[12].mxu1 %vm609_vm1, %v2606_v48 }
 0x543   : > { %4559 = vmatprep.mubr.msk.bf16.mxu1 %vm609_vm1, %v2607_v40 }
 0x54a   : > { %4560 = vmatmul.mubr.msk.bf16.gmra.mrb[16].mxu1 %vm609_vm1, %v2608_v49 }
 0x54b   : > { %4563 = vmatprep.mubr.msk.bf16.mxu1 %vm609_vm1, %v2609_v21 }
 0x552   : > { %4564 = vmatmul.mubr.msk.bf16.gmra.mrb[20].mxu1 %vm609_vm1, %v2610_v37 }
 0x553   : > { %4567 = vmatprep.mubr.msk.bf16.mxu1 %vm609_vm1, %v2611_v60  ;;  %v4893_v60 = vld [vmem:[#allocation2 + $0x40] sm:$0xff] }
 0x55a   : > { %4568 = vmatmul.mubr.msk.bf16.gmra.mrb[24].mxu1 %vm609_vm1, %v2612_v42  ;;  %v4895_v42 = vld [vmem:[#allocation2 + $0x58] sm:$0xff] }
 0x55b   : > { %4571 = vmatprep.mubr.msk.bf16.mxu1 %vm609_vm1, %v2613_v7 }
 0x562   : > { %4572 = vmatmul.mubr.msk.bf16.gmra.mrb[28].mxu1 %vm609_vm1, %v2614_v13 }
 0x563   : > { %4575 = vmatprep.mubr.msk.bf16.mxu1 %vm609_vm1, %v2615_v2 }
 0x56a   : > { %4576 = vmatmul.mubr.msk.bf16.gmra.mrb[32].mxu1 %vm609_vm1, %v2616_v8 }
 0x605   : > { %v4549_v15 = vpop.f32.mrb[4].mxu1 }
 0x606   : > { %v2729_v35 = vpop.f32.mrb[5].mxu1  ;;  %v2738_v23 = vadd.f32 %v4549_v15, %v6620_v17 }
 0x607   : > { %v2730_v52 = vadd.f32 %v6620_v17, %v2729_v35  ;;  %v4550_v38 = vpop.f32.mrb[6].mxu1 }
 0x608   : > { %v2732_v44 = vpop.f32.mrb[7].mxu1  ;;  %v6627_v28 = vadd.f32 %v4886_v39, %v2738_v23  ;;  %v2741_v11 = vadd.f32 %v4550_v38, %v6620_v17  ;;  %v4897_v38 = vld [vmem:[#allocation2 + $0x60] sm:$0xff] }
 0x609   : > { %v6624_v29 = vadd.f32 %v4885_v16, %v2730_v52  ;;  %v2733_v1 = vadd.f32 %v6620_v17, %v2732_v44  ;;  %v4898_v16 = vld [vmem:[#allocation2 + $0x68] sm:$0xff] }
 0x60a   : > { %v6636_v62 = vadd.f32 %v4888_v57, %v2741_v11  ;;  %v2894_v22 = vsel %vm609_vm1, %v6627_v28, 0.0  ;;  %v4899_v11 = vld [vmem:[#allocation2 + $0x78] sm:$0xff] }
 0x60b   : > { %v6630_v43 = vadd.f32 %v4887_v30, %v2733_v1  ;;  %v2888_v14 = vsel %vm609_vm1, %v6624_v29, 0.0 }
 0x60c   : > { %2889 = vadd.xlane.f32.xlu0 %v2888_v14  ;;  %v2897_v19 = vsel %vm609_vm1, %v6636_v62, 0.0 }
 0x60d   : > { %v4553_v26 = vpop.f32.mrb[8].mxu1  ;;  %v2891_v41 = vsel %vm609_vm1, %v6630_v43, 0.0 }
 0x60e   : > { %v2745_v36 = vpop.f32.mrb[9].mxu1  ;;  %2892 = vadd.xlane.f32.xlu1 %v2891_v41  ;;  %v2754_v34 = vadd.f32 %v4553_v26, %v6620_v17 }
 0x60f   : > { %v2746_v53 = vadd.f32 %v6620_v17, %v2745_v36  ;;  %v4554_v18 = vpop.f32.mrb[10].mxu1  ;;  %v4900_v36 = vld [vmem:[#allocation2 + $0x70] sm:$0xff] }
 0x610   : > { %v2748_v50 = vpop.f32.mrb[11].mxu1  ;;  %2895 = vadd.xlane.f32.xlu0 %v2894_v22  ;;  %v2757_v51 = vadd.f32 %v4554_v18, %v6620_v17  ;;  %v6654_v27 = vadd.f32 %v4892_v25, %v2754_v34 }
 0x611   : > { %v2749_v58 = vadd.f32 %v6620_v17, %v2748_v50  ;;  %v6644_v61 = vadd.f32 %v4889_v54, %v2746_v53 }
 0x612   : > { %v6650_v10 = vadd.f32 %v4891_v45, %v2757_v51  ;;  %v2906_v55 = vsel %vm609_vm1, %v6654_v27, 0.0  ;;  %v4902_v45 = vld [vmem:[#allocation2 + $0x88] sm:$0xff] }
 0x613   : > { %v6646_v9 = vadd.f32 %v4890_v46, %v2749_v58  ;;  %v2900_v21 = vsel %vm609_vm1, %v6644_v61, 0.0  ;;  %v4901_v46 = vld [vmem:[#allocation2 + $0x80] sm:$0xff] }
 0x614   : > { %2898 = vadd.xlane.f32.xlu0 %v2897_v19  ;;  %v2909_v32 = vsel %vm609_vm1, %v6650_v10, 0.0 }
 0x615   : > { %v4557_v48 = vpop.f32.mrb[12].mxu1  ;;  %v2903_v40 = vsel %vm609_vm1, %v6646_v9, 0.0 }
 0x616   : > { %v2761_v24 = vpop.f32.mrb[13].mxu1  ;;  %2904 = vadd.xlane.f32.xlu1 %v2903_v40  ;;  %v2770_v37 = vadd.f32 %v4557_v48, %v6620_v17 }
 0x617   : > { %v2762_v5 = vadd.f32 %v6620_v17, %v2761_v24  ;;  %v4558_v49 = vpop.f32.mrb[14].mxu1  ;;  %v4903_v24 = vld [vmem:[#allocation2 + $0x98] sm:$0xff] }
 0x618   : > { %v2764_v4 = vpop.f32.mrb[15].mxu1  ;;  %2901 = vadd.xlane.f32.xlu0 %v2900_v21  ;;  %v2773_v33 = vadd.f32 %v4558_v49, %v6620_v17  ;;  %v6674_v13 = vadd.f32 %v4896_v3, %v2770_v37  ;;  %v4906_v3 = vld [vmem:[#allocation2 + $0xa8] sm:$0xff] }
 0x619   : > { %v2765_v20 = vadd.f32 %v6620_v17, %v2764_v4  ;;  %v6664_v12 = vadd.f32 %v4893_v60, %v2762_v5  ;;  %v4904_v4 = vld [vmem:[#allocation2 + $0x90] sm:$0xff] }
 0x61a   : > { %2910 = vadd.xlane.f32.xlu1 %v2909_v32  ;;  %v6670_v7 = vadd.f32 %v4895_v42, %v2773_v33  ;;  %v2918_v39 = vsel %vm609_vm1, %v6674_v13, 0.0 }
 0x61b   : > { %v6666_v59 = vadd.f32 %v4894_v0, %v2765_v20  ;;  %v2912_v63 = vsel %vm609_vm1, %v6664_v12, 0.0 }
 0x61c   : > { %2907 = vadd.xlane.f32.xlu0 %v2906_v55  ;;  %v2921_v23 = vsel %vm609_vm1, %v6670_v7, 0.0 }
 0x61d   : > { %v4561_v31 = vpop.f32.mrb[16].mxu1  ;;  %v2915_v6 = vsel %vm609_vm1, %v6666_v59, 0.0 }
 0x61e   : > { %v2777_v56 = vpop.f32.mrb[17].mxu1  ;;  %2916 = vadd.xlane.f32.xlu1 %v2915_v6  ;;  %v2786_v52 = vadd.f32 %v4561_v31, %v6620_v17  ;;  %v4905_v6 = vld [vmem:[#allocation2 + $0xa0] sm:$0xff] }
 0x61f   : > { %v2778_v2 = vadd.f32 %v6620_v17, %v2777_v56  ;;  %v4562_v47 = vpop.f32.mrb[18].mxu1 }
 0x620   : > { %v2780_v8 = vpop.f32.mrb[19].mxu1  ;;  %2913 = vadd.xlane.f32.xlu0 %v2912_v63  ;;  %v2789_v15 = vadd.f32 %v4562_v47, %v6620_v17  ;;  %v6694_v57 = vadd.f32 %v4900_v36, %v2786_v52  ;;  %v4907_v63 = vld [vmem:[#allocation2 + $0xb8] sm:$0xff]  ;;  %v4908_v52 = vld [vmem:[#allocation2 + $0xb0] sm:$0xff] }
 0x621   : > { %v2781_v35 = vadd.f32 %v6620_v17, %v2780_v8  ;;  %v6684_v44 = vadd.f32 %v4897_v38, %v2778_v2 }
 0x622   : > { %2922 = vadd.xlane.f32.xlu1 %v2921_v23  ;;  %v6690_v30 = vadd.f32 %v4899_v11, %v2789_v15  ;;  %v2930_v40 = vsel %vm609_vm1, %v6694_v57, 0.0 }
 0x623   : > { %7671 = vst [vmem:[#allocation6_spill] sm:$0xff] %v6684_v44  ;;  %v6686_v1 = vadd.f32 %v4898_v16, %v2781_v35  ;;  %v2924_v22 = vsel %vm609_vm1, %v6684_v44, 0.0 }
 0x624   : > { %2919 = vadd.xlane.f32.xlu0 %v2918_v39  ;;  %7673 = vst [vmem:[#allocation8_spill] sm:$0xff] %v6690_v30  ;;  %v2933_v34 = vsel %vm609_vm1, %v6690_v30, 0.0 }
 0x625   : > { %7672 = vst [vmem:[#allocation5_spill] sm:$0xff] %v6686_v1  ;;  %v4565_v14 = vpop.f32.mrb[20].mxu1  ;;  %v2927_v26 = vsel %vm609_vm1, %v6686_v1, 0.0 }
 0x626   : > { %v2793_v41 = vpop.f32.mrb[21].mxu1  ;;  %2928 = vadd.xlane.f32.xlu1 %v2927_v26  ;;  %v2802_v54 = vadd.f32 %v4565_v14, %v6620_v17 }
 0x627   : > { %v2794_v53 = vadd.f32 %v6620_v17, %v2793_v41  ;;  %v4566_v18 = vpop.f32.mrb[22].mxu1 }
 0x628   : > { %v2796_v50 = vpop.f32.mrb[23].mxu1  ;;  %2925 = vadd.xlane.f32.xlu0 %v2924_v22  ;;  %v2805_v51 = vadd.f32 %v4566_v18, %v6620_v17  ;;  %v6714_v33 = vadd.f32 %v4904_v4, %v2802_v54  ;;  %v4909_v18 = vld [vmem:[#allocation2 + $0xc0] sm:$0xff] }
 0x629   : > { %v2797_v58 = vadd.f32 %v6620_v17, %v2796_v50  ;;  %v6704_v19 = vadd.f32 %v4901_v46, %v2794_v53  ;;  %v4910_v50 = vld [vmem:[#allocation2 + $0xc8] sm:$0xff] }
 0x62a   : > { %2934 = vadd.xlane.f32.xlu1 %v2933_v34  ;;  %v6710_v25 = vadd.f32 %v4903_v24, %v2805_v51  ;;  %7677 = vst [vmem:[#allocation12_spill] sm:$0xff] %v6714_v33  ;;  %v2942_v47 = vsel %vm609_vm1, %v6714_v33, 0.0  ;;  %v4911_v34 = vld [vmem:[#allocation2 + $0xd8] sm:$0xff] }
 0x62b   : > { %7674 = vst [vmem:[#allocation7_spill] sm:$0xff] %v6704_v19  ;;  %v6706_v48 = vadd.f32 %v4902_v45, %v2797_v58  ;;  %v2936_v37 = vsel %vm609_vm1, %v6704_v19, 0.0 }
 0x62c   : > { %2931 = vadd.xlane.f32.xlu0 %v2930_v40  ;;  %7676 = vst [vmem:[#allocation9_spill] sm:$0xff] %v6710_v25  ;;  %v2945_v42 = vsel %vm609_vm1, %v6710_v25, 0.0 }
 0x62d   : > { %7675 = vst [vmem:[#allocation10_spill] sm:$0xff] %v6706_v48  ;;  %v4569_v5 = vpop.f32.mrb[24].mxu1  ;;  %v2939_v49 = vsel %vm609_vm1, %v6706_v48, 0.0 }
 0x62e   : > { %v2809_v21 = vpop.f32.mrb[25].mxu1  ;;  %2940 = vadd.xlane.f32.xlu1 %v2939_v49  ;;  %v2818_v31 = vadd.f32 %v4569_v5, %v6620_v17  ;;  %v4912_v5 = vld [vmem:[#allocation2 + $0xd0] sm:$0xff] }
 0x62f   : > { %v2810_v20 = vadd.f32 %v6620_v17, %v2809_v21  ;;  %v4570_v32 = vpop.f32.mrb[26].mxu1 }
 0x630   : > { %v2812_v60 = vpop.f32.mrb[27].mxu1  ;;  %2937 = vadd.xlane.f32.xlu0 %v2936_v37  ;;  %v2821_v0 = vadd.f32 %v4570_v32, %v6620_v17  ;;  %v6734_v38 = vadd.f32 %v4908_v52, %v2818_v31  ;;  %v4914_v31 = vld [vmem:[#allocation2 + $0xe8] sm:$0xff] }
 0x631   : > { %v2813_v55 = vadd.f32 %v6620_v17, %v2812_v60  ;;  %v6724_v56 = vadd.f32 %v4905_v6, %v2810_v20 }
 0x632   : > { %2946 = vadd.xlane.f32.xlu1 %v2945_v42  ;;  %v6730_v8 = vadd.f32 %v4907_v63, %v2821_v0  ;;  %7681 = vst [vmem:[#allocation16_spill] sm:$0xff] %v6734_v38  ;;  %v2954_v58 = vsel %vm609_vm1, %v6734_v38, 0.0 }
 0x633   : > { %7678 = vst [vmem:[#allocation11_spill] sm:$0xff] %v6724_v56  ;;  %v6726_v2 = vadd.f32 %v4906_v3, %v2813_v55  ;;  %v2948_v11 = vsel %vm609_vm1, %v6724_v56, 0.0  ;;  %v4913_v55 = vld [vmem:[#allocation2 + $0xe0] sm:$0xff] }
 0x634   : > { %2943 = vadd.xlane.f32.xlu0 %v2942_v47  ;;  %7680 = vst [vmem:[#allocation13_spill] sm:$0xff] %v6730_v8  ;;  %v2957_v36 = vsel %vm609_vm1, %v6730_v8, 0.0  ;;  %v4915_v47 = vld [vmem:[#allocation2 + $0xf8] sm:$0xff] }
 0x635   : > { %7679 = vst [vmem:[#allocation14_spill] sm:$0xff] %v6726_v2  ;;  %v4573_v15 = vpop.f32.mrb[28].mxu1  ;;  %v2951_v35 = vsel %vm609_vm1, %v6726_v2, 0.0 }
 0x636   : > { %v2825_v23 = vpop.f32.mrb[29].mxu1  ;;  %2952 = vadd.xlane.f32.xlu1 %v2951_v35  ;;  %v2834_v53 = vadd.f32 %v4573_v15, %v6620_v17  ;;  %v4916_v15 = vld [vmem:[#allocation2 + $0xf0] sm:$0xff] }
 0x637   : > { %v2826_v16 = vadd.f32 %v6620_v17, %v2825_v23  ;;  %v4574_v39 = vpop.f32.mrb[30].mxu1 }
 0x638   : > { %v2828_v14 = vpop.f32.mrb[31].mxu1  ;;  %2949 = vadd.xlane.f32.xlu0 %v2948_v11  ;;  %v2837_v26 = vadd.f32 %v4574_v39, %v6620_v17  ;;  %v6755_v49 = vadd.f32 %v4912_v5, %v2834_v53 }
 0x639   : > { %v2829_v41 = vadd.f32 %v6620_v17, %v2828_v14  ;;  %v6744_v22 = vadd.f32 %v4909_v18, %v2826_v16 }
 0x63a   : > { %2958 = vadd.xlane.f32.xlu1 %v2957_v36  ;;  %v6750_v54 = vadd.f32 %v4911_v34, %v2837_v26  ;;  %7685 = vst [vmem:[#allocation4_spill] sm:$0xff] %v6755_v49  ;;  %v2966_v3 = vsel %vm609_vm1, %v6755_v49, 0.0 }
 0x63b   : > { %7682 = vst [vmem:[#allocation15_spill] sm:$0xff] %v6744_v22  ;;  %v6746_v51 = vadd.f32 %v4910_v50, %v2829_v41  ;;  %v2960_v20 = vsel %vm609_vm1, %v6744_v22, 0.0 }
 0x63c   : > { %2955 = vadd.xlane.f32.xlu0 %v2954_v58  ;;  %7684 = vst [vmem:[#allocation17_spill] sm:$0xff] %v6750_v54  ;;  %v2969_v0 = vsel %vm609_vm1, %v6750_v54, 0.0 }
 0x63d   : > { %7683 = vst [vmem:[#allocation18_spill] sm:$0xff] %v6746_v51  ;;  %v4577_v46 = vpop.f32.mrb[32].mxu1  ;;  %v2963_v45 = vsel %vm609_vm1, %v6746_v51, 0.0 }
 0x63e   : > { %v2850_v40 = vadd.f32 %v4577_v46, %v6620_v17  ;;  %v2841_v24 = vpop.f32.mrb[33].mxu1  ;;  %2964 = vadd.xlane.f32.xlu1 %v2963_v45 }
 0x63f   : > { %v2842_v21 = vadd.f32 %v6620_v17, %v2841_v24  ;;  %v4578_v4 = vpop.f32.mrb[34].mxu1 }
 0x640   : > { %v2844_v32 = vpop.f32.mrb[35].mxu1  ;;  %2961 = vadd.xlane.f32.xlu0 %v2960_v20  ;;  %v2853_v37 = vadd.f32 %v4578_v4, %v6620_v17  ;;  %v6774_v35 = vadd.f32 %v4916_v15, %v2850_v40 }
 0x641   : > { %v2845_v60 = vadd.f32 %v6620_v17, %v2844_v32  ;;  %v6764_v42 = vadd.f32 %v4913_v55, %v2842_v21 }
 0x642   : > { %2970 = vadd.xlane.f32.xlu1 %v2969_v0  ;;  %v6770_v63 = vadd.f32 %v4915_v47, %v2853_v37  ;;  %7689 = vst [vmem:[#allocation22_spill] sm:$0xff] %v6774_v35  ;;  %v2978_v16 = vsel %vm609_vm1, %v6774_v35, 0.0 }
 0x643   : > { %7686 = vst [vmem:[#allocation19_spill] sm:$0xff] %v6764_v42  ;;  %v6766_v6 = vadd.f32 %v4914_v31, %v2845_v60  ;;  %v2972_v23 = vsel %vm609_vm1, %v6764_v42, 0.0 }
 0x644   : > { %2967 = vadd.xlane.f32.xlu0 %v2966_v3  ;;  %7688 = vst [vmem:[#allocation21_spill] sm:$0xff] %v6770_v63  ;;  %v2981_v52 = vsel %vm609_vm1, %v6770_v63, 0.0 }
 0x645   : > { %7687 = vst [vmem:[#allocation20_spill] sm:$0xff] %v6766_v6  ;;  %v2975_v17 = vsel %vm609_vm1, %v6766_v6, 0.0 }
 0x646   : > { %2976 = vadd.xlane.f32.xlu1 %v2975_v17 }
 0x648   : > { %2973 = vadd.xlane.f32.xlu0 %v2972_v23 }
 0x64a   : > { %2982 = vadd.xlane.f32.xlu1 %v2981_v52 }
 0x64c   : > { %2979 = vadd.xlane.f32.xlu0 %v2978_v16 }
 0x699   : > { %v2890_v39 = vpop.xlane.xlu0 %2889 }
 0x69a   : > { %v2984_v11 = vmul.f32 0.015625, %v2890_v39 }
 0x69b   : > { %v2893_v14 = vpop.xlane.xlu1 %2892 }
 0x69c   : > { %v6783_v26 = vsub.f32 %v6624_v29, %v2984_v11  ;;  %v2985_v41 = vmul.f32 0.015625, %v2893_v14 }
 0x69d   : > { %v2896_v36 = vpop.xlane.xlu0 %2895 }
 0x69e   : > { %v6786_v53 = vsub.f32 %v6630_v43, %v2985_v41  ;;  %v2986_v18 = vmul.f32 0.015625, %v2896_v36  ;;  %v3048_v50 = vmul.f32 %v6783_v26, %v6783_v26 }
 0x6a0   : > { %v6791_v58 = vsub.f32 %v6627_v28, %v2986_v18  ;;  %v3080_v34 = vsel %vm609_vm1, %v3048_v50, 0.0  ;;  %v3049_v46 = vmul.f32 %v6786_v53, %v6786_v53 }
 0x6a1   : > { %3081 = vadd.xlane.f32.xlu0 %v3080_v34  ;;  %v2899_v45 = vpop.xlane.xlu0 %2898 }
 0x6a2   : > { %v2987_v40 = vmul.f32 0.015625, %v2899_v45  ;;  %v3083_v24 = vsel %vm609_vm1, %v3049_v46, 0.0  ;;  %v3050_v5 = vmul.f32 %v6791_v58, %v6791_v58 }
 0x6a3   : > { %3084 = vadd.xlane.f32.xlu1 %v3083_v24  ;;  %v2905_v21 = vpop.xlane.xlu1 %2904 }
 0x6a4   : > { %v6800_v4 = vsub.f32 %v6636_v62, %v2987_v40  ;;  %v2989_v20 = vmul.f32 0.015625, %v2905_v21  ;;  %v3086_v32 = vsel %vm609_vm1, %v3050_v5, 0.0 }
 0x6a5   : > { %3087 = vadd.xlane.f32.xlu0 %v3086_v32  ;;  %v2902_v37 = vpop.xlane.xlu0 %2901 }
 0x6a6   : > { %v6804_v60 = vsub.f32 %v6646_v9, %v2989_v20  ;;  %v2988_v0 = vmul.f32 0.015625, %v2902_v37  ;;  %v3051_v55 = vmul.f32 %v6800_v4, %v6800_v4 }
 0x6a7   : > { %v2911_v31 = vpop.xlane.xlu1 %2910 }
 0x6a8   : > { %v6809_v3 = vsub.f32 %v6644_v61, %v2988_v0  ;;  %v2991_v47 = vmul.f32 0.015625, %v2911_v31  ;;  %v3089_v17 = vsel %vm609_vm1, %v3051_v55, 0.0  ;;  %v3053_v15 = vmul.f32 %v6804_v60, %v6804_v60 }
 0x6a9   : > { %3090 = vadd.xlane.f32.xlu1 %v3089_v17  ;;  %v2908_v23 = vpop.xlane.xlu0 %2907 }
 0x6aa   : > { %v6815_v52 = vsub.f32 %v6650_v10, %v2991_v47  ;;  %v2990_v16 = vmul.f32 0.015625, %v2908_v23  ;;  %v3052_v39 = vmul.f32 %v6809_v3, %v6809_v3  ;;  %v3095_v14 = vsel %vm609_vm1, %v3053_v15, 0.0 }
 0x6ab   : > { %v2917_v11 = vpop.xlane.xlu1 %2916 }
 0x6ac   : > { %v6821_v41 = vsub.f32 %v6654_v27, %v2990_v16  ;;  %v2993_v36 = vmul.f32 0.015625, %v2917_v11  ;;  %v3092_v18 = vsel %vm609_vm1, %v3052_v39, 0.0  ;;  %v3055_v50 = vmul.f32 %v6815_v52, %v6815_v52 }
 0x6ad   : > { %3096 = vadd.xlane.f32.xlu1 %v3095_v14  ;;  %3093 = vadd.xlane.f32.xlu0 %v3092_v18  ;;  %v2914_v34 = vpop.xlane.xlu0 %2913 }
 0x6ae   : > { %v6827_v46 = vsub.f32 %v6666_v59, %v2993_v36  ;;  %v2992_v45 = vmul.f32 0.015625, %v2914_v34  ;;  %v3054_v40 = vmul.f32 %v6821_v41, %v6821_v41  ;;  %v3101_v5 = vsel %vm609_vm1, %v3055_v50, 0.0 }
 0x6af   : > { %v2923_v24 = vpop.xlane.xlu1 %2922 }
 0x6b0   : > { %v6833_v21 = vsub.f32 %v6664_v12, %v2992_v45  ;;  %v2995_v20 = vmul.f32 0.015625, %v2923_v24  ;;  %v3098_v32 = vsel %vm609_vm1, %v3054_v40, 0.0  ;;  %v3057_v37 = vmul.f32 %v6827_v46, %v6827_v46 }
 0x6b1   : > { %3102 = vadd.xlane.f32.xlu1 %v3101_v5  ;;  %3099 = vadd.xlane.f32.xlu0 %v3098_v32  ;;  %v2920_v0 = vpop.xlane.xlu0 %2919 }
 0x6b2   : > { %v6839_v55 = vsub.f32 %v6670_v7, %v2995_v20  ;;  %v2994_v31 = vmul.f32 0.015625, %v2920_v0  ;;  %v3056_v47 = vmul.f32 %v6833_v21, %v6833_v21  ;;  %v3107_v15 = vsel %vm609_vm1, %v3057_v37, 0.0 }
 0x6b3   : > { %v2929_v17 = vpop.xlane.xlu1 %2928 }
 0x6b4   : > { %v6845_v23 = vsub.f32 %v6674_v13, %v2994_v31  ;;  %v2997_v16 = vmul.f32 0.015625, %v2929_v17  ;;  %v3104_v39 = vsel %vm609_vm1, %v3056_v47, 0.0  ;;  %v3059_v11 = vmul.f32 %v6839_v55, %v6839_v55 }
 0x6b5   : > { %3108 = vadd.xlane.f32.xlu1 %v3107_v15  ;;  %3105 = vadd.xlane.f32.xlu0 %v3104_v39  ;;  %v2926_v14 = vpop.xlane.xlu0 %2925 }
 0x6b6   : > { %v6851_v36 = vsub.f32 %v6686_v1, %v2997_v16  ;;  %v2996_v18 = vmul.f32 0.015625, %v2926_v14  ;;  %v3058_v50 = vmul.f32 %v6845_v23, %v6845_v23  ;;  %v3113_v45 = vsel %vm609_vm1, %v3059_v11, 0.0 }
 0x6b7   : > { %v2935_v34 = vpop.xlane.xlu1 %2934 }
 0x6b8   : > { %v6857_v40 = vsub.f32 %v6684_v44, %v2996_v18  ;;  %v2999_v24 = vmul.f32 0.015625, %v2935_v34  ;;  %v3110_v5 = vsel %vm609_vm1, %v3058_v50, 0.0  ;;  %v3061_v20 = vmul.f32 %v6851_v36, %v6851_v36 }
 0x6b9   : > { %3114 = vadd.xlane.f32.xlu1 %v3113_v45  ;;  %3111 = vadd.xlane.f32.xlu0 %v3110_v5  ;;  %v2932_v32 = vpop.xlane.xlu0 %2931 }
 0x6ba   : > { %v6863_v37 = vsub.f32 %v6690_v30, %v2999_v24  ;;  %v2998_v0 = vmul.f32 0.015625, %v2932_v32  ;;  %v3060_v31 = vmul.f32 %v6857_v40, %v6857_v40  ;;  %v3119_v17 = vsel %vm609_vm1, %v3061_v20, 0.0 }
 0x6bb   : > { %v2941_v47 = vpop.xlane.xlu1 %2940 }
 0x6bc   : > { %v6869_v15 = vsub.f32 %v6694_v57, %v2998_v0  ;;  %v3001_v16 = vmul.f32 0.015625, %v2941_v47  ;;  %v3116_v39 = vsel %vm609_vm1, %v3060_v31, 0.0  ;;  %v3063_v11 = vmul.f32 %v6863_v37, %v6863_v37 }
 0x6bd   : > { %3120 = vadd.xlane.f32.xlu1 %v3119_v17  ;;  %3117 = vadd.xlane.f32.xlu0 %v3116_v39  ;;  %v2938_v14 = vpop.xlane.xlu0 %2937 }
 0x6be   : > { %v6875_v18 = vsub.f32 %v6706_v48, %v3001_v16  ;;  %v3000_v50 = vmul.f32 0.015625, %v2938_v14  ;;  %v3062_v34 = vmul.f32 %v6869_v15, %v6869_v15  ;;  %v3125_v24 = vsel %vm609_vm1, %v3063_v11, 0.0 }
 0x6bf   : > { %v2947_v45 = vpop.xlane.xlu1 %2946 }
 0x6c0   : > { %v6881_v5 = vsub.f32 %v6704_v19, %v3000_v50  ;;  %v3003_v20 = vmul.f32 0.015625, %v2947_v45  ;;  %v3122_v32 = vsel %vm609_vm1, %v3062_v34, 0.0  ;;  %v3065_v0 = vmul.f32 %v6875_v18, %v6875_v18 }
 0x6c1   : > { %3126 = vadd.xlane.f32.xlu1 %v3125_v24  ;;  %3123 = vadd.xlane.f32.xlu0 %v3122_v32  ;;  %v2944_v31 = vpop.xlane.xlu0 %2943 }
 0x6c2   : > { %v6887_v47 = vsub.f32 %v6710_v25, %v3003_v20  ;;  %v3002_v17 = vmul.f32 0.015625, %v2944_v31  ;;  %v3064_v16 = vmul.f32 %v6881_v5, %v6881_v5  ;;  %v3131_v11 = vsel %vm609_vm1, %v3065_v0, 0.0 }
 0x6c3   : > { %v2953_v39 = vpop.xlane.xlu1 %2952 }
 0x6c4   : > { %v6893_v14 = vsub.f32 %v6714_v33, %v3002_v17  ;;  %v3005_v50 = vmul.f32 0.015625, %v2953_v39  ;;  %v3128_v34 = vsel %vm609_vm1, %v3064_v16, 0.0  ;;  %v3067_v45 = vmul.f32 %v6887_v47, %v6887_v47  ;;  %v4748_v16 = vld [vmem:[%s6907_s19] sm:$0xff]  }
 0x6c5   : > { %3132 = vadd.xlane.f32.xlu1 %v3131_v11  ;;  %3129 = vadd.xlane.f32.xlu0 %v3128_v34  ;;  %v2950_v24 = vpop.xlane.xlu0 %2949 }
 0x6c6   : > { %v6899_v20 = vsub.f32 %v6726_v2, %v3005_v50  ;;  %v3004_v32 = vmul.f32 0.015625, %v2950_v24  ;;  %v3066_v31 = vmul.f32 %v6893_v14, %v6893_v14  ;;  %v3137_v17 = vsel %vm609_vm1, %v3067_v45, 0.0  ;;  %v4749_v2 = vld [vmem:[%s6907_s19 + $0x8] sm:$0xff]   ;;  %4579 = vmatprep.subr.bf16.mxu0 %v4748_v16 }
 0x6c7   : > { %v2959_v0 = vpop.xlane.xlu1 %2958  ;;  %4580 = vmatpush3.bf16.msra.mxu0 %v4748_v16 }
 0x6c8   : > { %v6912_v39 = vsub.f32 %v6724_v56, %v3004_v32  ;;  %v3007_v11 = vmul.f32 0.015625, %v2959_v0  ;;  %v3134_v50 = vsel %vm609_vm1, %v3066_v31, 0.0  ;;  %v3069_v34 = vmul.f32 %v6899_v20, %v6899_v20  ;;  %4581 = vmatprep.subr.bf16.mxu0 %v4749_v2 }
 0x6c9   : > { %3138 = vadd.xlane.f32.xlu1 %v3137_v17  ;;  %3135 = vadd.xlane.f32.xlu0 %v3134_v50  ;;  %v2956_v24 = vpop.xlane.xlu0 %2955 }
 0x6ca   : > { %v6919_v48 = vsub.f32 %v6730_v8, %v3007_v11  ;;  %v3006_v25 = vmul.f32 0.015625, %v2956_v24  ;;  %v3068_v45 = vmul.f32 %v6912_v39, %v6912_v39  ;;  %v3143_v0 = vsel %vm609_vm1, %v3069_v34, 0.0  ;;  %v4750_v11 = vld [vmem:[%s6907_s19 + $0x10] sm:$0xff]  }
 0x6cb   : > { %v2965_v32 = vpop.xlane.xlu1 %2964  ;;  %4582 = vmatpush3.bf16.msra.mxu0 %v4749_v2 }
 0x6cc   : > { %v6925_v31 = vsub.f32 %v6734_v38, %v3006_v25  ;;  %v3009_v17 = vmul.f32 0.015625, %v2965_v32  ;;  %v3140_v50 = vsel %vm609_vm1, %v3068_v45, 0.0  ;;  %v3071_v56 = vmul.f32 %v6919_v48, %v6919_v48  ;;  %4583 = vmatprep.subr.bf16.mxu0 %v4750_v11 }
 0x6cd   : > { %3144 = vadd.xlane.f32.xlu1 %v3143_v0  ;;  %3141 = vadd.xlane.f32.xlu0 %v3140_v50  ;;  %v2962_v24 = vpop.xlane.xlu0 %2961 }
 0x6ce   : > { %v6932_v8 = vsub.f32 %v6746_v51, %v3009_v17  ;;  %v3008_v34 = vmul.f32 0.015625, %v2962_v24  ;;  %v3070_v25 = vmul.f32 %v6925_v31, %v6925_v31  ;;  %v3149_v32 = vsel %vm609_vm1, %v3071_v56, 0.0  ;;  %v4751_v17 = vld [vmem:[%s6907_s19 + $0x18] sm:$0xff]   ;;  %s3741_s19 = scalar_lea.vmem %s7605_s12, %s4939_s25 }
 0x6cf   : > { %v2971_v16 = vpop.xlane.xlu1 %2970  ;;  %4584 = vmatpush3.bf16.msra.mxu0 %v4750_v11 }
 0x6d0   : > { %v6938_v45 = vsub.f32 %v6744_v22, %v3008_v34  ;;  %v3011_v38 = vmul.f32 0.015625, %v2971_v16  ;;  %v3146_v19 = vsel %vm609_vm1, %v3070_v25, 0.0  ;;  %v3073_v0 = vmul.f32 %v6932_v8, %v6932_v8  ;;  %4585 = vmatprep.subr.bf16.mxu0 %v4751_v17 }
 0x6d1   : > { %3150 = vadd.xlane.f32.xlu1 %v3149_v32  ;;  %3147 = vadd.xlane.f32.xlu0 %v3146_v19  ;;  %v2968_v50 = vpop.xlane.xlu0 %2967 }
 0x6d2   : > { %v6945_v24 = vsub.f32 %v6750_v54, %v3011_v38  ;;  %v3010_v51 = vmul.f32 0.015625, %v2968_v50  ;;  %v3072_v56 = vmul.f32 %v6938_v45, %v6938_v45  ;;  %v3155_v34 = vsel %vm609_vm1, %v3073_v0, 0.0 }
 0x6d3   : > { %v2977_v2 = vpop.xlane.xlu1 %2976  ;;  %4586 = vmatpush3.bf16.msra.mxu0 %v4751_v17 }
 0x6d4   : > { %v6951_v25 = vsub.f32 %v6755_v49, %v3010_v51  ;;  %v3013_v16 = vmul.f32 0.015625, %v2977_v2  ;;  %v3152_v22 = vsel %vm609_vm1, %v3072_v56, 0.0  ;;  %v3075_v19 = vmul.f32 %v6945_v24, %v6945_v24 }
 0x6d5   : > { %3156 = vadd.xlane.f32.xlu1 %v3155_v34  ;;  %3153 = vadd.xlane.f32.xlu0 %v3152_v22  ;;  %v2974_v38 = vpop.xlane.xlu0 %2973 }
 0x6d6   : > { %v6957_v32 = vsub.f32 %v6766_v6, %v3013_v16  ;;  %v3012_v50 = vmul.f32 0.015625, %v2974_v38  ;;  %v3074_v11 = vmul.f32 %v6951_v25, %v6951_v25  ;;  %v3161_v51 = vsel %vm609_vm1, %v3075_v19, 0.0 }
 0x6d7   : > { %v2983_v0 = vpop.xlane.xlu1 %2982 }
 0x6d8   : > { %v6963_v56 = vsub.f32 %v6764_v42, %v3012_v50  ;;  %v3015_v2 = vmul.f32 0.015625, %v2983_v0  ;;  %v3158_v54 = vsel %vm609_vm1, %v3074_v11, 0.0  ;;  %v3077_v22 = vmul.f32 %v6957_v32, %v6957_v32 }
 0x6d9   : > { %3162 = vadd.xlane.f32.xlu1 %v3161_v51  ;;  %3159 = vadd.xlane.f32.xlu0 %v3158_v54  ;;  %v2980_v34 = vpop.xlane.xlu0 %2979 }
 0x6da   : > { %v6969_v16 = vsub.f32 %v6770_v63, %v3015_v2  ;;  %v3014_v38 = vmul.f32 0.015625, %v2980_v34  ;;  %v3076_v19 = vmul.f32 %v6963_v56, %v6963_v56  ;;  %v3167_v50 = vsel %vm609_vm1, %v3077_v22, 0.0 }
 0x6dc   : > { %v6974_v17 = vsub.f32 %v6774_v35, %v3014_v38  ;;  %v3164_v11 = vsel %vm609_vm1, %v3076_v19, 0.0  ;;  %v3079_v0 = vmul.f32 %v6969_v16, %v6969_v16 }
 0x6dd   : > { %3168 = vadd.xlane.f32.xlu1 %v3167_v50  ;;  %3165 = vadd.xlane.f32.xlu0 %v3164_v11 }
 0x6de   : > { %v3078_v54 = vmul.f32 %v6974_v17, %v6974_v17  ;;  %v3173_v51 = vsel %vm609_vm1, %v3079_v0, 0.0 }
 0x6e0   : > { %v3170_v2 = vsel %vm609_vm1, %v3078_v54, 0.0 }
 0x6e1   : > { %3174 = vadd.xlane.f32.xlu1 %v3173_v51  ;;  %3171 = vadd.xlane.f32.xlu0 %v3170_v2 }
 0x72e   : > { %v3082_v34 = vpop.xlane.xlu0 %3081 }
 0x72f   : > { %v3176_v38 = vmul.f32 0.015625, %v3082_v34 }
 0x730   : > { %v3085_v6 = vpop.xlane.xlu1 %3084 }
 0x731   : > { %v3208_v22 = vadd.f32 1e-06, %v3176_v38  ;;  %v3177_v63 = vmul.f32 0.015625, %v3085_v6 }
 0x732   : > { %v3088_v19 = vpop.xlane.xlu0 %3087 }
 0x733   : > { %4820 = vrsqrt.f32 %v3208_v22  ;;  %v3209_v42 = vadd.f32 1e-06, %v3177_v63  ;;  %v3178_v35 = vmul.f32 0.015625, %v3088_v19 }
 0x735   : > { %4822 = vrsqrt.f32 %v3209_v42  ;;  %v3210_v50 = vadd.f32 1e-06, %v3178_v35 }
 0x736   : > { %v3091_v11 = vpop.xlane.xlu1 %3090 }
 0x737   : > { %v3179_v49 = vmul.f32 0.015625, %v3091_v11  ;;  %4824 = vrsqrt.f32 %v3210_v50 }
 0x739   : > { %v3211_v33 = vadd.f32 1e-06, %v3179_v49 }
 0x73a   : > { %v3097_v0 = vpop.xlane.xlu1 %3096  ;;  %v3094_v1 = vpop.xlane.xlu0 %3093 }
 0x73b   : > { %4826 = vrsqrt.f32 %v3211_v33  ;;  %v3181_v54 = vmul.f32 0.015625, %v3097_v0  ;;  %v3180_v51 = vmul.f32 0.015625, %v3094_v1 }
 0x73d   : > { %v4821_v2 = vpop.eup %4820  ;;  %v3213_v34 = vadd.f32 1e-06, %v3181_v54  ;;  %v3212_v30 = vadd.f32 1e-06, %v3180_v51 }
 0x73e   : > { %v3103_v38 = vpop.xlane.xlu1 %3102  ;;  %v3100_v6 = vpop.xlane.xlu0 %3099  ;;  %v3272_v42 = vmul.f32 %v4821_v2, %v6783_v26 }
 0x73f   : > { %v4823_v44 = vpop.eup %4822  ;;  %4828 = vrsqrt.f32 %v3213_v34  ;;  %v3183_v63 = vmul.f32 0.015625, %v3103_v38  ;;  %v3182_v22 = vmul.f32 0.015625, %v3100_v6 }
 0x740   : > { %4830 = vrsqrt.f32 %v3212_v30  ;;  %v3273_v35 = vmul.f32 %v4823_v44, %v6786_v53 }
 0x741   : > { %v3215_v49 = vadd.f32 1e-06, %v3183_v63  ;;  %v3214_v19 = vadd.f32 1e-06, %v3182_v22  ;;  %v4825_v1 = vpop.eup %4824 }
 0x742   : > { %v3109_v50 = vpop.xlane.xlu1 %3108  ;;  %v3106_v33 = vpop.xlane.xlu0 %3105  ;;  %v3316_v11 = vpack.c.bf16 %v3273_v35, %v3272_v42  ;;  %v3274_v30 = vmul.f32 %v4825_v1, %v6791_v58 }
 0x743   : > { %4832 = vrsqrt.f32 %v3215_v49  ;;  %v3185_v0 = vmul.f32 0.015625, %v3109_v50  ;;  %v3184_v54 = vmul.f32 0.015625, %v3106_v33 }
 0x744   : > { %4834 = vrsqrt.f32 %v3214_v19  ;;  %4587 = vmatprep.mubr.msk.bf16.mxu0 %vm609_vm1, %v3316_v11 }
 0x745   : > { %v4827_v51 = vpop.eup %4826  ;;  %v3217_v34 = vadd.f32 1e-06, %v3185_v0  ;;  %v3216_v38 = vadd.f32 1e-06, %v3184_v54 }
 0x746   : > { %v3275_v26 = vmul.f32 %v4827_v51, %v6800_v4  ;;  %v3115_v44 = vpop.xlane.xlu1 %3114  ;;  %v3112_v53 = vpop.xlane.xlu0 %3111 }
 0x747   : > { %4836 = vrsqrt.f32 %v3217_v34  ;;  %v3187_v2 = vmul.f32 0.015625, %v3115_v44  ;;  %v3186_v6 = vmul.f32 0.015625, %v3112_v53 }
 0x748   : > { %4838 = vrsqrt.f32 %v3216_v38  ;;  %v3317_v63 = vpack.c.bf16 %v3275_v26, %v3274_v30 }
 0x749   : > { %v4829_v22 = vpop.eup %4828  ;;  %v3219_v42 = vadd.f32 1e-06, %v3187_v2  ;;  %v3218_v35 = vadd.f32 1e-06, %v3186_v6 }
 0x74a   : > { %v4831_v49 = vpop.eup %4830  ;;  %v3121_v19 = vpop.xlane.xlu1 %3120  ;;  %4588 = vmatmul.mubr.msk.bf16.vlgmr.msra.gmra.mrb[36].mxu0 %vm609_vm1, %v3317_v63  ;;  %v3277_v33 = vmul.f32 %v4829_v22, %v6804_v60 }
 0x74b   : > { %v3118_v50 = vpop.xlane.xlu0 %3117  ;;  %4840 = vrsqrt.f32 %v3219_v42  ;;  %v3189_v58 = vmul.f32 0.015625, %v3121_v19  ;;  %v3276_v11 = vmul.f32 %v4831_v49, %v6809_v3 }
 0x74c   : > { %v3188_v4 = vmul.f32 0.015625, %v3118_v50  ;;  %4842 = vrsqrt.f32 %v3218_v35 }
 0x74d   : > { %v4833_v1 = vpop.eup %4832  ;;  %v3221_v0 = vadd.f32 1e-06, %v3189_v58  ;;  %v3318_v51 = vpack.c.bf16 %v3277_v33, %v3276_v11 }
 0x74e   : > { %v3220_v54 = vadd.f32 1e-06, %v3188_v4  ;;  %v4835_v34 = vpop.eup %4834  ;;  %v3127_v38 = vpop.xlane.xlu1 %3126  ;;  %v3279_v26 = vmul.f32 %v4833_v1, %v6815_v52 }
 0x74f   : > { %v3124_v30 = vpop.xlane.xlu0 %3123  ;;  %4844 = vrsqrt.f32 %v3221_v0  ;;  %v3191_v44 = vmul.f32 0.015625, %v3127_v38  ;;  %4591 = vmatprep.mubr.msk.bf16.mxu0 %vm609_vm1, %v3318_v51  ;;  %v3278_v53 = vmul.f32 %v4835_v34, %v6821_v41 }
 0x750   : > { %v3190_v60 = vmul.f32 0.015625, %v3124_v30  ;;  %4846 = vrsqrt.f32 %v3220_v54 }
 0x751   : > { %v4837_v2 = vpop.eup %4836  ;;  %v3223_v3 = vadd.f32 1e-06, %v3191_v44  ;;  %v3319_v63 = vpack.c.bf16 %v3279_v26, %v3278_v53 }
 0x752   : > { %v3222_v6 = vadd.f32 1e-06, %v3190_v60  ;;  %v4839_v22 = vpop.eup %4838  ;;  %v3133_v42 = vpop.xlane.xlu1 %3132  ;;  %v3281_v49 = vmul.f32 %v4837_v2, %v6827_v46 }
 0x753   : > { %v3130_v35 = vpop.xlane.xlu0 %3129  ;;  %4848 = vrsqrt.f32 %v3223_v3  ;;  %v3193_v19 = vmul.f32 0.015625, %v3133_v42  ;;  %4592 = vmatmul.mubr.msk.bf16.gmra.mrb[40].mxu0 %vm609_vm1, %v3319_v63  ;;  %v3280_v50 = vmul.f32 %v4839_v22, %v6833_v21 }
 0x754   : > { %v3192_v52 = vmul.f32 0.015625, %v3130_v35  ;;  %4850 = vrsqrt.f32 %v3222_v6 }
 0x755   : > { %v4841_v33 = vpop.eup %4840  ;;  %v3225_v41 = vadd.f32 1e-06, %v3193_v19  ;;  %v3320_v4 = vpack.c.bf16 %v3281_v49, %v3280_v50 }
 0x756   : > { %v3224_v58 = vadd.f32 1e-06, %v3192_v52  ;;  %v4843_v11 = vpop.eup %4842  ;;  %v3139_v1 = vpop.xlane.xlu1 %3138  ;;  %v3283_v54 = vmul.f32 %v4841_v33, %v6839_v55 }
 0x757   : > { %v3136_v0 = vpop.xlane.xlu0 %3135  ;;  %4852 = vrsqrt.f32 %v3225_v41  ;;  %v3195_v51 = vmul.f32 0.015625, %v3139_v1  ;;  %4595 = vmatprep.mubr.msk.bf16.mxu0 %vm609_vm1, %v3320_v4  ;;  %v3282_v34 = vmul.f32 %v4843_v11, %v6845_v23 }
 0x758   : > { %v3194_v46 = vmul.f32 0.015625, %v3136_v0  ;;  %4854 = vrsqrt.f32 %v3224_v58 }
 0x759   : > { %v4845_v38 = vpop.eup %4844  ;;  %v3227_v21 = vadd.f32 1e-06, %v3195_v51  ;;  %v3321_v26 = vpack.c.bf16 %v3283_v54, %v3282_v34 }
 0x75a   : > { %v3226_v30 = vadd.f32 1e-06, %v3194_v46  ;;  %v4847_v44 = vpop.eup %4846  ;;  %v3145_v60 = vpop.xlane.xlu1 %3144  ;;  %v3285_v2 = vmul.f32 %v4845_v38, %v6851_v36 }
 0x75b   : > { %v3142_v53 = vpop.xlane.xlu0 %3141  ;;  %4856 = vrsqrt.f32 %v3227_v21  ;;  %v3197_v3 = vmul.f32 0.015625, %v3145_v60  ;;  %4596 = vmatmul.mubr.msk.bf16.gmra.mrb[44].mxu0 %vm609_vm1, %v3321_v26  ;;  %v3284_v6 = vmul.f32 %v4847_v44, %v6857_v40 }
 0x75c   : > { %v3196_v55 = vmul.f32 0.015625, %v3142_v53  ;;  %4858 = vrsqrt.f32 %v3226_v30 }
 0x75d   : > { %v4849_v63 = vpop.eup %4848  ;;  %v3229_v23 = vadd.f32 1e-06, %v3197_v3  ;;  %v3322_v42 = vpack.c.bf16 %v3285_v2, %v3284_v6 }
 0x75e   : > { %v3228_v22 = vadd.f32 1e-06, %v3196_v55  ;;  %v4851_v35 = vpop.eup %4850  ;;  %v3151_v49 = vpop.xlane.xlu1 %3150  ;;  %v3287_v52 = vmul.f32 %v4849_v63, %v6863_v37 }
 0x75f   : > { %v3148_v19 = vpop.xlane.xlu0 %3147  ;;  %4860 = vrsqrt.f32 %v3229_v23  ;;  %v3199_v50 = vmul.f32 0.015625, %v3151_v49  ;;  %4599 = vmatprep.mubr.msk.bf16.mxu0 %vm609_vm1, %v3322_v42  ;;  %v3286_v33 = vmul.f32 %v4851_v35, %v6869_v15 }
 0x760   : > { %v3198_v36 = vmul.f32 0.015625, %v3148_v19  ;;  %4862 = vrsqrt.f32 %v3228_v22 }
 0x761   : > { %v4853_v41 = vpop.eup %4852  ;;  %v3231_v40 = vadd.f32 1e-06, %v3199_v50  ;;  %v3323_v4 = vpack.c.bf16 %v3287_v52, %v3286_v33 }
 0x762   : > { %v3230_v58 = vadd.f32 1e-06, %v3198_v36  ;;  %v4855_v11 = vpop.eup %4854  ;;  %v3157_v1 = vpop.xlane.xlu1 %3156  ;;  %v3289_v54 = vmul.f32 %v4853_v41, %v6875_v18 }
 0x763   : > { %v3154_v0 = vpop.xlane.xlu0 %3153  ;;  %4864 = vrsqrt.f32 %v3231_v40  ;;  %v3201_v51 = vmul.f32 0.015625, %v3157_v1  ;;  %4600 = vmatmul.mubr.msk.bf16.gmra.mrb[48].mxu0 %vm609_vm1, %v3323_v4  ;;  %v3288_v46 = vmul.f32 %v4855_v11, %v6881_v5 }
 0x764   : > { %v3200_v37 = vmul.f32 0.015625, %v3154_v0  ;;  %4866 = vrsqrt.f32 %v3230_v58 }
 0x765   : > { %v4857_v34 = vpop.eup %4856  ;;  %v3233_v15 = vadd.f32 1e-06, %v3201_v51  ;;  %v3324_v21 = vpack.c.bf16 %v3289_v54, %v3288_v46 }
 0x766   : > { %v3232_v38 = vadd.f32 1e-06, %v3200_v37  ;;  %v4859_v30 = vpop.eup %4858  ;;  %v3163_v26 = vpop.xlane.xlu1 %3162  ;;  %v3291_v60 = vmul.f32 %v4857_v34, %v6887_v47 }
 0x767   : > { %v3160_v44 = vpop.xlane.xlu0 %3159  ;;  %4868 = vrsqrt.f32 %v3233_v15  ;;  %v3203_v53 = vmul.f32 0.015625, %v3163_v26  ;;  %4603 = vmatprep.mubr.msk.bf16.mxu0 %vm609_vm1, %v3324_v21  ;;  %v3290_v2 = vmul.f32 %v4859_v30, %v6893_v14 }
 0x768   : > { %v3202_v18 = vmul.f32 0.015625, %v3160_v44  ;;  %4870 = vrsqrt.f32 %v3232_v38 }
 0x769   : > { %v4861_v3 = vpop.eup %4860  ;;  %v3235_v5 = vadd.f32 1e-06, %v3203_v53  ;;  %v3325_v6 = vpack.c.bf16 %v3291_v60, %v3290_v2  ;;  %v4755_v2 = vld [vmem:[%s3732_s24 + $0x18] sm:$0xff]  }
 0x76a   : > { %v3234_v55 = vadd.f32 1e-06, %v3202_v18  ;;  %v4863_v63 = vpop.eup %4862  ;;  %v3169_v23 = vpop.xlane.xlu1 %3168  ;;  %v3293_v42 = vmul.f32 %v4861_v3, %v6899_v20  ;;  %v4753_v18 = vld [vmem:[%s3732_s24 + $0x8] sm:$0xff]  }
 0x76b   : > { %v3166_v22 = vpop.xlane.xlu0 %3165  ;;  %4872 = vrsqrt.f32 %v3235_v5  ;;  %v3205_v35 = vmul.f32 0.015625, %v3169_v23  ;;  %4604 = vmatmul.mubr.msk.bf16.gmra.mrb[52].mxu0 %vm609_vm1, %v3325_v6  ;;  %v3292_v49 = vmul.f32 %v4863_v63, %v6912_v39 }
 0x76c   : > { %v3204_v47 = vmul.f32 0.015625, %v3166_v22  ;;  %4874 = vrsqrt.f32 %v3234_v55 }
 0x76d   : > { %v4865_v19 = vpop.eup %4864  ;;  %v3237_v14 = vadd.f32 1e-06, %v3205_v35  ;;  %v3326_v50 = vpack.c.bf16 %v3293_v42, %v3292_v49 }
 0x76e   : > { %v3236_v52 = vadd.f32 1e-06, %v3204_v47  ;;  %v4867_v36 = vpop.eup %4866  ;;  %v3175_v33 = vpop.xlane.xlu1 %3174  ;;  %v3295_v40 = vmul.f32 %v4865_v19, %v6919_v48 }
 0x76f   : > { %v3172_v41 = vpop.xlane.xlu0 %3171  ;;  %4876 = vrsqrt.f32 %v3237_v14  ;;  %v3207_v58 = vmul.f32 0.015625, %v3175_v33  ;;  %4607 = vmatprep.mubr.msk.bf16.mxu0 %vm609_vm1, %v3326_v50  ;;  %v3294_v4 = vmul.f32 %v4867_v36, %v6925_v31 }
 0x770   : > { %v3206_v20 = vmul.f32 0.015625, %v3172_v41  ;;  %4878 = vrsqrt.f32 %v3236_v52 }
 0x771   : > { %v4869_v11 = vpop.eup %4868  ;;  %v3239_v39 = vadd.f32 1e-06, %v3207_v58  ;;  %v3327_v0 = vpack.c.bf16 %v3295_v40, %v3294_v4 }
 0x772   : > { %v3238_v1 = vadd.f32 1e-06, %v3206_v20  ;;  %v4871_v54 = vpop.eup %4870  ;;  %v3297_v51 = vmul.f32 %v4869_v11, %v6932_v8 }
 0x773   : > { %4880 = vrsqrt.f32 %v3239_v39  ;;  %4608 = vmatmul.mubr.msk.bf16.gmra.mrb[56].mxu0 %vm609_vm1, %v3327_v0  ;;  %v3296_v48 = vmul.f32 %v4871_v54, %v6938_v45 }
 0x774   : > { %4882 = vrsqrt.f32 %v3238_v1 }
 0x775   : > { %v4873_v37 = vpop.eup %4872  ;;  %v3328_v46 = vpack.c.bf16 %v3297_v51, %v3296_v48 }
 0x776   : > { %v4875_v34 = vpop.eup %4874  ;;  %v3299_v15 = vmul.f32 %v4873_v37, %v6945_v24 }
 0x777   : > { %4611 = vmatprep.mubr.msk.bf16.mxu0 %vm609_vm1, %v3328_v46  ;;  %v3298_v31 = vmul.f32 %v4875_v34, %v6951_v25 }
 0x779   : > { %v4877_v38 = vpop.eup %4876  ;;  %v3329_v21 = vpack.c.bf16 %v3299_v15, %v3298_v31 }
 0x77a   : > { %v4879_v30 = vpop.eup %4878  ;;  %v3301_v8 = vmul.f32 %v4877_v38, %v6957_v32  ;;  %v4752_v32 = vld [vmem:[%s3732_s24] sm:$0xff]  }
 0x77b   : > { %4612 = vmatmul.mubr.msk.bf16.gmra.mrb[60].mxu0 %vm609_vm1, %v3329_v21  ;;  %v3300_v45 = vmul.f32 %v4879_v30, %v6963_v56  ;;  %4619 = vmatprep.subr.bf16.mxu1 %v4752_v32  ;;  %v4754_v56 = vld [vmem:[%s3732_s24 + $0x10] sm:$0xff]  }
 0x77c   : > { %4620 = vmatpush3.bf16.msra.mxu1 %v4752_v32 }
 0x77d   : > { %v4881_v26 = vpop.eup %4880  ;;  %v3330_v44 = vpack.c.bf16 %v3301_v8, %v3300_v45  ;;  %4621 = vmatprep.subr.bf16.mxu1 %v4753_v18 }
 0x77e   : > { %v4883_v60 = vpop.eup %4882  ;;  %v3303_v24 = vmul.f32 %v4881_v26, %v6969_v16  ;;  %v7040_v16 = vld [vmem:[%s3314_s16] ss:$0 sm:$0xff] }
 0x77f   : > { %4615 = vmatprep.mubr.msk.bf16.mxu0 %vm609_vm1, %v3330_v44  ;;  %v3302_v53 = vmul.f32 %v4883_v60, %v6974_v17 }
 0x780   : > { %4622 = vmatpush3.bf16.msra.mxu1 %v4753_v18 }
 0x781   : > { %v3331_v25 = vpack.c.bf16 %v3303_v24, %v3302_v53  ;;  %4623 = vmatprep.subr.bf16.mxu1 %v4754_v56 }
 0x783   : > { %4616 = vmatmul.mubr.msk.bf16.gmra.mrb[64].mxu0 %vm609_vm1, %v3331_v25 }
 0x784   : > { %4624 = vmatpush3.bf16.msra.mxu1 %v4754_v56 }
 0x785   : > { %4625 = vmatprep.subr.bf16.mxu1 %v4755_v2 }
 0x788   : > { %4626 = vmatpush3.bf16.msra.mxu1 %v4755_v2 }
 0x81d   : > { %v4589_v17 = vpop.f32.mrb[36].mxu0 }
 0x81e   : > { %v7043_v3 = vadd.f32 %v4589_v17, %v7040_v16  ;;  %v3444_v5 = vpop.f32.mrb[37].mxu0 }
 0x81f   : > { %v7046_v55 = vadd.f32 %v7040_v16, %v3444_v5  ;;  %v4590_v6 = vpop.f32.mrb[38].mxu0 }
 0x820   : > { %3607 = vrot.lane.b32.xlu1 %v7043_v3, %s4958_s17  ;;  %v3447_v63 = vpop.f32.mrb[39].mxu0  ;;  %v7058_v22 = vadd.f32 %v4590_v6, %v7040_v16 }
 0x821   : > { %v7051_v23 = vadd.f32 %v7040_v16, %v3447_v63  ;;  %3603 = vrot.lane.b32.xlu0 %v7046_v55, %s4958_s17 }
 0x824   : > { %3605 = vrot.lane.b32.xlu1 %v7051_v23, %s4958_s17 }
 0x826   : > { %v4593_v42 = vpop.f32.mrb[40].mxu0 }
 0x827   : > { %v3460_v35 = vpop.f32.mrb[41].mxu0  ;;  %v7071_v52 = vadd.f32 %v4593_v42, %v7040_v16 }
 0x828   : > { %v7061_v47 = vadd.f32 %v7040_v16, %v3460_v35  ;;  %v4594_v49 = vpop.f32.mrb[42].mxu0  ;;  %3609 = vrot.lane.b32.xlu1 %v7058_v22, %s4958_s17 }
 0x829   : > { %v3463_v19 = vpop.f32.mrb[43].mxu0  ;;  %v7076_v50 = vadd.f32 %v4594_v49, %v7040_v16 }
 0x82a   : > { %v7066_v14 = vadd.f32 %v7040_v16, %v3463_v19  ;;  %3611 = vrot.lane.b32.xlu0 %v7061_v47, %s4958_s17 }
 0x82c   : > { %3613 = vrot.lane.b32.xlu1 %v7066_v14, %s4958_s17 }
 0x82e   : > { %3615 = vrot.lane.b32.xlu0 %v7071_v52, %s4958_s17  ;;  %v4597_v36 = vpop.f32.mrb[44].mxu0 }
 0x82f   : > { %v3476_v33 = vpop.f32.mrb[45].mxu0  ;;  %v7091_v4 = vadd.f32 %v4597_v36, %v7040_v16 }
 0x830   : > { %v7081_v41 = vadd.f32 %v7040_v16, %v3476_v33  ;;  %v4598_v40 = vpop.f32.mrb[46].mxu0  ;;  %3617 = vrot.lane.b32.xlu1 %v7076_v50, %s4958_s17 }
 0x831   : > { %v3479_v58 = vpop.f32.mrb[47].mxu0  ;;  %v7096_v11 = vadd.f32 %v4598_v40, %v7040_v16 }
 0x832   : > { %v7086_v20 = vadd.f32 %v7040_v16, %v3479_v58  ;;  %3619 = vrot.lane.b32.xlu0 %v7081_v41, %s4958_s17 }
 0x834   : > { %3621 = vrot.lane.b32.xlu1 %v7086_v20, %s4958_s17 }
 0x836   : > { %3623 = vrot.lane.b32.xlu0 %v7091_v4, %s4958_s17  ;;  %v4601_v39 = vpop.f32.mrb[48].mxu0 }
 0x837   : > { %v3492_v1 = vpop.f32.mrb[49].mxu0  ;;  %v7111_v37 = vadd.f32 %v4601_v39, %v7040_v16 }
 0x838   : > { %v7101_v0 = vadd.f32 %v7040_v16, %v3492_v1  ;;  %v4602_v54 = vpop.f32.mrb[50].mxu0  ;;  %3625 = vrot.lane.b32.xlu1 %v7096_v11, %s4958_s17 }
 0x839   : > { %v3495_v51 = vpop.f32.mrb[51].mxu0  ;;  %v7116_v46 = vadd.f32 %v4602_v54, %v7040_v16 }
 0x83a   : > { %v7106_v48 = vadd.f32 %v7040_v16, %v3495_v51  ;;  %3627 = vrot.lane.b32.xlu0 %v7101_v0, %s4958_s17 }
 0x83c   : > { %3629 = vrot.lane.b32.xlu1 %v7106_v48, %s4958_s17 }
 0x83e   : > { %3631 = vrot.lane.b32.xlu0 %v7111_v37, %s4958_s17  ;;  %v4605_v34 = vpop.f32.mrb[52].mxu0 }
 0x83f   : > { %v3508_v15 = vpop.f32.mrb[53].mxu0  ;;  %v7131_v8 = vadd.f32 %v4605_v34, %v7040_v16 }
 0x840   : > { %v7121_v31 = vadd.f32 %v7040_v16, %v3508_v15  ;;  %v4606_v38 = vpop.f32.mrb[54].mxu0  ;;  %3633 = vrot.lane.b32.xlu1 %v7116_v46, %s4958_s17 }
 0x841   : > { %v3511_v21 = vpop.f32.mrb[55].mxu0  ;;  %v7136_v45 = vadd.f32 %v4606_v38, %v7040_v16 }
 0x842   : > { %v7126_v30 = vadd.f32 %v7040_v16, %v3511_v21  ;;  %3635 = vrot.lane.b32.xlu0 %v7121_v31, %s4958_s17 }
 0x844   : > { %3637 = vrot.lane.b32.xlu1 %v7126_v30, %s4958_s17 }
 0x846   : > { %3639 = vrot.lane.b32.xlu0 %v7131_v8, %s4958_s17  ;;  %v4609_v26 = vpop.f32.mrb[56].mxu0 }
 0x847   : > { %v3524_v44 = vpop.f32.mrb[57].mxu0  ;;  %v7151_v32 = vadd.f32 %v4609_v26, %v7040_v16 }
 0x848   : > { %v7141_v60 = vadd.f32 %v7040_v16, %v3524_v44  ;;  %v4610_v24 = vpop.f32.mrb[58].mxu0  ;;  %3641 = vrot.lane.b32.xlu1 %v7136_v45, %s4958_s17 }
 0x849   : > { %v3527_v53 = vpop.f32.mrb[59].mxu0  ;;  %v7156_v18 = vadd.f32 %v4610_v24, %v7040_v16 }
 0x84a   : > { %v7146_v25 = vadd.f32 %v7040_v16, %v3527_v53  ;;  %3643 = vrot.lane.b32.xlu0 %v7141_v60, %s4958_s17 }
 0x84c   : > { %3645 = vrot.lane.b32.xlu1 %v7146_v25, %s4958_s17 }
 0x84e   : > { %3647 = vrot.lane.b32.xlu0 %v7151_v32, %s4958_s17  ;;  %v4613_v56 = vpop.f32.mrb[60].mxu0 }
 0x84f   : > { %v3540_v17 = vpop.f32.mrb[61].mxu0  ;;  %v7171_v42 = vadd.f32 %v4613_v56, %v7040_v16 }
 0x850   : > { %v7161_v2 = vadd.f32 %v7040_v16, %v3540_v17  ;;  %v4614_v5 = vpop.f32.mrb[62].mxu0  ;;  %3649 = vrot.lane.b32.xlu1 %v7156_v18, %s4958_s17 }
 0x851   : > { %v3543_v6 = vpop.f32.mrb[63].mxu0  ;;  %v7176_v35 = vadd.f32 %v4614_v5, %v7040_v16 }
 0x852   : > { %v7166_v63 = vadd.f32 %v7040_v16, %v3543_v6  ;;  %3651 = vrot.lane.b32.xlu0 %v7161_v2, %s4958_s17 }
 0x854   : > { %3653 = vrot.lane.b32.xlu1 %v7166_v63, %s4958_s17 }
 0x856   : > { %3655 = vrot.lane.b32.xlu0 %v7171_v42, %s4958_s17  ;;  %v4617_v49 = vpop.f32.mrb[64].mxu0 }
 0x857   : > { %v3556_v19 = vpop.f32.mrb[65].mxu0  ;;  %v7194_v1 = vadd.f32 %v4617_v49, %v7040_v16 }
 0x858   : > { %v7181_v36 = vadd.f32 %v7040_v16, %v3556_v19  ;;  %v4618_v33 = vpop.f32.mrb[66].mxu0  ;;  %3657 = vrot.lane.b32.xlu1 %v7176_v35, %s4958_s17 }
 0x859   : > { %v7186_v40 = vadd.f32 %v4618_v33, %v7040_v16  ;;  %v3559_v58 = vpop.f32.mrb[67].mxu0 }
 0x85a   : > { %v7189_v39 = vadd.f32 %v7040_v16, %v3559_v58  ;;  %3659 = vrot.lane.b32.xlu0 %v7181_v36, %s4958_s17 }
 0x85c   : > { %3661 = vrot.lane.b32.xlu1 %v7189_v39, %s4958_s17 }
 0x85e   : > { %3663 = vrot.lane.b32.xlu0 %v7194_v1, %s4958_s17 }
 0x860   : > { %3665 = vrot.lane.b32.xlu1 %v7186_v40, %s4958_s17 }
 0x892   : > { %v3608_v54 = vpop.permute.xlu1 %3607 }
 0x893   : > { %v3604_v51 = vpop.permute.xlu0 %3603  ;;  %v3701_v16 = vmul.f32 %v3608_v54, %v7043_v3 }
 0x894   : > { %v3699_v15 = vmul.f32 %v3604_v51, %v7046_v55 }
 0x896   : > { %v3606_v34 = vpop.permute.xlu1 %3605 }
 0x897   : > { %v3700_v38 = vmul.f32 %v3606_v34, %v7051_v23 }
 0x899   : > { %v3743_v21 = vpack.c.bf16 %v3700_v38, %v3699_v15 }
 0x89a   : > { %v3610_v26 = vpop.permute.xlu1 %3609 }
 0x89b   : > { %v3702_v44 = vmul.f32 %v3610_v26, %v7058_v22  ;;  %4627 = vmatprep.mubr.msk.bf16.mxu1 %vm609_vm1, %v3743_v21 }
 0x89c   : > { %v3612_v24 = vpop.permute.xlu0 %3611 }
 0x89d   : > { %v3744_v53 = vpack.c.bf16 %v3702_v44, %v3701_v16  ;;  %v3703_v17 = vmul.f32 %v3612_v24, %v7061_v47 }
 0x89e   : > { %v3614_v56 = vpop.permute.xlu1 %3613 }
 0x89f   : > { %v3704_v5 = vmul.f32 %v3614_v56, %v7066_v14  ;;  %4628 = vmatmul.mubr.msk.bf16.vlgmr.msra.gmra.mrb[36].mxu1 %vm609_vm1, %v3744_v53 }
 0x8a0   : > { %v3616_v55 = vpop.permute.xlu0 %3615 }
 0x8a1   : > { %v3745_v6 = vpack.c.bf16 %v3704_v5, %v3703_v17  ;;  %v3705_v49 = vmul.f32 %v3616_v55, %v7071_v52 }
 0x8a2   : > { %v3618_v23 = vpop.permute.xlu1 %3617 }
 0x8a3   : > { %v3706_v3 = vmul.f32 %v3618_v23, %v7076_v50  ;;  %4631 = vmatprep.mubr.msk.bf16.mxu1 %vm609_vm1, %v3745_v6 }
 0x8a4   : > { %v3620_v22 = vpop.permute.xlu0 %3619 }
 0x8a5   : > { %v3746_v19 = vpack.c.bf16 %v3706_v3, %v3705_v49  ;;  %v3707_v58 = vmul.f32 %v3620_v22, %v7081_v41 }
 0x8a6   : > { %v3622_v33 = vpop.permute.xlu1 %3621 }
 0x8a7   : > { %v3708_v47 = vmul.f32 %v3622_v33, %v7086_v20  ;;  %4632 = vmatmul.mubr.msk.bf16.gmra.mrb[40].mxu1 %vm609_vm1, %v3746_v19 }
 0x8a8   : > { %v3624_v14 = vpop.permute.xlu0 %3623 }
 0x8a9   : > { %v3747_v54 = vpack.c.bf16 %v3708_v47, %v3707_v58  ;;  %v3709_v34 = vmul.f32 %v3624_v14, %v7091_v4 }
 0x8aa   : > { %v3626_v51 = vpop.permute.xlu1 %3625 }
 0x8ab   : > { %v3710_v52 = vmul.f32 %v3626_v51, %v7096_v11  ;;  %4635 = vmatprep.mubr.msk.bf16.mxu1 %vm609_vm1, %v3747_v54 }
 0x8ac   : > { %v3628_v50 = vpop.permute.xlu0 %3627 }
 0x8ad   : > { %v3748_v15 = vpack.c.bf16 %v3710_v52, %v3709_v34  ;;  %v3711_v21 = vmul.f32 %v3628_v50, %v7101_v0 }
 0x8ae   : > { %v3630_v38 = vpop.permute.xlu1 %3629 }
 0x8af   : > { %v3712_v41 = vmul.f32 %v3630_v38, %v7106_v48  ;;  %4636 = vmatmul.mubr.msk.bf16.gmra.mrb[44].mxu1 %vm609_vm1, %v3748_v15 }
 0x8b0   : > { %v3632_v20 = vpop.permute.xlu0 %3631 }
 0x8b1   : > { %v3749_v26 = vpack.c.bf16 %v3712_v41, %v3711_v21  ;;  %v3713_v44 = vmul.f32 %v3632_v20, %v7111_v37 }
 0x8b2   : > { %v3634_v16 = vpop.permute.xlu1 %3633 }
 0x8b3   : > { %v3714_v4 = vmul.f32 %v3634_v16, %v7116_v46  ;;  %4639 = vmatprep.mubr.msk.bf16.mxu1 %vm609_vm1, %v3749_v26 }
 0x8b4   : > { %v3636_v11 = vpop.permute.xlu0 %3635 }
 0x8b5   : > { %v3750_v24 = vpack.c.bf16 %v3714_v4, %v3713_v44  ;;  %v3715_v56 = vmul.f32 %v3636_v11, %v7121_v31 }
 0x8b6   : > { %v3638_v53 = vpop.permute.xlu1 %3637 }
 0x8b7   : > { %v3716_v0 = vmul.f32 %v3638_v53, %v7126_v30  ;;  %4640 = vmatmul.mubr.msk.bf16.gmra.mrb[48].mxu1 %vm609_vm1, %v3750_v24 }
 0x8b8   : > { %v3640_v48 = vpop.permute.xlu0 %3639 }
 0x8b9   : > { %v3751_v17 = vpack.c.bf16 %v3716_v0, %v3715_v56  ;;  %v3717_v55 = vmul.f32 %v3640_v48, %v7131_v8 }
 0x8ba   : > { %v3642_v5 = vpop.permute.xlu1 %3641 }
 0x8bb   : > { %v3718_v37 = vmul.f32 %v3642_v5, %v7136_v45  ;;  %4643 = vmatprep.mubr.msk.bf16.mxu1 %vm609_vm1, %v3751_v17 }
 0x8bc   : > { %v3644_v46 = vpop.permute.xlu0 %3643 }
 0x8bd   : > { %v3752_v6 = vpack.c.bf16 %v3718_v37, %v3717_v55  ;;  %v3719_v49 = vmul.f32 %v3644_v46, %v7141_v60 }
 0x8be   : > { %v3646_v23 = vpop.permute.xlu1 %3645 }
 0x8bf   : > { %v3720_v31 = vmul.f32 %v3646_v23, %v7146_v25  ;;  %4644 = vmatmul.mubr.msk.bf16.gmra.mrb[52].mxu1 %vm609_vm1, %v3752_v6 }
 0x8c0   : > { %v3648_v30 = vpop.permute.xlu0 %3647 }
 0x8c1   : > { %v3753_v3 = vpack.c.bf16 %v3720_v31, %v3719_v49  ;;  %v3721_v19 = vmul.f32 %v3648_v30, %v7151_v32 }
 0x8c2   : > { %v3650_v22 = vpop.permute.xlu1 %3649 }
 0x8c3   : > { %v3722_v8 = vmul.f32 %v3650_v22, %v7156_v18  ;;  %4647 = vmatprep.mubr.msk.bf16.mxu1 %vm609_vm1, %v3753_v3 }
 0x8c4   : > { %v3652_v45 = vpop.permute.xlu0 %3651 }
 0x8c5   : > { %v3754_v33 = vpack.c.bf16 %v3722_v8, %v3721_v19  ;;  %v3723_v47 = vmul.f32 %v3652_v45, %v7161_v2 }
 0x8c6   : > { %v3654_v58 = vpop.permute.xlu1 %3653 }
 0x8c7   : > { %v3724_v60 = vmul.f32 %v3654_v58, %v7166_v63  ;;  %4648 = vmatmul.mubr.msk.bf16.gmra.mrb[56].mxu1 %vm609_vm1, %v3754_v33 }
 0x8c8   : > { %v3656_v25 = vpop.permute.xlu0 %3655 }
 0x8c9   : > { %v3755_v14 = vpack.c.bf16 %v3724_v60, %v3723_v47  ;;  %v3725_v51 = vmul.f32 %v3656_v25, %v7171_v42  ;;  %v7690_v25 = vld [vmem:[#allocation6_spill] sm:$0xff] }
 0x8ca   : > { %v3658_v54 = vpop.permute.xlu1 %3657 }
 0x8cb   : > { %v3726_v32 = vmul.f32 %v3658_v54, %v7176_v35  ;;  %4651 = vmatprep.mubr.msk.bf16.mxu1 %vm609_vm1, %v3755_v14 }
 0x8cc   : > { %v3660_v18 = vpop.permute.xlu0 %3659 }
 0x8cd   : > { %v3756_v34 = vpack.c.bf16 %v3726_v32, %v3725_v51  ;;  %v3727_v50 = vmul.f32 %v3660_v18, %v7181_v36  ;;  %v7254_v36 = vld [vmem:[%s3741_s19] ss:$0 sm:$0xff]  ;;  %v7692_v51 = vld [vmem:[#allocation5_spill] sm:$0xff] }
 0x8ce   : > { %v3662_v52 = vpop.permute.xlu1 %3661 }
 0x8cf   : > { %v3728_v2 = vmul.f32 %v3662_v52, %v7189_v39  ;;  %4652 = vmatmul.mubr.msk.bf16.gmra.mrb[60].mxu1 %vm609_vm1, %v3756_v34 }
 0x8d0   : > { %v3664_v63 = vpop.permute.xlu0 %3663 }
 0x8d1   : > { %v3757_v15 = vpack.c.bf16 %v3728_v2, %v3727_v50  ;;  %v3729_v21 = vmul.f32 %v3664_v63, %v7194_v1  ;;  %v7693_v2 = vld [vmem:[#allocation12_spill] sm:$0xff] }
 0x8d2   : > { %v3666_v38 = vpop.permute.xlu1 %3665 }
 0x8d3   : > { %v3730_v42 = vmul.f32 %v3666_v38, %v7186_v40  ;;  %4655 = vmatprep.mubr.msk.bf16.mxu1 %vm609_vm1, %v3757_v15 }
 0x8d5   : > { %v3758_v35 = vpack.c.bf16 %v3730_v42, %v3729_v21  ;;  %v7694_v21 = vld [vmem:[#allocation7_spill] sm:$0xff] }
 0x8d7   : > { %4656 = vmatmul.mubr.msk.bf16.gmra.mrb[64].mxu1 %vm609_vm1, %v3758_v35 }
 0x972   : > { %v4629_v39 = vpop.f32.mrb[36].mxu1 }
 0x973   : > { %v3880_v41 = vadd.f32 %v4629_v39, %v7254_v36  ;;  %v3871_v20 = vpop.f32.mrb[37].mxu1  ;;  %v7695_v39 = vld [vmem:[#allocation9_spill] sm:$0xff] }
 0x974   : > { %v3872_v26 = vadd.f32 %v7254_v36, %v3871_v20  ;;  %v4630_v1 = vpop.f32.mrb[38].mxu1  ;;  %v7696_v20 = vld [vmem:[#allocation10_spill] sm:$0xff] }
 0x975   : > { %v7259_v40 = vadd.f32 %v3880_v41, %v6627_v28  ;;  %v3883_v16 = vadd.f32 %v4630_v1, %v7254_v36  ;;  %v3874_v44 = vpop.f32.mrb[39].mxu1 }
 0x976   : > { %v7263_v4 = vadd.f32 %v3872_v26, %v6624_v29  ;;  %v3875_v11 = vadd.f32 %v7254_v36, %v3874_v44 }
 0x977   : > { %v7267_v24 = vadd.f32 %v3883_v16, %v6636_v62  ;;  %4036 = vst.msk [vmem:[#allocation2 + $0x10] sm:$0xff] (!%p4356_p7), %vm609_vm1, %v7259_v40 }
 0x978   : > { %v7270_v53 = vadd.f32 %v3875_v11, %v6630_v43  ;;  %4034 = vst.msk [vmem:[#allocation2] sm:$0xff] (!%p4356_p7), %vm609_vm1, %v7263_v4 }
 0x979   : > { %4037 = vst.msk [vmem:[#allocation2 + $0x18] sm:$0xff] (!%p4356_p7), %vm609_vm1, %v7267_v24 }
 0x97a   : > { %v4633_v56 = vpop.f32.mrb[40].mxu1  ;;  %4035 = vst.msk [vmem:[#allocation2 + $0x8] sm:$0xff] (!%p4356_p7), %vm609_vm1, %v7270_v53 }
 0x97b   : > { %v3896_v0 = vadd.f32 %v4633_v56, %v7254_v36  ;;  %v3887_v48 = vpop.f32.mrb[41].mxu1 }
 0x97c   : > { %v3888_v28 = vadd.f32 %v7254_v36, %v3887_v48  ;;  %v4634_v17 = vpop.f32.mrb[42].mxu1 }
 0x97d   : > { %v7275_v5 = vadd.f32 %v3896_v0, %v6654_v27  ;;  %v3899_v29 = vadd.f32 %v4634_v17, %v7254_v36  ;;  %v3890_v55 = vpop.f32.mrb[43].mxu1  ;;  %v7697_v0 = vld [vmem:[#allocation16_spill] sm:$0xff] }
 0x97e   : > { %v7279_v37 = vadd.f32 %v3888_v28, %v6644_v61  ;;  %v3891_v62 = vadd.f32 %v7254_v36, %v3890_v55 }
 0x97f   : > { %v7283_v43 = vadd.f32 %v3899_v29, %v6650_v10  ;;  %v7698_v29 = vld [vmem:[#allocation11_spill] sm:$0xff]  ;;  %4040 = vst.msk [vmem:[#allocation2 + $0x30] sm:$0xff] (!%p4356_p7), %vm609_vm1, %v7275_v5 }
 0x980   : > { %v7286_v46 = vadd.f32 %v3891_v62, %v6646_v9  ;;  %4038 = vst.msk [vmem:[#allocation2 + $0x20] sm:$0xff] (!%p4356_p7), %vm609_vm1, %v7279_v37 }
 0x981   : > { %4041 = vst.msk [vmem:[#allocation2 + $0x38] sm:$0xff] (!%p4356_p7), %vm609_vm1, %v7283_v43 }
 0x982   : > { %v4637_v6 = vpop.f32.mrb[44].mxu1  ;;  %4039 = vst.msk [vmem:[#allocation2 + $0x28] sm:$0xff] (!%p4356_p7), %vm609_vm1, %v7286_v46 }
 0x983   : > { %v3912_v23 = vadd.f32 %v4637_v6, %v7254_v36  ;;  %v3903_v49 = vpop.f32.mrb[45].mxu1  ;;  %v7699_v6 = vld [vmem:[#allocation13_spill] sm:$0xff] }
 0x984   : > { %v3904_v27 = vadd.f32 %v7254_v36, %v3903_v49  ;;  %v4638_v31 = vpop.f32.mrb[46].mxu1  ;;  %v7700_v49 = vld [vmem:[#allocation14_spill] sm:$0xff] }
 0x985   : > { %v7291_v30 = vadd.f32 %v3912_v23, %v6674_v13  ;;  %v3915_v61 = vadd.f32 %v4638_v31, %v7254_v36  ;;  %v3906_v3 = vpop.f32.mrb[47].mxu1 }
 0x986   : > { %v7295_v22 = vadd.f32 %v3904_v27, %v6664_v12  ;;  %v3907_v10 = vadd.f32 %v7254_v36, %v3906_v3 }
 0x987   : > { %v7299_v9 = vadd.f32 %v3915_v61, %v6670_v7  ;;  %4044 = vst.msk [vmem:[#allocation2 + $0x50] sm:$0xff] (!%p4356_p7), %vm609_vm1, %v7291_v30 }
 0x988   : > { %v7302_v19 = vadd.f32 %v3907_v10, %v6666_v59  ;;  %v7691_v59 = vld [vmem:[#allocation8_spill] sm:$0xff]  ;;  %4042 = vst.msk [vmem:[#allocation2 + $0x40] sm:$0xff] (!%p4356_p7), %vm609_vm1, %v7295_v22 }
 0x989   : > { %4045 = vst.msk [vmem:[#allocation2 + $0x58] sm:$0xff] (!%p4356_p7), %vm609_vm1, %v7299_v9 }
 0x98a   : > { %v4641_v8 = vpop.f32.mrb[48].mxu1  ;;  %4043 = vst.msk [vmem:[#allocation2 + $0x48] sm:$0xff] (!%p4356_p7), %vm609_vm1, %v7302_v19 }
 0x98b   : > { %v3928_v45 = vadd.f32 %v4641_v8, %v7254_v36  ;;  %v3919_v33 = vpop.f32.mrb[49].mxu1 }
 0x98c   : > { %v3920_v13 = vadd.f32 %v7254_v36, %v3919_v33  ;;  %v4642_v58 = vpop.f32.mrb[50].mxu1 }
 0x98d   : > { %v7307_v47 = vadd.f32 %v3928_v45, %v6694_v57  ;;  %v3931_v12 = vadd.f32 %v4642_v58, %v7254_v36  ;;  %v3922_v60 = vpop.f32.mrb[51].mxu1  ;;  %v7701_v45 = vld [vmem:[#allocation4_spill] sm:$0xff] }
 0x98e   : > { %v7311_v14 = vadd.f32 %v3920_v13, %v7690_v25  ;;  %v3923_v7 = vadd.f32 %v7254_v36, %v3922_v60 }
 0x98f   : > { %v7315_v54 = vadd.f32 %v3931_v12, %v7691_v59  ;;  %v7702_v12 = vld [vmem:[#allocation15_spill] sm:$0xff]  ;;  %4048 = vst.msk [vmem:[#allocation2 + $0x70] sm:$0xff] (!%p4356_p7), %vm609_vm1, %v7307_v47 }
 0x990   : > { %v7318_v32 = vadd.f32 %v3923_v7, %v7692_v51  ;;  %v7703_v7 = vld [vmem:[#allocation17_spill] sm:$0xff]  ;;  %v7704_v51 = vld [vmem:[#allocation18_spill] sm:$0xff]  ;;  %4046 = vst.msk [vmem:[#allocation2 + $0x60] sm:$0xff] (!%p4356_p7), %vm609_vm1, %v7311_v14 }
 0x991   : > { %4049 = vst.msk [vmem:[#allocation2 + $0x78] sm:$0xff] (!%p4356_p7), %vm609_vm1, %v7315_v54 }
 0x992   : > { %v4645_v18 = vpop.f32.mrb[52].mxu1  ;;  %4047 = vst.msk [vmem:[#allocation2 + $0x68] sm:$0xff] (!%p4356_p7), %vm609_vm1, %v7318_v32 }
 0x993   : > { %v3944_v34 = vadd.f32 %v4645_v18, %v7254_v36  ;;  %v3935_v52 = vpop.f32.mrb[53].mxu1 }
 0x994   : > { %v3936_v57 = vadd.f32 %v7254_v36, %v3935_v52  ;;  %v4646_v50 = vpop.f32.mrb[54].mxu1 }
 0x995   : > { %v7323_v63 = vadd.f32 %v3944_v34, %v7693_v2  ;;  %v3947_v15 = vadd.f32 %v4646_v50, %v7254_v36  ;;  %v3938_v38 = vpop.f32.mrb[55].mxu1 }
 0x996   : > { %v7327_v42 = vadd.f32 %v3936_v57, %v7694_v21  ;;  %v3939_v35 = vadd.f32 %v7254_v36, %v3938_v38 }
 0x997   : > { %v7331_v41 = vadd.f32 %v3947_v15, %v7695_v39  ;;  %v7705_v15 = vld [vmem:[#allocation22_spill] sm:$0xff]  ;;  %v7706_v39 = vld [vmem:[#allocation19_spill] sm:$0xff]  ;;  %4052 = vst.msk [vmem:[#allocation2 + $0x90] sm:$0xff] (!%p4356_p7), %vm609_vm1, %v7323_v63 }
 0x998   : > { %v7334_v26 = vadd.f32 %v3939_v35, %v7696_v20  ;;  %4050 = vst.msk [vmem:[#allocation2 + $0x80] sm:$0xff] (!%p4356_p7), %vm609_vm1, %v7327_v42 }
 0x999   : > { %4053 = vst.msk [vmem:[#allocation2 + $0x98] sm:$0xff] (!%p4356_p7), %vm609_vm1, %v7331_v41 }
 0x99a   : > { %v4649_v1 = vpop.f32.mrb[56].mxu1  ;;  %4051 = vst.msk [vmem:[#allocation2 + $0x88] sm:$0xff] (!%p4356_p7), %vm609_vm1, %v7334_v26 }
 0x99b   : > { %v3960_v16 = vadd.f32 %v4649_v1, %v7254_v36  ;;  %v3951_v44 = vpop.f32.mrb[57].mxu1 }
 0x99c   : > { %v3952_v11 = vadd.f32 %v7254_v36, %v3951_v44  ;;  %v4650_v56 = vpop.f32.mrb[58].mxu1 }
 0x99d   : > { %v7339_v48 = vadd.f32 %v3960_v16, %v7697_v0  ;;  %v3963_v28 = vadd.f32 %v4650_v56, %v7254_v36  ;;  %v3954_v17 = vpop.f32.mrb[59].mxu1  ;;  %v7707_v16 = vld [vmem:[#allocation21_spill] sm:$0xff] }
 0x99e   : > { %v7343_v55 = vadd.f32 %v3952_v11, %v7698_v29  ;;  %v3955_v62 = vadd.f32 %v7254_v36, %v3954_v17  ;;  %v7708_v11 = vld [vmem:[#allocation20_spill] sm:$0xff] }
 0x99f   : > { %v7347_v23 = vadd.f32 %v3963_v28, %v7699_v6  ;;  %4056 = vst.msk [vmem:[#allocation2 + $0xb0] sm:$0xff] (!%p4356_p7), %vm609_vm1, %v7339_v48 }
 0x9a0   : > { %v7350_v27 = vadd.f32 %v3955_v62, %v7700_v49  ;;  %4054 = vst.msk [vmem:[#allocation2 + $0xa0] sm:$0xff] (!%p4356_p7), %vm609_vm1, %v7343_v55 }
 0x9a1   : > { %4057 = vst.msk [vmem:[#allocation2 + $0xb8] sm:$0xff] (!%p4356_p7), %vm609_vm1, %v7347_v23 }
 0x9a2   : > { %v4653_v31 = vpop.f32.mrb[60].mxu1  ;;  %4055 = vst.msk [vmem:[#allocation2 + $0xa8] sm:$0xff] (!%p4356_p7), %vm609_vm1, %v7350_v27 }
 0x9a3   : > { %v3976_v61 = vadd.f32 %v4653_v31, %v7254_v36  ;;  %v3967_v3 = vpop.f32.mrb[61].mxu1 }
 0x9a4   : > { %v3968_v10 = vadd.f32 %v7254_v36, %v3967_v3  ;;  %v4654_v8 = vpop.f32.mrb[62].mxu1 }
 0x9a5   : > { %v7355_v33 = vadd.f32 %v3976_v61, %v7701_v45  ;;  %v3979_v13 = vadd.f32 %v4654_v8, %v7254_v36  ;;  %v3970_v58 = vpop.f32.mrb[63].mxu1 }
 0x9a6   : > { %v7359_v60 = vadd.f32 %v3968_v10, %v7702_v12  ;;  %v3971_v25 = vadd.f32 %v7254_v36, %v3970_v58 }
 0x9a7   : > { %v7363_v59 = vadd.f32 %v3979_v13, %v7703_v7  ;;  %4060 = vst.msk [vmem:[#allocation2 + $0xd0] sm:$0xff] (!%p4356_p7), %vm609_vm1, %v7355_v33 }
 0x9a8   : > { %v7366_v18 = vadd.f32 %v3971_v25, %v7704_v51  ;;  %4058 = vst.msk [vmem:[#allocation2 + $0xc0] sm:$0xff] (!%p4356_p7), %vm609_vm1, %v7359_v60 }
 0x9a9   : > { %4061 = vst.msk [vmem:[#allocation2 + $0xd8] sm:$0xff] (!%p4356_p7), %vm609_vm1, %v7363_v59 }
 0x9aa   : > { %v4657_v34 = vpop.f32.mrb[64].mxu1  ;;  %4033 = sbr.rel (%p4356_p7) target bundleno = 2483 (0x9b3), region = 80  ;;  %4059 = vst.msk [vmem:[#allocation2 + $0xc8] sm:$0xff] (!%p4356_p7), %vm609_vm1, %v7366_v18 }
 0x9ab   : > { %v3992_v52 = vadd.f32 %v4657_v34, %v7254_v36  ;;  %v3983_v57 = vpop.f32.mrb[65].mxu1 }
 0x9ac   : > { %v3984_v50 = vadd.f32 %v7254_v36, %v3983_v57  ;;  %v4658_v2 = vpop.f32.mrb[66].mxu1 }
 0x9ad   : > { %v7371_v38 = vadd.f32 %v3992_v52, %v7705_v15  ;;  %v3995_v21 = vadd.f32 %v4658_v2, %v7254_v36  ;;  %v3986_v35 = vpop.f32.mrb[67].mxu1 }
 0x9ae   : > { %v7375_v20 = vadd.f32 %v3984_v50, %v7706_v39  ;;  %v3987_v1 = vadd.f32 %v7254_v36, %v3986_v35 }
 0x9af   : > { %v7379_v44 = vadd.f32 %v3995_v21, %v7707_v16  ;;  %4064 = vst.msk [vmem:[#allocation2 + $0xf0] sm:$0xff] (!%p4356_p7), %vm609_vm1, %v7371_v38 }
 0x9b0   : > { %v7382_v56 = vadd.f32 %v3987_v1, %v7708_v11  ;;  %4062 = vst.msk [vmem:[#allocation2 + $0xe0] sm:$0xff] (!%p4356_p7), %vm609_vm1, %v7375_v20 }
 0x9b1   : > { %4065 = vst.msk [vmem:[#allocation2 + $0xf8] sm:$0xff] %vm609_vm1, %v7379_v44 }
 0x9b2   : > { %4063 = vst.msk [vmem:[#allocation2 + $0xe8] sm:$0xff] %vm609_vm1, %v7382_v56 }
 0x9b3 PF: > { %p4357_p8 = scmp.ne.s32.totalorder %s4939_s25, 1 }
 0x9b4   : > { %v4070_v36 = vld [vmem:[%s5067_s18] sm:$0xff] (!%p4357_p8)  ;;  %v4071_v0 = vld [vmem:[%s5067_s18 + $0x8] sm:$0xff] (!%p4357_p8)  ;;  %v4072_v28 = vld [vmem:[%s5067_s18 + $0x10] sm:$0xff] (!%p4357_p8) }
 0x9b5   : > { %4069 = sbr.rel (%p4357_p8) target bundleno = 2503 (0x9c7), region = 84  ;;  %v4102_v17 = vadd.f32 (!%p4357_p8), %v4070_v36, %v7263_v4  ;;  %v4103_v29 = vadd.f32 (!%p4357_p8), %v4071_v0, %v7270_v53  ;;  %v4104_v62 = vadd.f32 (!%p4357_p8), %v4072_v28, %v7259_v40  ;;  %v4073_v6 = vld [vmem:[%s5067_s18 + $0x18] sm:$0xff] (!%p4357_p8)  ;;  %v4074_v49 = vld [vmem:[%s5067_s18 + $0x20] sm:$0xff] (!%p4357_p8)  ;;  %v4075_v31 = vld [vmem:[%s5067_s18 + $0x28] sm:$0xff] (!%p4357_p8) }
 0x9b6   : > { %v4105_v61 = vadd.f32 (!%p4357_p8), %v4073_v6, %v7267_v24  ;;  %v4106_v3 = vadd.f32 (!%p4357_p8), %v4074_v49, %v7279_v37  ;;  %v4107_v10 = vadd.f32 (!%p4357_p8), %v4075_v31, %v7286_v46  ;;  %v4076_v4 = vld [vmem:[%s5067_s18 + $0x30] sm:$0xff] (!%p4357_p8)  ;;  %v4077_v8 = vld [vmem:[%s5067_s18 + $0x38] sm:$0xff] (!%p4357_p8)  ;;  %v4078_v53 = vld [vmem:[%s5067_s18 + $0x40] sm:$0xff] (!%p4357_p8) }
 0x9b7   : > { %4134 = vst.msk [vmem:[%s5072_s21] sm:$0xff] (!%p4357_p8), %vm609_vm1, %v4102_v17  ;;  %4135 = vst.msk [vmem:[%s5072_s21 + $0x8] sm:$0xff] (!%p4357_p8), %vm609_vm1, %v4103_v29  ;;  %v4108_v40 = vadd.f32 (!%p4357_p8), %v4076_v4, %v7275_v5  ;;  %v4109_v24 = vadd.f32 (!%p4357_p8), %v4077_v8, %v7283_v43  ;;  %v4110_v37 = vadd.f32 (!%p4357_p8), %v4078_v53, %v7295_v22  ;;  %v4079_v46 = vld [vmem:[%s5067_s18 + $0x48] sm:$0xff] (!%p4357_p8)  ;;  %v4080_v45 = vld [vmem:[%s5067_s18 + $0x50] sm:$0xff] (!%p4357_p8) }
 0x9b8   : > { %4136 = vst.msk [vmem:[%s5072_s21 + $0x10] sm:$0xff] (!%p4357_p8), %vm609_vm1, %v4104_v62  ;;  %v4081_v13 = vld [vmem:[%s5067_s18 + $0x58] sm:$0xff] (!%p4357_p8)  ;;  %4137 = vst.msk [vmem:[%s5072_s21 + $0x18] sm:$0xff] (!%p4357_p8), %vm609_vm1, %v4105_v61  ;;  %v4111_v5 = vadd.f32 (!%p4357_p8), %v4079_v46, %v7302_v19  ;;  %v4112_v43 = vadd.f32 (!%p4357_p8), %v4080_v45, %v7291_v30  ;;  %v4082_v58 = vld [vmem:[%s5067_s18 + $0x60] sm:$0xff] (!%p4357_p8) }
 0x9b9   : > { %4138 = vst.msk [vmem:[%s5072_s21 + $0x20] sm:$0xff] (!%p4357_p8), %vm609_vm1, %v4106_v3  ;;  %4139 = vst.msk [vmem:[%s5072_s21 + $0x28] sm:$0xff] (!%p4357_p8), %vm609_vm1, %v4107_v10  ;;  %v4113_v22 = vadd.f32 (!%p4357_p8), %v4081_v13, %v7299_v9  ;;  %v4083_v12 = vld [vmem:[%s5067_s18 + $0x68] sm:$0xff] (!%p4357_p8)  ;;  %v4084_v25 = vld [vmem:[%s5067_s18 + $0x70] sm:$0xff] (!%p4357_p8)  ;;  %v4114_v19 = vadd.f32 (!%p4357_p8), %v4082_v58, %v7311_v14 }
 0x9ba   : > { %4140 = vst.msk [vmem:[%s5072_s21 + $0x30] sm:$0xff] (!%p4357_p8), %vm609_vm1, %v4108_v40  ;;  %4141 = vst.msk [vmem:[%s5072_s21 + $0x38] sm:$0xff] (!%p4357_p8), %vm609_vm1, %v4109_v24  ;;  %v4115_v30 = vadd.f32 (!%p4357_p8), %v4083_v12, %v7318_v32  ;;  %v4116_v9 = vadd.f32 (!%p4357_p8), %v4084_v25, %v7307_v47  ;;  %v4085_v7 = vld [vmem:[%s5067_s18 + $0x78] sm:$0xff] (!%p4357_p8)  ;;  %v4086_v51 = vld [vmem:[%s5067_s18 + $0x80] sm:$0xff] (!%p4357_p8) }
 0x9bb   : > { %4142 = vst.msk [vmem:[%s5072_s21 + $0x40] sm:$0xff] (!%p4357_p8), %vm609_vm1, %v4110_v37  ;;  %v4087_v34 = vld [vmem:[%s5067_s18 + $0x88] sm:$0xff] (!%p4357_p8)  ;;  %4143 = vst.msk [vmem:[%s5072_s21 + $0x48] sm:$0xff] (!%p4357_p8), %vm609_vm1, %v4111_v5  ;;  %v4117_v14 = vadd.f32 (!%p4357_p8), %v4085_v7, %v7315_v54  ;;  %v4118_v32 = vadd.f32 (!%p4357_p8), %v4086_v51, %v7327_v42  ;;  %v4088_v52 = vld [vmem:[%s5067_s18 + $0x90] sm:$0xff] (!%p4357_p8) }
 0x9bc   : > { %4144 = vst.msk [vmem:[%s5072_s21 + $0x50] sm:$0xff] %vm609_vm1, %v4112_v43  ;;  %4145 = vst.msk [vmem:[%s5072_s21 + $0x58] sm:$0xff] %vm609_vm1, %v4113_v22  ;;  %v4119_v47 = vadd.f32 %v4087_v34, %v7334_v26  ;;  %v4089_v57 = vld [vmem:[%s5067_s18 + $0x98] sm:$0xff]  ;;  %v4090_v50 = vld [vmem:[%s5067_s18 + $0xa0] sm:$0xff]  ;;  %v4120_v54 = vadd.f32 %v4088_v52, %v7323_v63 }
 0x9bd   : > { %4146 = vst.msk [vmem:[%s5072_s21 + $0x60] sm:$0xff] %vm609_vm1, %v4114_v19  ;;  %4147 = vst.msk [vmem:[%s5072_s21 + $0x68] sm:$0xff] %vm609_vm1, %v4115_v30  ;;  %v4121_v42 = vadd.f32 %v4089_v57, %v7331_v41  ;;  %v4122_v26 = vadd.f32 %v4090_v50, %v7343_v55  ;;  %v4091_v2 = vld [vmem:[%s5067_s18 + $0xa8] sm:$0xff]  ;;  %v4092_v15 = vld [vmem:[%s5067_s18 + $0xb0] sm:$0xff] }
 0x9be   : > { %4148 = vst.msk [vmem:[%s5072_s21 + $0x70] sm:$0xff] %vm609_vm1, %v4116_v9  ;;  %v4093_v21 = vld [vmem:[%s5067_s18 + $0xb8] sm:$0xff]  ;;  %4149 = vst.msk [vmem:[%s5072_s21 + $0x78] sm:$0xff] %vm609_vm1, %v4117_v14  ;;  %v4123_v63 = vadd.f32 %v4091_v2, %v7350_v27  ;;  %v4124_v41 = vadd.f32 %v4092_v15, %v7339_v48  ;;  %v4094_v35 = vld [vmem:[%s5067_s18 + $0xc0] sm:$0xff] }
 0x9bf   : > { %4150 = vst.msk [vmem:[%s5072_s21 + $0x80] sm:$0xff] %vm609_vm1, %v4118_v32  ;;  %4151 = vst.msk [vmem:[%s5072_s21 + $0x88] sm:$0xff] %vm609_vm1, %v4119_v47  ;;  %v4125_v55 = vadd.f32 %v4093_v21, %v7347_v23  ;;  %v4095_v39 = vld [vmem:[%s5067_s18 + $0xc8] sm:$0xff]  ;;  %v4096_v1 = vld [vmem:[%s5067_s18 + $0xd0] sm:$0xff]  ;;  %v4126_v27 = vadd.f32 %v4094_v35, %v7359_v60 }
 0x9c0   : > { %4152 = vst.msk [vmem:[%s5072_s21 + $0x90] sm:$0xff] %vm609_vm1, %v4120_v54  ;;  %4153 = vst.msk [vmem:[%s5072_s21 + $0x98] sm:$0xff] %vm609_vm1, %v4121_v42  ;;  %v4127_v48 = vadd.f32 %v4095_v39, %v7366_v18  ;;  %v4128_v23 = vadd.f32 %v4096_v1, %v7355_v33  ;;  %v4097_v16 = vld [vmem:[%s5067_s18 + $0xd8] sm:$0xff]  ;;  %v4098_v11 = vld [vmem:[%s5067_s18 + $0xe0] sm:$0xff] }
 0x9c1   : > { %4154 = vst.msk [vmem:[%s5072_s21 + $0xa0] sm:$0xff] %vm609_vm1, %v4122_v26  ;;  %v4099_v36 = vld [vmem:[%s5067_s18 + $0xe8] sm:$0xff]  ;;  %4155 = vst.msk [vmem:[%s5072_s21 + $0xa8] sm:$0xff] %vm609_vm1, %v4123_v63  ;;  %v4129_v60 = vadd.f32 %v4097_v16, %v7363_v59  ;;  %v4130_v18 = vadd.f32 %v4098_v11, %v7375_v20  ;;  %v4100_v0 = vld [vmem:[%s5067_s18 + $0xf0] sm:$0xff] }
 0x9c2   : > { %4156 = vst.msk [vmem:[%s5072_s21 + $0xb0] sm:$0xff] %vm609_vm1, %v4124_v41  ;;  %4157 = vst.msk [vmem:[%s5072_s21 + $0xb8] sm:$0xff] %vm609_vm1, %v4125_v55  ;;  %v4131_v33 = vadd.f32 %v4099_v36, %v7382_v56  ;;  %v4101_v28 = vld [vmem:[%s5067_s18 + $0xf8] sm:$0xff]  ;;  %v4132_v17 = vadd.f32 %v4100_v0, %v7371_v38 }
 0x9c3   : > { %4158 = vst.msk [vmem:[%s5072_s21 + $0xc0] sm:$0xff] %vm609_vm1, %v4126_v27  ;;  %4159 = vst.msk [vmem:[%s5072_s21 + $0xc8] sm:$0xff] %vm609_vm1, %v4127_v48  ;;  %v4133_v29 = vadd.f32 %v4101_v28, %v7379_v44 }
 0x9c4   : > { %4160 = vst.msk [vmem:[%s5072_s21 + $0xd0] sm:$0xff] %vm609_vm1, %v4128_v23  ;;  %4161 = vst.msk [vmem:[%s5072_s21 + $0xd8] sm:$0xff] %vm609_vm1, %v4129_v60 }
 0x9c5   : > { %4162 = vst.msk [vmem:[%s5072_s21 + $0xe0] sm:$0xff] %vm609_vm1, %v4130_v18  ;;  %4163 = vst.msk [vmem:[%s5072_s21 + $0xe8] sm:$0xff] %vm609_vm1, %v4131_v33 }
 0x9c6   : > { %4164 = vst.msk [vmem:[%s5072_s21 + $0xf0] sm:$0xff] %vm609_vm1, %v4132_v17  ;;  %4165 = vst.msk [vmem:[%s5072_s21 + $0xf8] sm:$0xff] %vm609_vm1, %v4133_v29 }
 0x9c7 PF: > { %s23_s29 = sadd.s32 1, %s4955_s29   ;;  %s7709_s25 = smov %s4947_s27 }
 0x9c8   : > { %p20_p9 = scmp.ge.s32.totalorder %s23_s29, 6   ;;  %s7710_s26 = smov %s4951_s28 }
 0x9c9   : > { %s7711_s27 = smov %s7714_s30  ;;  %s7712_s28 = smov %s7718_s14 }
 0x9ca   :  { %22 = sbr.rel (!%p20_p9) target bundleno = 3 (0x3), region = 128 }

</bundles_post_ra>
